<compile_context>
chip_gen: v6e
topology: v6e:2x2x1
jax: 0.10.0
libtpu: 0.0.40
codegen_flags: <defaults>
</compile_context>

<pallas_src>
import jax
import jax.numpy as jnp
from jax.experimental import pallas as pl
from jax.experimental.pallas import tpu as pltpu

EPS = 1e-5
CIN = 3
COUT = 3


def _make_kernel(N, H, W, L, Lp):
    R = COUT * N
    cnt1 = float(N * (H - 2) * (W - 2))   # bn1 sees the full conv1 output
    cnt2 = float(N * (H - 4) * (W - 4))   # bn2 sees the full conv2 output
    tap_off = [kh * W + kw for kh in range(3) for kw in range(3)]

    def conv3x3(src_ref, wcols_ref, conv_idx):
        # src_ref  : (CIN, R, Lp) channel-replicated flat frames, zero lane halo
        # wcols_ref: (2, CIN*9, R, 1) per-row weight columns
        # One streamed tap FMA per (ci, t) covers all COUT output channels on a
        # stacked (R, L) tile; bias is folded into the BN shift downstream.
        acc = jnp.zeros((R, L), jnp.float32)
        for ci in range(CIN):
            base = ci * 9
            for t in range(9):
                off = tap_off[t]
                tap = src_ref[ci, :, off:off + L]          # (R, L)
                wcol = wcols_ref[conv_idx, base + t]       # (R, 1)
                acc = acc + tap * wcol
        return acc

    def fused_scalars(s1r, s2r, c, cnt, bias, gamma, beta):
        # relu(y + bn(y)) == max(y_nb * a + b, 0), y = y_nb + bias, training-mode BN.
        s1 = jnp.sum(s1r[c * N:(c + 1) * N])
        s2 = jnp.sum(s2r[c * N:(c + 1) * N])
        mean_nb = s1 / cnt
        var = s2 / cnt - mean_nb * mean_nb    # single-pass E[x^2]-E[x]^2, f32
        gi = gamma * jax.lax.rsqrt(var + EPS)
        a = 1.0 + gi
        b = bias + beta - mean_nb * gi
        return a, b

    def kernel(x_ref, mask_ref, wcols_ref, p_ref, out_ref, mid_ref):
        # p_ref (SMEM, 18): [b1(0:3) g1(3:6) be1(6:9) b2(9:12) g2(12:15) be2(15:18)]
        mask1 = mask_ref[0]                   # (R, L) 0/1 f32
        mask2 = mask_ref[1]

        # Zero only the lane halo of the conv2 source; [:, :, :L] is fully
        # overwritten by the stage-1 stores below.
        for c in range(CIN):
            mid_ref[c, :, L:] = jnp.zeros((R, Lp - L), jnp.float32)

        # ---- stage 1: conv1 (bias folded) -> fused bn + residual + relu ----
        y1 = conv3x3(x_ref, wcols_ref, 0)
        ym = y1 * mask1
        s1r = jnp.sum(ym, axis=1, keepdims=True)          # (R, 1) batched reduce
        s2r = jnp.sum(ym * y1, axis=1, keepdims=True)     # (R, 1)
        for c in range(COUT):
            a, b = fused_scalars(s1r, s2r, c, cnt1,
                                 p_ref[c], p_ref[3 + c], p_ref[6 + c])
            hc = jnp.maximum(y1[c * N:(c + 1) * N, :] * a + b, 0.0)   # (N, L)
            # replicate across conv2's output-channel row groups
            for rep in range(COUT):
                mid_ref[c, rep * N:(rep + 1) * N, :L] = hc

        # ---- stage 2: conv2 -> fused bn + residual + relu -> out ----
        y2 = conv3x3(mid_ref, wcols_ref, 1)
        ym2 = y2 * mask2
        s1r2 = jnp.sum(ym2, axis=1, keepdims=True)
        s2r2 = jnp.sum(ym2 * y2, axis=1, keepdims=True)
        for c in range(COUT):
            a, b = fused_scalars(s1r2, s2r2, c, cnt2,
                                 p_ref[9 + c], p_ref[12 + c], p_ref[15 + c])
            out_ref[c] = jnp.maximum(y2[c * N:(c + 1) * N, :] * a + b, 0.0)

    return kernel


def _weight_cols(w, N):
    # w: (COUT, CIN, 3, 3) -> (CIN*9, COUT*N, 1) with [ci*9+t, co*N+n, 0] = w[co, ci, t]
    wt = jnp.transpose(w.reshape(COUT, CIN, 9), (1, 2, 0)).reshape(CIN * 9, COUT, 1)
    wt = jnp.broadcast_to(wt[:, :, None, :], (CIN * 9, COUT, N, 1))
    return wt.reshape(CIN * 9, COUT * N, 1).astype(jnp.float32)


def model_forward(x, params):
    w1, b1, g1, be1, w2, b2, g2, be2 = params
    N, C, H, W = x.shape
    assert C == CIN and H >= 5 and W >= 5
    L = H * W
    halo = ((2 * W + 2 + 127) // 128) * 128       # lane halo, vreg-aligned
    Lp = L + halo
    R = COUT * N
    Ho, Wo = H - 4, W - 4

    # Channel-replicated lane-dense layout: (CIN, COUT*N, Lp), zero halo.
    xf = jnp.transpose(x, (1, 0, 2, 3)).reshape(CIN, N, L).astype(jnp.float32)
    xrep = jnp.broadcast_to(xf[:, None, :, :], (CIN, COUT, N, L)).reshape(CIN, R, L)
    xrep = jnp.pad(xrep, ((0, 0), (0, 0), (0, Lp - L)))

    # Validity masks for training-mode BN stats (conv outputs occupy the
    # top-left (H-2k)x(W-2k) rectangle of the fixed HxW flat frame).
    idx = jnp.arange(L, dtype=jnp.int32)
    row, col = idx // W, idx % W
    m1 = ((row < H - 2) & (col < W - 2)).astype(jnp.float32)
    m2 = ((row < H - 4) & (col < W - 4)).astype(jnp.float32)
    masks = jnp.stack([jnp.broadcast_to(m1, (R, L)),
                       jnp.broadcast_to(m2, (R, L))], axis=0)      # (2, R, L)

    wcols = jnp.stack([_weight_cols(w1, N), _weight_cols(w2, N)], axis=0)  # (2,27,R,1)
    scal = jnp.concatenate([b1, g1, be1, b2, g2, be2]).astype(jnp.float32)  # (18,)

    vmem = pl.BlockSpec(memory_space=pltpu.MemorySpace.VMEM)
    smem = pl.BlockSpec(memory_space=pltpu.MemorySpace.SMEM)

    # TODO(synk): for production N/H/W, grid over N (and H with a 2-row halo)
    # marked "parallel" (v7x: 2 TCs, 64 MiB VMEM budget), two-pass BN (stats
    # kernel + normalize kernel), and bf16 activations for HBM traffic on
    # v5e/v6e.  At this toy shape one fused latency-dominated block is fastest.
    out_flat = pl.pallas_call(
        _make_kernel(N, H, W, L, Lp),
        out_shape=jax.ShapeDtypeStruct((COUT, N, L), jnp.float32),
        in_specs=[vmem, vmem, vmem, smem],
        out_specs=vmem,
        scratch_shapes=[pltpu.VMEM((CIN, R, Lp), jnp.float32)],
    )(xrep, masks, wcols, scal)

    # Back to NCHW and drop the (garbage) frame border.
    out = out_flat.reshape(COUT, N, H, W)[:, :, :Ho, :Wo]
    return jnp.transpose(out, (1, 0, 2, 3))


def reference(x, params):
    # pure-JAX reference for validation
    w1, b1, g1, be1, w2, b2, g2, be2 = params

    def conv(x, w, b):
        y = jax.lax.conv_general_dilated(
            x, w, window_strides=(1, 1), padding='VALID',
            dimension_numbers=('NCHW', 'OIHW', 'NCHW'))
        return y + b[None, :, None, None]

    def bn(y, g, be):
        m = jnp.mean(y, axis=(0, 2, 3), keepdims=True)
        v = jnp.mean((y - m) ** 2, axis=(0, 2, 3), keepdims=True)
        return (y - m) / jnp.sqrt(v + EPS) * g[None, :, None, None] + be[None, :, None, None]

    y = conv(x, w1, b1)
    y = jnp.maximum(y + bn(y, g1, be1), 0.0)
    y = conv(y, w2, b2)
    return jnp.maximum(y + bn(y, g2, be2), 0.0)


if __name__ == "__main__":
    key = jax.random.PRNGKey(0)
    k_x, k_w1, k_b1, k_w2, k_b2 = jax.random.split(key, 5)

    # small shapes consistent with the module (Cin fixed to 3 by conv1)
    N, C, H, W = 2, 3, 16, 16
    x = jax.random.normal(k_x, (N, C, H, W), dtype=jnp.float32)

    bound = 1.0 / jnp.sqrt(3.0 * 3.0 * 3.0)  # PyTorch default conv init bound
    w1 = jax.random.uniform(k_w1, (3, 3, 3, 3), minval=-bound, maxval=bound, dtype=jnp.float32)
    b1 = jax.random.uniform(k_b1, (3,), minval=-bound, maxval=bound, dtype=jnp.float32)
    w2 = jax.random.uniform(k_w2, (3, 3, 3, 3), minval=-bound, maxval=bound, dtype=jnp.float32)
    b2 = jax.random.uniform(k_b2, (3,), minval=-bound, maxval=bound, dtype=jnp.float32)
    g1 = jnp.ones((3,), jnp.float32)   # BatchNorm default affine params
    be1 = jnp.zeros((3,), jnp.float32)
    g2 = jnp.ones((3,), jnp.float32)
    be2 = jnp.zeros((3,), jnp.float32)

    params = (w1, b1, g1, be1, w2, b2, g2, be2)

    out = model_forward(x, params)
    out = jax.block_until_ready(out)

    ref = reference(x, params)
    assert out.shape == (N, 3, H - 4, W - 4), out.shape
    err = float(jnp.max(jnp.abs(out - ref)))
    assert jnp.allclose(out, ref, atol=2e-4, rtol=2e-4), err

    print("KERNEL_OK")
</pallas_src>

<mosaic_0001>
module attributes {stable_mosaic.version = 11 : i64} {
  func.func @kernel(%arg0: memref<3x6x384xf32, #tpu.memory_space<vmem>>, %arg1: memref<2x6x256xf32, #tpu.memory_space<vmem>>, %arg2: memref<2x27x6x1xf32, #tpu.memory_space<vmem>>, %arg3: memref<18xf32, #tpu.memory_space<smem>>, %arg4: memref<3x2x256xf32, #tpu.memory_space<vmem>>, %arg5: memref<3x6x384xf32, #tpu.memory_space<vmem>>) attributes {dimension_semantics = [], scalar_prefetch = 0 : i64, scratch_operands = 1 : i64, tpu.core_type = #tpu.core_type<tc>} {
    %c0 = arith.constant 0 : index
    %c0_0 = arith.constant 0 : index
    %c0_1 = arith.constant 0 : index
    %0 = vector.load %arg1[%c0, %c0_0, %c0_1] : memref<2x6x256xf32, #tpu.memory_space<vmem>>, vector<1x6x256xf32>
    %1 = vector.shape_cast %0 : vector<1x6x256xf32> to vector<6x256xf32>
    %c1 = arith.constant 1 : index
    %c0_2 = arith.constant 0 : index
    %c0_3 = arith.constant 0 : index
    %2 = vector.load %arg1[%c1, %c0_2, %c0_3] : memref<2x6x256xf32, #tpu.memory_space<vmem>>, vector<1x6x256xf32>
    %3 = vector.shape_cast %2 : vector<1x6x256xf32> to vector<6x256xf32>
    %cst = arith.constant 0.000000e+00 : f32
    %4 = vector.broadcast %cst : f32 to vector<6x128xf32>
    %c0_4 = arith.constant 0 : index
    %c0_5 = arith.constant 0 : index
    %c256 = arith.constant 256 : index
    %5 = vector.load %arg5[%c0_4, %c0_5, %c256] : memref<3x6x384xf32, #tpu.memory_space<vmem>>, vector<1x6x128xf32>
    %6 = vector.shape_cast %5 : vector<1x6x128xf32> to vector<6x128xf32>
    %7 = vector.shape_cast %4 : vector<6x128xf32> to vector<1x6x128xf32>
    tpu.vector_store %arg5[%c0_4, %c0_5, %c256], %7 {strides = array<i32>} : memref<3x6x384xf32, #tpu.memory_space<vmem>>, vector<1x6x128xf32>,
    %cst_6 = arith.constant 0.000000e+00 : f32
    %8 = vector.broadcast %cst_6 : f32 to vector<6x128xf32>
    %c1_7 = arith.constant 1 : index
    %c0_8 = arith.constant 0 : index
    %c256_9 = arith.constant 256 : index
    %9 = vector.load %arg5[%c1_7, %c0_8, %c256_9] : memref<3x6x384xf32, #tpu.memory_space<vmem>>, vector<1x6x128xf32>
    %10 = vector.shape_cast %9 : vector<1x6x128xf32> to vector<6x128xf32>
    %11 = vector.shape_cast %8 : vector<6x128xf32> to vector<1x6x128xf32>
    tpu.vector_store %arg5[%c1_7, %c0_8, %c256_9], %11 {strides = array<i32>} : memref<3x6x384xf32, #tpu.memory_space<vmem>>, vector<1x6x128xf32>,
    %cst_10 = arith.constant 0.000000e+00 : f32
    %12 = vector.broadcast %cst_10 : f32 to vector<6x128xf32>
    %c2 = arith.constant 2 : index
    %c0_11 = arith.constant 0 : index
    %c256_12 = arith.constant 256 : index
    %13 = vector.load %arg5[%c2, %c0_11, %c256_12] : memref<3x6x384xf32, #tpu.memory_space<vmem>>, vector<1x6x128xf32>
    %14 = vector.shape_cast %13 : vector<1x6x128xf32> to vector<6x128xf32>
    %15 = vector.shape_cast %12 : vector<6x128xf32> to vector<1x6x128xf32>
    tpu.vector_store %arg5[%c2, %c0_11, %c256_12], %15 {strides = array<i32>} : memref<3x6x384xf32, #tpu.memory_space<vmem>>, vector<1x6x128xf32>,
    %cst_13 = arith.constant 0.000000e+00 : f32
    %16 = vector.broadcast %cst_13 : f32 to vector<6x256xf32>
    %c0_14 = arith.constant 0 : index
    %c0_15 = arith.constant 0 : index
    %c0_16 = arith.constant 0 : index
    %17 = vector.load %arg0[%c0_14, %c0_15, %c0_16] : memref<3x6x384xf32, #tpu.memory_space<vmem>>, vector<1x6x256xf32>
    %18 = vector.shape_cast %17 : vector<1x6x256xf32> to vector<6x256xf32>
    %c0_17 = arith.constant 0 : index
    %c0_18 = arith.constant 0 : index
    %c0_19 = arith.constant 0 : index
    %c0_20 = arith.constant 0 : index
    %19 = vector.load %arg2[%c0_17, %c0_18, %c0_19, %c0_20] : memref<2x27x6x1xf32, #tpu.memory_space<vmem>>, vector<1x1x6x1xf32>
    %20 = vector.shape_cast %19 : vector<1x1x6x1xf32> to vector<6x1xf32>
    %21 = vector.broadcast %20 : vector<6x1xf32> to vector<6x256xf32>
    %22 = arith.mulf %18, %21 : vector<6x256xf32>
    %23 = arith.addf %16, %22 : vector<6x256xf32>
    %c0_21 = arith.constant 0 : index
    %c0_22 = arith.constant 0 : index
    %c1_23 = arith.constant 1 : index
    %24 = vector.load %arg0[%c0_21, %c0_22, %c1_23] : memref<3x6x384xf32, #tpu.memory_space<vmem>>, vector<1x6x256xf32>
    %25 = vector.shape_cast %24 : vector<1x6x256xf32> to vector<6x256xf32>
    %c0_24 = arith.constant 0 : index
    %c1_25 = arith.constant 1 : index
    %c0_26 = arith.constant 0 : index
    %c0_27 = arith.constant 0 : index
    %26 = vector.load %arg2[%c0_24, %c1_25, %c0_26, %c0_27] : memref<2x27x6x1xf32, #tpu.memory_space<vmem>>, vector<1x1x6x1xf32>
    %27 = vector.shape_cast %26 : vector<1x1x6x1xf32> to vector<6x1xf32>
    %28 = vector.broadcast %27 : vector<6x1xf32> to vector<6x256xf32>
    %29 = arith.mulf %25, %28 : vector<6x256xf32>
    %30 = arith.addf %23, %29 : vector<6x256xf32>
    %c0_28 = arith.constant 0 : index
    %c0_29 = arith.constant 0 : index
    %c2_30 = arith.constant 2 : index
    %31 = vector.load %arg0[%c0_28, %c0_29, %c2_30] : memref<3x6x384xf32, #tpu.memory_space<vmem>>, vector<1x6x256xf32>
    %32 = vector.shape_cast %31 : vector<1x6x256xf32> to vector<6x256xf32>
    %c0_31 = arith.constant 0 : index
    %c2_32 = arith.constant 2 : index
    %c0_33 = arith.constant 0 : index
    %c0_34 = arith.constant 0 : index
    %33 = vector.load %arg2[%c0_31, %c2_32, %c0_33, %c0_34] : memref<2x27x6x1xf32, #tpu.memory_space<vmem>>, vector<1x1x6x1xf32>
    %34 = vector.shape_cast %33 : vector<1x1x6x1xf32> to vector<6x1xf32>
    %35 = vector.broadcast %34 : vector<6x1xf32> to vector<6x256xf32>
    %36 = arith.mulf %32, %35 : vector<6x256xf32>
    %37 = arith.addf %30, %36 : vector<6x256xf32>
    %c0_35 = arith.constant 0 : index
    %c0_36 = arith.constant 0 : index
    %c16 = arith.constant 16 : index
    %38 = vector.load %arg0[%c0_35, %c0_36, %c16] : memref<3x6x384xf32, #tpu.memory_space<vmem>>, vector<1x6x256xf32>
    %39 = vector.shape_cast %38 : vector<1x6x256xf32> to vector<6x256xf32>
    %c0_37 = arith.constant 0 : index
    %c3 = arith.constant 3 : index
    %c0_38 = arith.constant 0 : index
    %c0_39 = arith.constant 0 : index
    %40 = vector.load %arg2[%c0_37, %c3, %c0_38, %c0_39] : memref<2x27x6x1xf32, #tpu.memory_space<vmem>>, vector<1x1x6x1xf32>
    %41 = vector.shape_cast %40 : vector<1x1x6x1xf32> to vector<6x1xf32>
    %42 = vector.broadcast %41 : vector<6x1xf32> to vector<6x256xf32>
    %43 = arith.mulf %39, %42 : vector<6x256xf32>
    %44 = arith.addf %37, %43 : vector<6x256xf32>
    %c0_40 = arith.constant 0 : index
    %c0_41 = arith.constant 0 : index
    %c17 = arith.constant 17 : index
    %45 = vector.load %arg0[%c0_40, %c0_41, %c17] : memref<3x6x384xf32, #tpu.memory_space<vmem>>, vector<1x6x256xf32>
    %46 = vector.shape_cast %45 : vector<1x6x256xf32> to vector<6x256xf32>
    %c0_42 = arith.constant 0 : index
    %c4 = arith.constant 4 : index
    %c0_43 = arith.constant 0 : index
    %c0_44 = arith.constant 0 : index
    %47 = vector.load %arg2[%c0_42, %c4, %c0_43, %c0_44] : memref<2x27x6x1xf32, #tpu.memory_space<vmem>>, vector<1x1x6x1xf32>
    %48 = vector.shape_cast %47 : vector<1x1x6x1xf32> to vector<6x1xf32>
    %49 = vector.broadcast %48 : vector<6x1xf32> to vector<6x256xf32>
    %50 = arith.mulf %46, %49 : vector<6x256xf32>
    %51 = arith.addf %44, %50 : vector<6x256xf32>
    %c0_45 = arith.constant 0 : index
    %c0_46 = arith.constant 0 : index
    %c18 = arith.constant 18 : index
    %52 = vector.load %arg0[%c0_45, %c0_46, %c18] : memref<3x6x384xf32, #tpu.memory_space<vmem>>, vector<1x6x256xf32>
    %53 = vector.shape_cast %52 : vector<1x6x256xf32> to vector<6x256xf32>
    %c0_47 = arith.constant 0 : index
    %c5 = arith.constant 5 : index
    %c0_48 = arith.constant 0 : index
    %c0_49 = arith.constant 0 : index
    %54 = vector.load %arg2[%c0_47, %c5, %c0_48, %c0_49] : memref<2x27x6x1xf32, #tpu.memory_space<vmem>>, vector<1x1x6x1xf32>
    %55 = vector.shape_cast %54 : vector<1x1x6x1xf32> to vector<6x1xf32>
    %56 = vector.broadcast %55 : vector<6x1xf32> to vector<6x256xf32>
    %57 = arith.mulf %53, %56 : vector<6x256xf32>
    %58 = arith.addf %51, %57 : vector<6x256xf32>
    %c0_50 = arith.constant 0 : index
    %c0_51 = arith.constant 0 : index
    %c32 = arith.constant 32 : index
    %59 = vector.load %arg0[%c0_50, %c0_51, %c32] : memref<3x6x384xf32, #tpu.memory_space<vmem>>, vector<1x6x256xf32>
    %60 = vector.shape_cast %59 : vector<1x6x256xf32> to vector<6x256xf32>
    %c0_52 = arith.constant 0 : index
    %c6 = arith.constant 6 : index
    %c0_53 = arith.constant 0 : index
    %c0_54 = arith.constant 0 : index
    %61 = vector.load %arg2[%c0_52, %c6, %c0_53, %c0_54] : memref<2x27x6x1xf32, #tpu.memory_space<vmem>>, vector<1x1x6x1xf32>
    %62 = vector.shape_cast %61 : vector<1x1x6x1xf32> to vector<6x1xf32>
    %63 = vector.broadcast %62 : vector<6x1xf32> to vector<6x256xf32>
    %64 = arith.mulf %60, %63 : vector<6x256xf32>
    %65 = arith.addf %58, %64 : vector<6x256xf32>
    %c0_55 = arith.constant 0 : index
    %c0_56 = arith.constant 0 : index
    %c33 = arith.constant 33 : index
    %66 = vector.load %arg0[%c0_55, %c0_56, %c33] : memref<3x6x384xf32, #tpu.memory_space<vmem>>, vector<1x6x256xf32>
    %67 = vector.shape_cast %66 : vector<1x6x256xf32> to vector<6x256xf32>
    %c0_57 = arith.constant 0 : index
    %c7 = arith.constant 7 : index
    %c0_58 = arith.constant 0 : index
    %c0_59 = arith.constant 0 : index
    %68 = vector.load %arg2[%c0_57, %c7, %c0_58, %c0_59] : memref<2x27x6x1xf32, #tpu.memory_space<vmem>>, vector<1x1x6x1xf32>
    %69 = vector.shape_cast %68 : vector<1x1x6x1xf32> to vector<6x1xf32>
    %70 = vector.broadcast %69 : vector<6x1xf32> to vector<6x256xf32>
    %71 = arith.mulf %67, %70 : vector<6x256xf32>
    %72 = arith.addf %65, %71 : vector<6x256xf32>
    %c0_60 = arith.constant 0 : index
    %c0_61 = arith.constant 0 : index
    %c34 = arith.constant 34 : index
    %73 = vector.load %arg0[%c0_60, %c0_61, %c34] : memref<3x6x384xf32, #tpu.memory_space<vmem>>, vector<1x6x256xf32>
    %74 = vector.shape_cast %73 : vector<1x6x256xf32> to vector<6x256xf32>
    %c0_62 = arith.constant 0 : index
    %c8 = arith.constant 8 : index
    %c0_63 = arith.constant 0 : index
    %c0_64 = arith.constant 0 : index
    %75 = vector.load %arg2[%c0_62, %c8, %c0_63, %c0_64] : memref<2x27x6x1xf32, #tpu.memory_space<vmem>>, vector<1x1x6x1xf32>
    %76 = vector.shape_cast %75 : vector<1x1x6x1xf32> to vector<6x1xf32>
    %77 = vector.broadcast %76 : vector<6x1xf32> to vector<6x256xf32>
    %78 = arith.mulf %74, %77 : vector<6x256xf32>
    %79 = arith.addf %72, %78 : vector<6x256xf32>
    %c1_65 = arith.constant 1 : index
    %c0_66 = arith.constant 0 : index
    %c0_67 = arith.constant 0 : index
    %80 = vector.load %arg0[%c1_65, %c0_66, %c0_67] : memref<3x6x384xf32, #tpu.memory_space<vmem>>, vector<1x6x256xf32>
    %81 = vector.shape_cast %80 : vector<1x6x256xf32> to vector<6x256xf32>
    %c0_68 = arith.constant 0 : index
    %c9 = arith.constant 9 : index
    %c0_69 = arith.constant 0 : index
    %c0_70 = arith.constant 0 : index
    %82 = vector.load %arg2[%c0_68, %c9, %c0_69, %c0_70] : memref<2x27x6x1xf32, #tpu.memory_space<vmem>>, vector<1x1x6x1xf32>
    %83 = vector.shape_cast %82 : vector<1x1x6x1xf32> to vector<6x1xf32>
    %84 = vector.broadcast %83 : vector<6x1xf32> to vector<6x256xf32>
    %85 = arith.mulf %81, %84 : vector<6x256xf32>
    %86 = arith.addf %79, %85 : vector<6x256xf32>
    %c1_71 = arith.constant 1 : index
    %c0_72 = arith.constant 0 : index
    %c1_73 = arith.constant 1 : index
    %87 = vector.load %arg0[%c1_71, %c0_72, %c1_73] : memref<3x6x384xf32, #tpu.memory_space<vmem>>, vector<1x6x256xf32>
    %88 = vector.shape_cast %87 : vector<1x6x256xf32> to vector<6x256xf32>
    %c0_74 = arith.constant 0 : index
    %c10 = arith.constant 10 : index
    %c0_75 = arith.constant 0 : index
    %c0_76 = arith.constant 0 : index
    %89 = vector.load %arg2[%c0_74, %c10, %c0_75, %c0_76] : memref<2x27x6x1xf32, #tpu.memory_space<vmem>>, vector<1x1x6x1xf32>
    %90 = vector.shape_cast %89 : vector<1x1x6x1xf32> to vector<6x1xf32>
    %91 = vector.broadcast %90 : vector<6x1xf32> to vector<6x256xf32>
    %92 = arith.mulf %88, %91 : vector<6x256xf32>
    %93 = arith.addf %86, %92 : vector<6x256xf32>
    %c1_77 = arith.constant 1 : index
    %c0_78 = arith.constant 0 : index
    %c2_79 = arith.constant 2 : index
    %94 = vector.load %arg0[%c1_77, %c0_78, %c2_79] : memref<3x6x384xf32, #tpu.memory_space<vmem>>, vector<1x6x256xf32>
    %95 = vector.shape_cast %94 : vector<1x6x256xf32> to vector<6x256xf32>
    %c0_80 = arith.constant 0 : index
    %c11 = arith.constant 11 : index
    %c0_81 = arith.constant 0 : index
    %c0_82 = arith.constant 0 : index
    %96 = vector.load %arg2[%c0_80, %c11, %c0_81, %c0_82] : memref<2x27x6x1xf32, #tpu.memory_space<vmem>>, vector<1x1x6x1xf32>
    %97 = vector.shape_cast %96 : vector<1x1x6x1xf32> to vector<6x1xf32>
    %98 = vector.broadcast %97 : vector<6x1xf32> to vector<6x256xf32>
    %99 = arith.mulf %95, %98 : vector<6x256xf32>
    %100 = arith.addf %93, %99 : vector<6x256xf32>
    %c1_83 = arith.constant 1 : index
    %c0_84 = arith.constant 0 : index
    %c16_85 = arith.constant 16 : index
    %101 = vector.load %arg0[%c1_83, %c0_84, %c16_85] : memref<3x6x384xf32, #tpu.memory_space<vmem>>, vector<1x6x256xf32>
    %102 = vector.shape_cast %101 : vector<1x6x256xf32> to vector<6x256xf32>
    %c0_86 = arith.constant 0 : index
    %c12 = arith.constant 12 : index
    %c0_87 = arith.constant 0 : index
    %c0_88 = arith.constant 0 : index
    %103 = vector.load %arg2[%c0_86, %c12, %c0_87, %c0_88] : memref<2x27x6x1xf32, #tpu.memory_space<vmem>>, vector<1x1x6x1xf32>
    %104 = vector.shape_cast %103 : vector<1x1x6x1xf32> to vector<6x1xf32>
    %105 = vector.broadcast %104 : vector<6x1xf32> to vector<6x256xf32>
    %106 = arith.mulf %102, %105 : vector<6x256xf32>
    %107 = arith.addf %100, %106 : vector<6x256xf32>
    %c1_89 = arith.constant 1 : index
    %c0_90 = arith.constant 0 : index
    %c17_91 = arith.constant 17 : index
    %108 = vector.load %arg0[%c1_89, %c0_90, %c17_91] : memref<3x6x384xf32, #tpu.memory_space<vmem>>, vector<1x6x256xf32>
    %109 = vector.shape_cast %108 : vector<1x6x256xf32> to vector<6x256xf32>
    %c0_92 = arith.constant 0 : index
    %c13 = arith.constant 13 : index
    %c0_93 = arith.constant 0 : index
    %c0_94 = arith.constant 0 : index
    %110 = vector.load %arg2[%c0_92, %c13, %c0_93, %c0_94] : memref<2x27x6x1xf32, #tpu.memory_space<vmem>>, vector<1x1x6x1xf32>
    %111 = vector.shape_cast %110 : vector<1x1x6x1xf32> to vector<6x1xf32>
    %112 = vector.broadcast %111 : vector<6x1xf32> to vector<6x256xf32>
    %113 = arith.mulf %109, %112 : vector<6x256xf32>
    %114 = arith.addf %107, %113 : vector<6x256xf32>
    %c1_95 = arith.constant 1 : index
    %c0_96 = arith.constant 0 : index
    %c18_97 = arith.constant 18 : index
    %115 = vector.load %arg0[%c1_95, %c0_96, %c18_97] : memref<3x6x384xf32, #tpu.memory_space<vmem>>, vector<1x6x256xf32>
    %116 = vector.shape_cast %115 : vector<1x6x256xf32> to vector<6x256xf32>
    %c0_98 = arith.constant 0 : index
    %c14 = arith.constant 14 : index
    %c0_99 = arith.constant 0 : index
    %c0_100 = arith.constant 0 : index
    %117 = vector.load %arg2[%c0_98, %c14, %c0_99, %c0_100] : memref<2x27x6x1xf32, #tpu.memory_space<vmem>>, vector<1x1x6x1xf32>
    %118 = vector.shape_cast %117 : vector<1x1x6x1xf32> to vector<6x1xf32>
    %119 = vector.broadcast %118 : vector<6x1xf32> to vector<6x256xf32>
    %120 = arith.mulf %116, %119 : vector<6x256xf32>
    %121 = arith.addf %114, %120 : vector<6x256xf32>
    %c1_101 = arith.constant 1 : index
    %c0_102 = arith.constant 0 : index
    %c32_103 = arith.constant 32 : index
    %122 = vector.load %arg0[%c1_101, %c0_102, %c32_103] : memref<3x6x384xf32, #tpu.memory_space<vmem>>, vector<1x6x256xf32>
    %123 = vector.shape_cast %122 : vector<1x6x256xf32> to vector<6x256xf32>
    %c0_104 = arith.constant 0 : index
    %c15 = arith.constant 15 : index
    %c0_105 = arith.constant 0 : index
    %c0_106 = arith.constant 0 : index
    %124 = vector.load %arg2[%c0_104, %c15, %c0_105, %c0_106] : memref<2x27x6x1xf32, #tpu.memory_space<vmem>>, vector<1x1x6x1xf32>
    %125 = vector.shape_cast %124 : vector<1x1x6x1xf32> to vector<6x1xf32>
    %126 = vector.broadcast %125 : vector<6x1xf32> to vector<6x256xf32>
    %127 = arith.mulf %123, %126 : vector<6x256xf32>
    %128 = arith.addf %121, %127 : vector<6x256xf32>
    %c1_107 = arith.constant 1 : index
    %c0_108 = arith.constant 0 : index
    %c33_109 = arith.constant 33 : index
    %129 = vector.load %arg0[%c1_107, %c0_108, %c33_109] : memref<3x6x384xf32, #tpu.memory_space<vmem>>, vector<1x6x256xf32>
    %130 = vector.shape_cast %129 : vector<1x6x256xf32> to vector<6x256xf32>
    %c0_110 = arith.constant 0 : index
    %c16_111 = arith.constant 16 : index
    %c0_112 = arith.constant 0 : index
    %c0_113 = arith.constant 0 : index
    %131 = vector.load %arg2[%c0_110, %c16_111, %c0_112, %c0_113] : memref<2x27x6x1xf32, #tpu.memory_space<vmem>>, vector<1x1x6x1xf32>
    %132 = vector.shape_cast %131 : vector<1x1x6x1xf32> to vector<6x1xf32>
    %133 = vector.broadcast %132 : vector<6x1xf32> to vector<6x256xf32>
    %134 = arith.mulf %130, %133 : vector<6x256xf32>
    %135 = arith.addf %128, %134 : vector<6x256xf32>
    %c1_114 = arith.constant 1 : index
    %c0_115 = arith.constant 0 : index
    %c34_116 = arith.constant 34 : index
    %136 = vector.load %arg0[%c1_114, %c0_115, %c34_116] : memref<3x6x384xf32, #tpu.memory_space<vmem>>, vector<1x6x256xf32>
    %137 = vector.shape_cast %136 : vector<1x6x256xf32> to vector<6x256xf32>
    %c0_117 = arith.constant 0 : index
    %c17_118 = arith.constant 17 : index
    %c0_119 = arith.constant 0 : index
    %c0_120 = arith.constant 0 : index
    %138 = vector.load %arg2[%c0_117, %c17_118, %c0_119, %c0_120] : memref<2x27x6x1xf32, #tpu.memory_space<vmem>>, vector<1x1x6x1xf32>
    %139 = vector.shape_cast %138 : vector<1x1x6x1xf32> to vector<6x1xf32>
    %140 = vector.broadcast %139 : vector<6x1xf32> to vector<6x256xf32>
    %141 = arith.mulf %137, %140 : vector<6x256xf32>
    %142 = arith.addf %135, %141 : vector<6x256xf32>
    %c2_121 = arith.constant 2 : index
    %c0_122 = arith.constant 0 : index
    %c0_123 = arith.constant 0 : index
    %143 = vector.load %arg0[%c2_121, %c0_122, %c0_123] : memref<3x6x384xf32, #tpu.memory_space<vmem>>, vector<1x6x256xf32>
    %144 = vector.shape_cast %143 : vector<1x6x256xf32> to vector<6x256xf32>
    %c0_124 = arith.constant 0 : index
    %c18_125 = arith.constant 18 : index
    %c0_126 = arith.constant 0 : index
    %c0_127 = arith.constant 0 : index
    %145 = vector.load %arg2[%c0_124, %c18_125, %c0_126, %c0_127] : memref<2x27x6x1xf32, #tpu.memory_space<vmem>>, vector<1x1x6x1xf32>
    %146 = vector.shape_cast %145 : vector<1x1x6x1xf32> to vector<6x1xf32>
    %147 = vector.broadcast %146 : vector<6x1xf32> to vector<6x256xf32>
    %148 = arith.mulf %144, %147 : vector<6x256xf32>
    %149 = arith.addf %142, %148 : vector<6x256xf32>
    %c2_128 = arith.constant 2 : index
    %c0_129 = arith.constant 0 : index
    %c1_130 = arith.constant 1 : index
    %150 = vector.load %arg0[%c2_128, %c0_129, %c1_130] : memref<3x6x384xf32, #tpu.memory_space<vmem>>, vector<1x6x256xf32>
    %151 = vector.shape_cast %150 : vector<1x6x256xf32> to vector<6x256xf32>
    %c0_131 = arith.constant 0 : index
    %c19 = arith.constant 19 : index
    %c0_132 = arith.constant 0 : index
    %c0_133 = arith.constant 0 : index
    %152 = vector.load %arg2[%c0_131, %c19, %c0_132, %c0_133] : memref<2x27x6x1xf32, #tpu.memory_space<vmem>>, vector<1x1x6x1xf32>
    %153 = vector.shape_cast %152 : vector<1x1x6x1xf32> to vector<6x1xf32>
    %154 = vector.broadcast %153 : vector<6x1xf32> to vector<6x256xf32>
    %155 = arith.mulf %151, %154 : vector<6x256xf32>
    %156 = arith.addf %149, %155 : vector<6x256xf32>
    %c2_134 = arith.constant 2 : index
    %c0_135 = arith.constant 0 : index
    %c2_136 = arith.constant 2 : index
    %157 = vector.load %arg0[%c2_134, %c0_135, %c2_136] : memref<3x6x384xf32, #tpu.memory_space<vmem>>, vector<1x6x256xf32>
    %158 = vector.shape_cast %157 : vector<1x6x256xf32> to vector<6x256xf32>
    %c0_137 = arith.constant 0 : index
    %c20 = arith.constant 20 : index
    %c0_138 = arith.constant 0 : index
    %c0_139 = arith.constant 0 : index
    %159 = vector.load %arg2[%c0_137, %c20, %c0_138, %c0_139] : memref<2x27x6x1xf32, #tpu.memory_space<vmem>>, vector<1x1x6x1xf32>
    %160 = vector.shape_cast %159 : vector<1x1x6x1xf32> to vector<6x1xf32>
    %161 = vector.broadcast %160 : vector<6x1xf32> to vector<6x256xf32>
    %162 = arith.mulf %158, %161 : vector<6x256xf32>
    %163 = arith.addf %156, %162 : vector<6x256xf32>
    %c2_140 = arith.constant 2 : index
    %c0_141 = arith.constant 0 : index
    %c16_142 = arith.constant 16 : index
    %164 = vector.load %arg0[%c2_140, %c0_141, %c16_142] : memref<3x6x384xf32, #tpu.memory_space<vmem>>, vector<1x6x256xf32>
    %165 = vector.shape_cast %164 : vector<1x6x256xf32> to vector<6x256xf32>
    %c0_143 = arith.constant 0 : index
    %c21 = arith.constant 21 : index
    %c0_144 = arith.constant 0 : index
    %c0_145 = arith.constant 0 : index
    %166 = vector.load %arg2[%c0_143, %c21, %c0_144, %c0_145] : memref<2x27x6x1xf32, #tpu.memory_space<vmem>>, vector<1x1x6x1xf32>
    %167 = vector.shape_cast %166 : vector<1x1x6x1xf32> to vector<6x1xf32>
    %168 = vector.broadcast %167 : vector<6x1xf32> to vector<6x256xf32>
    %169 = arith.mulf %165, %168 : vector<6x256xf32>
    %170 = arith.addf %163, %169 : vector<6x256xf32>
    %c2_146 = arith.constant 2 : index
    %c0_147 = arith.constant 0 : index
    %c17_148 = arith.constant 17 : index
    %171 = vector.load %arg0[%c2_146, %c0_147, %c17_148] : memref<3x6x384xf32, #tpu.memory_space<vmem>>, vector<1x6x256xf32>
    %172 = vector.shape_cast %171 : vector<1x6x256xf32> to vector<6x256xf32>
    %c0_149 = arith.constant 0 : index
    %c22 = arith.constant 22 : index
    %c0_150 = arith.constant 0 : index
    %c0_151 = arith.constant 0 : index
    %173 = vector.load %arg2[%c0_149, %c22, %c0_150, %c0_151] : memref<2x27x6x1xf32, #tpu.memory_space<vmem>>, vector<1x1x6x1xf32>
    %174 = vector.shape_cast %173 : vector<1x1x6x1xf32> to vector<6x1xf32>
    %175 = vector.broadcast %174 : vector<6x1xf32> to vector<6x256xf32>
    %176 = arith.mulf %172, %175 : vector<6x256xf32>
    %177 = arith.addf %170, %176 : vector<6x256xf32>
    %c2_152 = arith.constant 2 : index
    %c0_153 = arith.constant 0 : index
    %c18_154 = arith.constant 18 : index
    %178 = vector.load %arg0[%c2_152, %c0_153, %c18_154] : memref<3x6x384xf32, #tpu.memory_space<vmem>>, vector<1x6x256xf32>
    %179 = vector.shape_cast %178 : vector<1x6x256xf32> to vector<6x256xf32>
    %c0_155 = arith.constant 0 : index
    %c23 = arith.constant 23 : index
    %c0_156 = arith.constant 0 : index
    %c0_157 = arith.constant 0 : index
    %180 = vector.load %arg2[%c0_155, %c23, %c0_156, %c0_157] : memref<2x27x6x1xf32, #tpu.memory_space<vmem>>, vector<1x1x6x1xf32>
    %181 = vector.shape_cast %180 : vector<1x1x6x1xf32> to vector<6x1xf32>
    %182 = vector.broadcast %181 : vector<6x1xf32> to vector<6x256xf32>
    %183 = arith.mulf %179, %182 : vector<6x256xf32>
    %184 = arith.addf %177, %183 : vector<6x256xf32>
    %c2_158 = arith.constant 2 : index
    %c0_159 = arith.constant 0 : index
    %c32_160 = arith.constant 32 : index
    %185 = vector.load %arg0[%c2_158, %c0_159, %c32_160] : memref<3x6x384xf32, #tpu.memory_space<vmem>>, vector<1x6x256xf32>
    %186 = vector.shape_cast %185 : vector<1x6x256xf32> to vector<6x256xf32>
    %c0_161 = arith.constant 0 : index
    %c24 = arith.constant 24 : index
    %c0_162 = arith.constant 0 : index
    %c0_163 = arith.constant 0 : index
    %187 = vector.load %arg2[%c0_161, %c24, %c0_162, %c0_163] : memref<2x27x6x1xf32, #tpu.memory_space<vmem>>, vector<1x1x6x1xf32>
    %188 = vector.shape_cast %187 : vector<1x1x6x1xf32> to vector<6x1xf32>
    %189 = vector.broadcast %188 : vector<6x1xf32> to vector<6x256xf32>
    %190 = arith.mulf %186, %189 : vector<6x256xf32>
    %191 = arith.addf %184, %190 : vector<6x256xf32>
    %c2_164 = arith.constant 2 : index
    %c0_165 = arith.constant 0 : index
    %c33_166 = arith.constant 33 : index
    %192 = vector.load %arg0[%c2_164, %c0_165, %c33_166] : memref<3x6x384xf32, #tpu.memory_space<vmem>>, vector<1x6x256xf32>
    %193 = vector.shape_cast %192 : vector<1x6x256xf32> to vector<6x256xf32>
    %c0_167 = arith.constant 0 : index
    %c25 = arith.constant 25 : index
    %c0_168 = arith.constant 0 : index
    %c0_169 = arith.constant 0 : index
    %194 = vector.load %arg2[%c0_167, %c25, %c0_168, %c0_169] : memref<2x27x6x1xf32, #tpu.memory_space<vmem>>, vector<1x1x6x1xf32>
    %195 = vector.shape_cast %194 : vector<1x1x6x1xf32> to vector<6x1xf32>
    %196 = vector.broadcast %195 : vector<6x1xf32> to vector<6x256xf32>
    %197 = arith.mulf %193, %196 : vector<6x256xf32>
    %198 = arith.addf %191, %197 : vector<6x256xf32>
    %c2_170 = arith.constant 2 : index
    %c0_171 = arith.constant 0 : index
    %c34_172 = arith.constant 34 : index
    %199 = vector.load %arg0[%c2_170, %c0_171, %c34_172] : memref<3x6x384xf32, #tpu.memory_space<vmem>>, vector<1x6x256xf32>
    %200 = vector.shape_cast %199 : vector<1x6x256xf32> to vector<6x256xf32>
    %c0_173 = arith.constant 0 : index
    %c26 = arith.constant 26 : index
    %c0_174 = arith.constant 0 : index
    %c0_175 = arith.constant 0 : index
    %201 = vector.load %arg2[%c0_173, %c26, %c0_174, %c0_175] : memref<2x27x6x1xf32, #tpu.memory_space<vmem>>, vector<1x1x6x1xf32>
    %202 = vector.shape_cast %201 : vector<1x1x6x1xf32> to vector<6x1xf32>
    %203 = vector.broadcast %202 : vector<6x1xf32> to vector<6x256xf32>
    %204 = arith.mulf %200, %203 : vector<6x256xf32>
    %205 = arith.addf %198, %204 : vector<6x256xf32>
    %206 = arith.mulf %205, %1 : vector<6x256xf32>
    %cst_176 = arith.constant dense<0.000000e+00> : vector<6xf32>
    %207 = vector.multi_reduction <add>, %206, %cst_176 [1] : vector<6x256xf32> to vector<6xf32>
    %208 = vector.shape_cast %207 : vector<6xf32> to vector<6x1xf32>
    %209 = arith.mulf %206, %205 : vector<6x256xf32>
    %cst_177 = arith.constant dense<0.000000e+00> : vector<6xf32>
    %210 = vector.multi_reduction <add>, %209, %cst_177 [1] : vector<6x256xf32> to vector<6xf32>
    %211 = vector.shape_cast %210 : vector<6xf32> to vector<6x1xf32>
    %c0_178 = arith.constant 0 : index
    %212 = memref.load %arg3[%c0_178] : memref<18xf32, #tpu.memory_space<smem>>
    %c3_179 = arith.constant 3 : index
    %213 = memref.load %arg3[%c3_179] : memref<18xf32, #tpu.memory_space<smem>>
    %c6_180 = arith.constant 6 : index
    %214 = memref.load %arg3[%c6_180] : memref<18xf32, #tpu.memory_space<smem>>
    %215 = vector.extract_strided_slice %208 {offsets = [0, 0], sizes = [2, 1], strides = [1, 1]} : vector<6x1xf32> to vector<2x1xf32>
    %216 = vector.shape_cast %215 : vector<2x1xf32> to vector<1x2x1xf32>
    %cst_181 = arith.constant dense<0.000000e+00> : vector<1xf32>
    %217 = vector.multi_reduction <add>, %216, %cst_181 [1, 2] : vector<1x2x1xf32> to vector<1xf32>
    %218 = vector.shape_cast %217 : vector<1xf32> to vector<1x1x1xf32>
    %219 = vector.extract %218[0, 0, 0] : f32 from vector<1x1x1xf32>
    %220 = vector.extract_strided_slice %211 {offsets = [0, 0], sizes = [2, 1], strides = [1, 1]} : vector<6x1xf32> to vector<2x1xf32>
    %221 = vector.shape_cast %220 : vector<2x1xf32> to vector<1x2x1xf32>
    %cst_182 = arith.constant dense<0.000000e+00> : vector<1xf32>
    %222 = vector.multi_reduction <add>, %221, %cst_182 [1, 2] : vector<1x2x1xf32> to vector<1xf32>
    %223 = vector.shape_cast %222 : vector<1xf32> to vector<1x1x1xf32>
    %224 = vector.extract %223[0, 0, 0] : f32 from vector<1x1x1xf32>
    %cst_183 = arith.constant 3.920000e+02 : f32
    %225 = arith.divf %219, %cst_183 : f32
    %cst_184 = arith.constant 3.920000e+02 : f32
    %226 = arith.divf %224, %cst_184 : f32
    %227 = arith.mulf %225, %225 : f32
    %228 = arith.subf %226, %227 : f32
    %cst_185 = arith.constant 9.99999974E-6 : f32
    %229 = arith.addf %228, %cst_185 : f32
    %230 = math.rsqrt %229 : f32
    %231 = arith.mulf %213, %230 : f32
    %cst_186 = arith.constant 1.000000e+00 : f32
    %232 = arith.addf %cst_186, %231 : f32
    %233 = arith.addf %212, %214 : f32
    %234 = arith.mulf %225, %231 : f32
    %235 = arith.subf %233, %234 : f32
    %236 = vector.extract_strided_slice %205 {offsets = [0, 0], sizes = [2, 256], strides = [1, 1]} : vector<6x256xf32> to vector<2x256xf32>
    %237 = vector.broadcast %232 : f32 to vector<2x256xf32>
    %238 = arith.mulf %236, %237 : vector<2x256xf32>
    %239 = vector.broadcast %235 : f32 to vector<2x256xf32>
    %240 = arith.addf %238, %239 : vector<2x256xf32>
    %cst_187 = arith.constant 0.000000e+00 : f32
    %241 = vector.broadcast %cst_187 : f32 to vector<2x256xf32>
    %242 = arith.maximumf %240, %241 : vector<2x256xf32>
    %c0_188 = arith.constant 0 : index
    %c0_189 = arith.constant 0 : index
    %c0_190 = arith.constant 0 : index
    %243 = vector.load %arg5[%c0_188, %c0_189, %c0_190] : memref<3x6x384xf32, #tpu.memory_space<vmem>>, vector<1x2x256xf32>
    %244 = vector.shape_cast %243 : vector<1x2x256xf32> to vector<2x256xf32>
    %245 = vector.shape_cast %242 : vector<2x256xf32> to vector<1x2x256xf32>
    tpu.vector_store %arg5[%c0_188, %c0_189, %c0_190], %245 {strides = array<i32>} : memref<3x6x384xf32, #tpu.memory_space<vmem>>, vector<1x2x256xf32>,
    %c0_191 = arith.constant 0 : index
    %c2_192 = arith.constant 2 : index
    %c0_193 = arith.constant 0 : index
    %246 = vector.load %arg5[%c0_191, %c2_192, %c0_193] : memref<3x6x384xf32, #tpu.memory_space<vmem>>, vector<1x2x256xf32>
    %247 = vector.shape_cast %246 : vector<1x2x256xf32> to vector<2x256xf32>
    %248 = vector.shape_cast %242 : vector<2x256xf32> to vector<1x2x256xf32>
    tpu.vector_store %arg5[%c0_191, %c2_192, %c0_193], %248 {strides = array<i32>} : memref<3x6x384xf32, #tpu.memory_space<vmem>>, vector<1x2x256xf32>,
    %c0_194 = arith.constant 0 : index
    %c4_195 = arith.constant 4 : index
    %c0_196 = arith.constant 0 : index
    %249 = vector.load %arg5[%c0_194, %c4_195, %c0_196] : memref<3x6x384xf32, #tpu.memory_space<vmem>>, vector<1x2x256xf32>
    %250 = vector.shape_cast %249 : vector<1x2x256xf32> to vector<2x256xf32>
    %251 = vector.shape_cast %242 : vector<2x256xf32> to vector<1x2x256xf32>
    tpu.vector_store %arg5[%c0_194, %c4_195, %c0_196], %251 {strides = array<i32>} : memref<3x6x384xf32, #tpu.memory_space<vmem>>, vector<1x2x256xf32>,
    %c1_197 = arith.constant 1 : index
    %252 = memref.load %arg3[%c1_197] : memref<18xf32, #tpu.memory_space<smem>>
    %c4_198 = arith.constant 4 : index
    %253 = memref.load %arg3[%c4_198] : memref<18xf32, #tpu.memory_space<smem>>
    %c7_199 = arith.constant 7 : index
    %254 = memref.load %arg3[%c7_199] : memref<18xf32, #tpu.memory_space<smem>>
    %255 = vector.extract_strided_slice %208 {offsets = [2, 0], sizes = [2, 1], strides = [1, 1]} : vector<6x1xf32> to vector<2x1xf32>
    %256 = vector.shape_cast %255 : vector<2x1xf32> to vector<1x2x1xf32>
    %cst_200 = arith.constant dense<0.000000e+00> : vector<1xf32>
    %257 = vector.multi_reduction <add>, %256, %cst_200 [1, 2] : vector<1x2x1xf32> to vector<1xf32>
    %258 = vector.shape_cast %257 : vector<1xf32> to vector<1x1x1xf32>
    %259 = vector.extract %258[0, 0, 0] : f32 from vector<1x1x1xf32>
    %260 = vector.extract_strided_slice %211 {offsets = [2, 0], sizes = [2, 1], strides = [1, 1]} : vector<6x1xf32> to vector<2x1xf32>
    %261 = vector.shape_cast %260 : vector<2x1xf32> to vector<1x2x1xf32>
    %cst_201 = arith.constant dense<0.000000e+00> : vector<1xf32>
    %262 = vector.multi_reduction <add>, %261, %cst_201 [1, 2] : vector<1x2x1xf32> to vector<1xf32>
    %263 = vector.shape_cast %262 : vector<1xf32> to vector<1x1x1xf32>
    %264 = vector.extract %263[0, 0, 0] : f32 from vector<1x1x1xf32>
    %cst_202 = arith.constant 3.920000e+02 : f32
    %265 = arith.divf %259, %cst_202 : f32
    %cst_203 = arith.constant 3.920000e+02 : f32
    %266 = arith.divf %264, %cst_203 : f32
    %267 = arith.mulf %265, %265 : f32
    %268 = arith.subf %266, %267 : f32
    %cst_204 = arith.constant 9.99999974E-6 : f32
    %269 = arith.addf %268, %cst_204 : f32
    %270 = math.rsqrt %269 : f32
    %271 = arith.mulf %253, %270 : f32
    %cst_205 = arith.constant 1.000000e+00 : f32
    %272 = arith.addf %cst_205, %271 : f32
    %273 = arith.addf %252, %254 : f32
    %274 = arith.mulf %265, %271 : f32
    %275 = arith.subf %273, %274 : f32
    %276 = vector.extract_strided_slice %205 {offsets = [2, 0], sizes = [2, 256], strides = [1, 1]} : vector<6x256xf32> to vector<2x256xf32>
    %277 = vector.broadcast %272 : f32 to vector<2x256xf32>
    %278 = arith.mulf %276, %277 : vector<2x256xf32>
    %279 = vector.broadcast %275 : f32 to vector<2x256xf32>
    %280 = arith.addf %278, %279 : vector<2x256xf32>
    %cst_206 = arith.constant 0.000000e+00 : f32
    %281 = vector.broadcast %cst_206 : f32 to vector<2x256xf32>
    %282 = arith.maximumf %280, %281 : vector<2x256xf32>
    %c1_207 = arith.constant 1 : index
    %c0_208 = arith.constant 0 : index
    %c0_209 = arith.constant 0 : index
    %283 = vector.load %arg5[%c1_207, %c0_208, %c0_209] : memref<3x6x384xf32, #tpu.memory_space<vmem>>, vector<1x2x256xf32>
    %284 = vector.shape_cast %283 : vector<1x2x256xf32> to vector<2x256xf32>
    %285 = vector.shape_cast %282 : vector<2x256xf32> to vector<1x2x256xf32>
    tpu.vector_store %arg5[%c1_207, %c0_208, %c0_209], %285 {strides = array<i32>} : memref<3x6x384xf32, #tpu.memory_space<vmem>>, vector<1x2x256xf32>,
    %c1_210 = arith.constant 1 : index
    %c2_211 = arith.constant 2 : index
    %c0_212 = arith.constant 0 : index
    %286 = vector.load %arg5[%c1_210, %c2_211, %c0_212] : memref<3x6x384xf32, #tpu.memory_space<vmem>>, vector<1x2x256xf32>
    %287 = vector.shape_cast %286 : vector<1x2x256xf32> to vector<2x256xf32>
    %288 = vector.shape_cast %282 : vector<2x256xf32> to vector<1x2x256xf32>
    tpu.vector_store %arg5[%c1_210, %c2_211, %c0_212], %288 {strides = array<i32>} : memref<3x6x384xf32, #tpu.memory_space<vmem>>, vector<1x2x256xf32>,
    %c1_213 = arith.constant 1 : index
    %c4_214 = arith.constant 4 : index
    %c0_215 = arith.constant 0 : index
    %289 = vector.load %arg5[%c1_213, %c4_214, %c0_215] : memref<3x6x384xf32, #tpu.memory_space<vmem>>, vector<1x2x256xf32>
    %290 = vector.shape_cast %289 : vector<1x2x256xf32> to vector<2x256xf32>
    %291 = vector.shape_cast %282 : vector<2x256xf32> to vector<1x2x256xf32>
    tpu.vector_store %arg5[%c1_213, %c4_214, %c0_215], %291 {strides = array<i32>} : memref<3x6x384xf32, #tpu.memory_space<vmem>>, vector<1x2x256xf32>,
    %c2_216 = arith.constant 2 : index
    %292 = memref.load %arg3[%c2_216] : memref<18xf32, #tpu.memory_space<smem>>
    %c5_217 = arith.constant 5 : index
    %293 = memref.load %arg3[%c5_217] : memref<18xf32, #tpu.memory_space<smem>>
    %c8_218 = arith.constant 8 : index
    %294 = memref.load %arg3[%c8_218] : memref<18xf32, #tpu.memory_space<smem>>
    %295 = vector.extract_strided_slice %208 {offsets = [4, 0], sizes = [2, 1], strides = [1, 1]} : vector<6x1xf32> to vector<2x1xf32>
    %296 = vector.shape_cast %295 : vector<2x1xf32> to vector<1x2x1xf32>
    %cst_219 = arith.constant dense<0.000000e+00> : vector<1xf32>
    %297 = vector.multi_reduction <add>, %296, %cst_219 [1, 2] : vector<1x2x1xf32> to vector<1xf32>
    %298 = vector.shape_cast %297 : vector<1xf32> to vector<1x1x1xf32>
    %299 = vector.extract %298[0, 0, 0] : f32 from vector<1x1x1xf32>
    %300 = vector.extract_strided_slice %211 {offsets = [4, 0], sizes = [2, 1], strides = [1, 1]} : vector<6x1xf32> to vector<2x1xf32>
    %301 = vector.shape_cast %300 : vector<2x1xf32> to vector<1x2x1xf32>
    %cst_220 = arith.constant dense<0.000000e+00> : vector<1xf32>
    %302 = vector.multi_reduction <add>, %301, %cst_220 [1, 2] : vector<1x2x1xf32> to vector<1xf32>
    %303 = vector.shape_cast %302 : vector<1xf32> to vector<1x1x1xf32>
    %304 = vector.extract %303[0, 0, 0] : f32 from vector<1x1x1xf32>
    %cst_221 = arith.constant 3.920000e+02 : f32
    %305 = arith.divf %299, %cst_221 : f32
    %cst_222 = arith.constant 3.920000e+02 : f32
    %306 = arith.divf %304, %cst_222 : f32
    %307 = arith.mulf %305, %305 : f32
    %308 = arith.subf %306, %307 : f32
    %cst_223 = arith.constant 9.99999974E-6 : f32
    %309 = arith.addf %308, %cst_223 : f32
    %310 = math.rsqrt %309 : f32
    %311 = arith.mulf %293, %310 : f32
    %cst_224 = arith.constant 1.000000e+00 : f32
    %312 = arith.addf %cst_224, %311 : f32
    %313 = arith.addf %292, %294 : f32
    %314 = arith.mulf %305, %311 : f32
    %315 = arith.subf %313, %314 : f32
    %316 = vector.extract_strided_slice %205 {offsets = [4, 0], sizes = [2, 256], strides = [1, 1]} : vector<6x256xf32> to vector<2x256xf32>
    %317 = vector.broadcast %312 : f32 to vector<2x256xf32>
    %318 = arith.mulf %316, %317 : vector<2x256xf32>
    %319 = vector.broadcast %315 : f32 to vector<2x256xf32>
    %320 = arith.addf %318, %319 : vector<2x256xf32>
    %cst_225 = arith.constant 0.000000e+00 : f32
    %321 = vector.broadcast %cst_225 : f32 to vector<2x256xf32>
    %322 = arith.maximumf %320, %321 : vector<2x256xf32>
    %c2_226 = arith.constant 2 : index
    %c0_227 = arith.constant 0 : index
    %c0_228 = arith.constant 0 : index
    %323 = vector.load %arg5[%c2_226, %c0_227, %c0_228] : memref<3x6x384xf32, #tpu.memory_space<vmem>>, vector<1x2x256xf32>
    %324 = vector.shape_cast %323 : vector<1x2x256xf32> to vector<2x256xf32>
    %325 = vector.shape_cast %322 : vector<2x256xf32> to vector<1x2x256xf32>
    tpu.vector_store %arg5[%c2_226, %c0_227, %c0_228], %325 {strides = array<i32>} : memref<3x6x384xf32, #tpu.memory_space<vmem>>, vector<1x2x256xf32>,
    %c2_229 = arith.constant 2 : index
    %c2_230 = arith.constant 2 : index
    %c0_231 = arith.constant 0 : index
    %326 = vector.load %arg5[%c2_229, %c2_230, %c0_231] : memref<3x6x384xf32, #tpu.memory_space<vmem>>, vector<1x2x256xf32>
    %327 = vector.shape_cast %326 : vector<1x2x256xf32> to vector<2x256xf32>
    %328 = vector.shape_cast %322 : vector<2x256xf32> to vector<1x2x256xf32>
    tpu.vector_store %arg5[%c2_229, %c2_230, %c0_231], %328 {strides = array<i32>} : memref<3x6x384xf32, #tpu.memory_space<vmem>>, vector<1x2x256xf32>,
    %c2_232 = arith.constant 2 : index
    %c4_233 = arith.constant 4 : index
    %c0_234 = arith.constant 0 : index
    %329 = vector.load %arg5[%c2_232, %c4_233, %c0_234] : memref<3x6x384xf32, #tpu.memory_space<vmem>>, vector<1x2x256xf32>
    %330 = vector.shape_cast %329 : vector<1x2x256xf32> to vector<2x256xf32>
    %331 = vector.shape_cast %322 : vector<2x256xf32> to vector<1x2x256xf32>
    tpu.vector_store %arg5[%c2_232, %c4_233, %c0_234], %331 {strides = array<i32>} : memref<3x6x384xf32, #tpu.memory_space<vmem>>, vector<1x2x256xf32>,
    %cst_235 = arith.constant 0.000000e+00 : f32
    %332 = vector.broadcast %cst_235 : f32 to vector<6x256xf32>
    %c0_236 = arith.constant 0 : index
    %c0_237 = arith.constant 0 : index
    %c0_238 = arith.constant 0 : index
    %333 = vector.load %arg5[%c0_236, %c0_237, %c0_238] : memref<3x6x384xf32, #tpu.memory_space<vmem>>, vector<1x6x256xf32>
    %334 = vector.shape_cast %333 : vector<1x6x256xf32> to vector<6x256xf32>
    %c1_239 = arith.constant 1 : index
    %c0_240 = arith.constant 0 : index
    %c0_241 = arith.constant 0 : index
    %c0_242 = arith.constant 0 : index
    %335 = vector.load %arg2[%c1_239, %c0_240, %c0_241, %c0_242] : memref<2x27x6x1xf32, #tpu.memory_space<vmem>>, vector<1x1x6x1xf32>
    %336 = vector.shape_cast %335 : vector<1x1x6x1xf32> to vector<6x1xf32>
    %337 = vector.broadcast %336 : vector<6x1xf32> to vector<6x256xf32>
    %338 = arith.mulf %334, %337 : vector<6x256xf32>
    %339 = arith.addf %332, %338 : vector<6x256xf32>
    %c0_243 = arith.constant 0 : index
    %c0_244 = arith.constant 0 : index
    %c1_245 = arith.constant 1 : index
    %340 = vector.load %arg5[%c0_243, %c0_244, %c1_245] : memref<3x6x384xf32, #tpu.memory_space<vmem>>, vector<1x6x256xf32>
    %341 = vector.shape_cast %340 : vector<1x6x256xf32> to vector<6x256xf32>
    %c1_246 = arith.constant 1 : index
    %c1_247 = arith.constant 1 : index
    %c0_248 = arith.constant 0 : index
    %c0_249 = arith.constant 0 : index
    %342 = vector.load %arg2[%c1_246, %c1_247, %c0_248, %c0_249] : memref<2x27x6x1xf32, #tpu.memory_space<vmem>>, vector<1x1x6x1xf32>
    %343 = vector.shape_cast %342 : vector<1x1x6x1xf32> to vector<6x1xf32>
    %344 = vector.broadcast %343 : vector<6x1xf32> to vector<6x256xf32>
    %345 = arith.mulf %341, %344 : vector<6x256xf32>
    %346 = arith.addf %339, %345 : vector<6x256xf32>
    %c0_250 = arith.constant 0 : index
    %c0_251 = arith.constant 0 : index
    %c2_252 = arith.constant 2 : index
    %347 = vector.load %arg5[%c0_250, %c0_251, %c2_252] : memref<3x6x384xf32, #tpu.memory_space<vmem>>, vector<1x6x256xf32>
    %348 = vector.shape_cast %347 : vector<1x6x256xf32> to vector<6x256xf32>
    %c1_253 = arith.constant 1 : index
    %c2_254 = arith.constant 2 : index
    %c0_255 = arith.constant 0 : index
    %c0_256 = arith.constant 0 : index
    %349 = vector.load %arg2[%c1_253, %c2_254, %c0_255, %c0_256] : memref<2x27x6x1xf32, #tpu.memory_space<vmem>>, vector<1x1x6x1xf32>
    %350 = vector.shape_cast %349 : vector<1x1x6x1xf32> to vector<6x1xf32>
    %351 = vector.broadcast %350 : vector<6x1xf32> to vector<6x256xf32>
    %352 = arith.mulf %348, %351 : vector<6x256xf32>
    %353 = arith.addf %346, %352 : vector<6x256xf32>
    %c0_257 = arith.constant 0 : index
    %c0_258 = arith.constant 0 : index
    %c16_259 = arith.constant 16 : index
    %354 = vector.load %arg5[%c0_257, %c0_258, %c16_259] : memref<3x6x384xf32, #tpu.memory_space<vmem>>, vector<1x6x256xf32>
    %355 = vector.shape_cast %354 : vector<1x6x256xf32> to vector<6x256xf32>
    %c1_260 = arith.constant 1 : index
    %c3_261 = arith.constant 3 : index
    %c0_262 = arith.constant 0 : index
    %c0_263 = arith.constant 0 : index
    %356 = vector.load %arg2[%c1_260, %c3_261, %c0_262, %c0_263] : memref<2x27x6x1xf32, #tpu.memory_space<vmem>>, vector<1x1x6x1xf32>
    %357 = vector.shape_cast %356 : vector<1x1x6x1xf32> to vector<6x1xf32>
    %358 = vector.broadcast %357 : vector<6x1xf32> to vector<6x256xf32>
    %359 = arith.mulf %355, %358 : vector<6x256xf32>
    %360 = arith.addf %353, %359 : vector<6x256xf32>
    %c0_264 = arith.constant 0 : index
    %c0_265 = arith.constant 0 : index
    %c17_266 = arith.constant 17 : index
    %361 = vector.load %arg5[%c0_264, %c0_265, %c17_266] : memref<3x6x384xf32, #tpu.memory_space<vmem>>, vector<1x6x256xf32>
    %362 = vector.shape_cast %361 : vector<1x6x256xf32> to vector<6x256xf32>
    %c1_267 = arith.constant 1 : index
    %c4_268 = arith.constant 4 : index
    %c0_269 = arith.constant 0 : index
    %c0_270 = arith.constant 0 : index
    %363 = vector.load %arg2[%c1_267, %c4_268, %c0_269, %c0_270] : memref<2x27x6x1xf32, #tpu.memory_space<vmem>>, vector<1x1x6x1xf32>
    %364 = vector.shape_cast %363 : vector<1x1x6x1xf32> to vector<6x1xf32>
    %365 = vector.broadcast %364 : vector<6x1xf32> to vector<6x256xf32>
    %366 = arith.mulf %362, %365 : vector<6x256xf32>
    %367 = arith.addf %360, %366 : vector<6x256xf32>
    %c0_271 = arith.constant 0 : index
    %c0_272 = arith.constant 0 : index
    %c18_273 = arith.constant 18 : index
    %368 = vector.load %arg5[%c0_271, %c0_272, %c18_273] : memref<3x6x384xf32, #tpu.memory_space<vmem>>, vector<1x6x256xf32>
    %369 = vector.shape_cast %368 : vector<1x6x256xf32> to vector<6x256xf32>
    %c1_274 = arith.constant 1 : index
    %c5_275 = arith.constant 5 : index
    %c0_276 = arith.constant 0 : index
    %c0_277 = arith.constant 0 : index
    %370 = vector.load %arg2[%c1_274, %c5_275, %c0_276, %c0_277] : memref<2x27x6x1xf32, #tpu.memory_space<vmem>>, vector<1x1x6x1xf32>
    %371 = vector.shape_cast %370 : vector<1x1x6x1xf32> to vector<6x1xf32>
    %372 = vector.broadcast %371 : vector<6x1xf32> to vector<6x256xf32>
    %373 = arith.mulf %369, %372 : vector<6x256xf32>
    %374 = arith.addf %367, %373 : vector<6x256xf32>
    %c0_278 = arith.constant 0 : index
    %c0_279 = arith.constant 0 : index
    %c32_280 = arith.constant 32 : index
    %375 = vector.load %arg5[%c0_278, %c0_279, %c32_280] : memref<3x6x384xf32, #tpu.memory_space<vmem>>, vector<1x6x256xf32>
    %376 = vector.shape_cast %375 : vector<1x6x256xf32> to vector<6x256xf32>
    %c1_281 = arith.constant 1 : index
    %c6_282 = arith.constant 6 : index
    %c0_283 = arith.constant 0 : index
    %c0_284 = arith.constant 0 : index
    %377 = vector.load %arg2[%c1_281, %c6_282, %c0_283, %c0_284] : memref<2x27x6x1xf32, #tpu.memory_space<vmem>>, vector<1x1x6x1xf32>
    %378 = vector.shape_cast %377 : vector<1x1x6x1xf32> to vector<6x1xf32>
    %379 = vector.broadcast %378 : vector<6x1xf32> to vector<6x256xf32>
    %380 = arith.mulf %376, %379 : vector<6x256xf32>
    %381 = arith.addf %374, %380 : vector<6x256xf32>
    %c0_285 = arith.constant 0 : index
    %c0_286 = arith.constant 0 : index
    %c33_287 = arith.constant 33 : index
    %382 = vector.load %arg5[%c0_285, %c0_286, %c33_287] : memref<3x6x384xf32, #tpu.memory_space<vmem>>, vector<1x6x256xf32>
    %383 = vector.shape_cast %382 : vector<1x6x256xf32> to vector<6x256xf32>
    %c1_288 = arith.constant 1 : index
    %c7_289 = arith.constant 7 : index
    %c0_290 = arith.constant 0 : index
    %c0_291 = arith.constant 0 : index
    %384 = vector.load %arg2[%c1_288, %c7_289, %c0_290, %c0_291] : memref<2x27x6x1xf32, #tpu.memory_space<vmem>>, vector<1x1x6x1xf32>
    %385 = vector.shape_cast %384 : vector<1x1x6x1xf32> to vector<6x1xf32>
    %386 = vector.broadcast %385 : vector<6x1xf32> to vector<6x256xf32>
    %387 = arith.mulf %383, %386 : vector<6x256xf32>
    %388 = arith.addf %381, %387 : vector<6x256xf32>
    %c0_292 = arith.constant 0 : index
    %c0_293 = arith.constant 0 : index
    %c34_294 = arith.constant 34 : index
    %389 = vector.load %arg5[%c0_292, %c0_293, %c34_294] : memref<3x6x384xf32, #tpu.memory_space<vmem>>, vector<1x6x256xf32>
    %390 = vector.shape_cast %389 : vector<1x6x256xf32> to vector<6x256xf32>
    %c1_295 = arith.constant 1 : index
    %c8_296 = arith.constant 8 : index
    %c0_297 = arith.constant 0 : index
    %c0_298 = arith.constant 0 : index
    %391 = vector.load %arg2[%c1_295, %c8_296, %c0_297, %c0_298] : memref<2x27x6x1xf32, #tpu.memory_space<vmem>>, vector<1x1x6x1xf32>
    %392 = vector.shape_cast %391 : vector<1x1x6x1xf32> to vector<6x1xf32>
    %393 = vector.broadcast %392 : vector<6x1xf32> to vector<6x256xf32>
    %394 = arith.mulf %390, %393 : vector<6x256xf32>
    %395 = arith.addf %388, %394 : vector<6x256xf32>
    %c1_299 = arith.constant 1 : index
    %c0_300 = arith.constant 0 : index
    %c0_301 = arith.constant 0 : index
    %396 = vector.load %arg5[%c1_299, %c0_300, %c0_301] : memref<3x6x384xf32, #tpu.memory_space<vmem>>, vector<1x6x256xf32>
    %397 = vector.shape_cast %396 : vector<1x6x256xf32> to vector<6x256xf32>
    %c1_302 = arith.constant 1 : index
    %c9_303 = arith.constant 9 : index
    %c0_304 = arith.constant 0 : index
    %c0_305 = arith.constant 0 : index
    %398 = vector.load %arg2[%c1_302, %c9_303, %c0_304, %c0_305] : memref<2x27x6x1xf32, #tpu.memory_space<vmem>>, vector<1x1x6x1xf32>
    %399 = vector.shape_cast %398 : vector<1x1x6x1xf32> to vector<6x1xf32>
    %400 = vector.broadcast %399 : vector<6x1xf32> to vector<6x256xf32>
    %401 = arith.mulf %397, %400 : vector<6x256xf32>
    %402 = arith.addf %395, %401 : vector<6x256xf32>
    %c1_306 = arith.constant 1 : index
    %c0_307 = arith.constant 0 : index
    %c1_308 = arith.constant 1 : index
    %403 = vector.load %arg5[%c1_306, %c0_307, %c1_308] : memref<3x6x384xf32, #tpu.memory_space<vmem>>, vector<1x6x256xf32>
    %404 = vector.shape_cast %403 : vector<1x6x256xf32> to vector<6x256xf32>
    %c1_309 = arith.constant 1 : index
    %c10_310 = arith.constant 10 : index
    %c0_311 = arith.constant 0 : index
    %c0_312 = arith.constant 0 : index
    %405 = vector.load %arg2[%c1_309, %c10_310, %c0_311, %c0_312] : memref<2x27x6x1xf32, #tpu.memory_space<vmem>>, vector<1x1x6x1xf32>
    %406 = vector.shape_cast %405 : vector<1x1x6x1xf32> to vector<6x1xf32>
    %407 = vector.broadcast %406 : vector<6x1xf32> to vector<6x256xf32>
    %408 = arith.mulf %404, %407 : vector<6x256xf32>
    %409 = arith.addf %402, %408 : vector<6x256xf32>
    %c1_313 = arith.constant 1 : index
    %c0_314 = arith.constant 0 : index
    %c2_315 = arith.constant 2 : index
    %410 = vector.load %arg5[%c1_313, %c0_314, %c2_315] : memref<3x6x384xf32, #tpu.memory_space<vmem>>, vector<1x6x256xf32>
    %411 = vector.shape_cast %410 : vector<1x6x256xf32> to vector<6x256xf32>
    %c1_316 = arith.constant 1 : index
    %c11_317 = arith.constant 11 : index
    %c0_318 = arith.constant 0 : index
    %c0_319 = arith.constant 0 : index
    %412 = vector.load %arg2[%c1_316, %c11_317, %c0_318, %c0_319] : memref<2x27x6x1xf32, #tpu.memory_space<vmem>>, vector<1x1x6x1xf32>
    %413 = vector.shape_cast %412 : vector<1x1x6x1xf32> to vector<6x1xf32>
    %414 = vector.broadcast %413 : vector<6x1xf32> to vector<6x256xf32>
    %415 = arith.mulf %411, %414 : vector<6x256xf32>
    %416 = arith.addf %409, %415 : vector<6x256xf32>
    %c1_320 = arith.constant 1 : index
    %c0_321 = arith.constant 0 : index
    %c16_322 = arith.constant 16 : index
    %417 = vector.load %arg5[%c1_320, %c0_321, %c16_322] : memref<3x6x384xf32, #tpu.memory_space<vmem>>, vector<1x6x256xf32>
    %418 = vector.shape_cast %417 : vector<1x6x256xf32> to vector<6x256xf32>
    %c1_323 = arith.constant 1 : index
    %c12_324 = arith.constant 12 : index
    %c0_325 = arith.constant 0 : index
    %c0_326 = arith.constant 0 : index
    %419 = vector.load %arg2[%c1_323, %c12_324, %c0_325, %c0_326] : memref<2x27x6x1xf32, #tpu.memory_space<vmem>>, vector<1x1x6x1xf32>
    %420 = vector.shape_cast %419 : vector<1x1x6x1xf32> to vector<6x1xf32>
    %421 = vector.broadcast %420 : vector<6x1xf32> to vector<6x256xf32>
    %422 = arith.mulf %418, %421 : vector<6x256xf32>
    %423 = arith.addf %416, %422 : vector<6x256xf32>
    %c1_327 = arith.constant 1 : index
    %c0_328 = arith.constant 0 : index
    %c17_329 = arith.constant 17 : index
    %424 = vector.load %arg5[%c1_327, %c0_328, %c17_329] : memref<3x6x384xf32, #tpu.memory_space<vmem>>, vector<1x6x256xf32>
    %425 = vector.shape_cast %424 : vector<1x6x256xf32> to vector<6x256xf32>
    %c1_330 = arith.constant 1 : index
    %c13_331 = arith.constant 13 : index
    %c0_332 = arith.constant 0 : index
    %c0_333 = arith.constant 0 : index
    %426 = vector.load %arg2[%c1_330, %c13_331, %c0_332, %c0_333] : memref<2x27x6x1xf32, #tpu.memory_space<vmem>>, vector<1x1x6x1xf32>
    %427 = vector.shape_cast %426 : vector<1x1x6x1xf32> to vector<6x1xf32>
    %428 = vector.broadcast %427 : vector<6x1xf32> to vector<6x256xf32>
    %429 = arith.mulf %425, %428 : vector<6x256xf32>
    %430 = arith.addf %423, %429 : vector<6x256xf32>
    %c1_334 = arith.constant 1 : index
    %c0_335 = arith.constant 0 : index
    %c18_336 = arith.constant 18 : index
    %431 = vector.load %arg5[%c1_334, %c0_335, %c18_336] : memref<3x6x384xf32, #tpu.memory_space<vmem>>, vector<1x6x256xf32>
    %432 = vector.shape_cast %431 : vector<1x6x256xf32> to vector<6x256xf32>
    %c1_337 = arith.constant 1 : index
    %c14_338 = arith.constant 14 : index
    %c0_339 = arith.constant 0 : index
    %c0_340 = arith.constant 0 : index
    %433 = vector.load %arg2[%c1_337, %c14_338, %c0_339, %c0_340] : memref<2x27x6x1xf32, #tpu.memory_space<vmem>>, vector<1x1x6x1xf32>
    %434 = vector.shape_cast %433 : vector<1x1x6x1xf32> to vector<6x1xf32>
    %435 = vector.broadcast %434 : vector<6x1xf32> to vector<6x256xf32>
    %436 = arith.mulf %432, %435 : vector<6x256xf32>
    %437 = arith.addf %430, %436 : vector<6x256xf32>
    %c1_341 = arith.constant 1 : index
    %c0_342 = arith.constant 0 : index
    %c32_343 = arith.constant 32 : index
    %438 = vector.load %arg5[%c1_341, %c0_342, %c32_343] : memref<3x6x384xf32, #tpu.memory_space<vmem>>, vector<1x6x256xf32>
    %439 = vector.shape_cast %438 : vector<1x6x256xf32> to vector<6x256xf32>
    %c1_344 = arith.constant 1 : index
    %c15_345 = arith.constant 15 : index
    %c0_346 = arith.constant 0 : index
    %c0_347 = arith.constant 0 : index
    %440 = vector.load %arg2[%c1_344, %c15_345, %c0_346, %c0_347] : memref<2x27x6x1xf32, #tpu.memory_space<vmem>>, vector<1x1x6x1xf32>
    %441 = vector.shape_cast %440 : vector<1x1x6x1xf32> to vector<6x1xf32>
    %442 = vector.broadcast %441 : vector<6x1xf32> to vector<6x256xf32>
    %443 = arith.mulf %439, %442 : vector<6x256xf32>
    %444 = arith.addf %437, %443 : vector<6x256xf32>
    %c1_348 = arith.constant 1 : index
    %c0_349 = arith.constant 0 : index
    %c33_350 = arith.constant 33 : index
    %445 = vector.load %arg5[%c1_348, %c0_349, %c33_350] : memref<3x6x384xf32, #tpu.memory_space<vmem>>, vector<1x6x256xf32>
    %446 = vector.shape_cast %445 : vector<1x6x256xf32> to vector<6x256xf32>
    %c1_351 = arith.constant 1 : index
    %c16_352 = arith.constant 16 : index
    %c0_353 = arith.constant 0 : index
    %c0_354 = arith.constant 0 : index
    %447 = vector.load %arg2[%c1_351, %c16_352, %c0_353, %c0_354] : memref<2x27x6x1xf32, #tpu.memory_space<vmem>>, vector<1x1x6x1xf32>
    %448 = vector.shape_cast %447 : vector<1x1x6x1xf32> to vector<6x1xf32>
    %449 = vector.broadcast %448 : vector<6x1xf32> to vector<6x256xf32>
    %450 = arith.mulf %446, %449 : vector<6x256xf32>
    %451 = arith.addf %444, %450 : vector<6x256xf32>
    %c1_355 = arith.constant 1 : index
    %c0_356 = arith.constant 0 : index
    %c34_357 = arith.constant 34 : index
    %452 = vector.load %arg5[%c1_355, %c0_356, %c34_357] : memref<3x6x384xf32, #tpu.memory_space<vmem>>, vector<1x6x256xf32>
    %453 = vector.shape_cast %452 : vector<1x6x256xf32> to vector<6x256xf32>
    %c1_358 = arith.constant 1 : index
    %c17_359 = arith.constant 17 : index
    %c0_360 = arith.constant 0 : index
    %c0_361 = arith.constant 0 : index
    %454 = vector.load %arg2[%c1_358, %c17_359, %c0_360, %c0_361] : memref<2x27x6x1xf32, #tpu.memory_space<vmem>>, vector<1x1x6x1xf32>
    %455 = vector.shape_cast %454 : vector<1x1x6x1xf32> to vector<6x1xf32>
    %456 = vector.broadcast %455 : vector<6x1xf32> to vector<6x256xf32>
    %457 = arith.mulf %453, %456 : vector<6x256xf32>
    %458 = arith.addf %451, %457 : vector<6x256xf32>
    %c2_362 = arith.constant 2 : index
    %c0_363 = arith.constant 0 : index
    %c0_364 = arith.constant 0 : index
    %459 = vector.load %arg5[%c2_362, %c0_363, %c0_364] : memref<3x6x384xf32, #tpu.memory_space<vmem>>, vector<1x6x256xf32>
    %460 = vector.shape_cast %459 : vector<1x6x256xf32> to vector<6x256xf32>
    %c1_365 = arith.constant 1 : index
    %c18_366 = arith.constant 18 : index
    %c0_367 = arith.constant 0 : index
    %c0_368 = arith.constant 0 : index
    %461 = vector.load %arg2[%c1_365, %c18_366, %c0_367, %c0_368] : memref<2x27x6x1xf32, #tpu.memory_space<vmem>>, vector<1x1x6x1xf32>
    %462 = vector.shape_cast %461 : vector<1x1x6x1xf32> to vector<6x1xf32>
    %463 = vector.broadcast %462 : vector<6x1xf32> to vector<6x256xf32>
    %464 = arith.mulf %460, %463 : vector<6x256xf32>
    %465 = arith.addf %458, %464 : vector<6x256xf32>
    %c2_369 = arith.constant 2 : index
    %c0_370 = arith.constant 0 : index
    %c1_371 = arith.constant 1 : index
    %466 = vector.load %arg5[%c2_369, %c0_370, %c1_371] : memref<3x6x384xf32, #tpu.memory_space<vmem>>, vector<1x6x256xf32>
    %467 = vector.shape_cast %466 : vector<1x6x256xf32> to vector<6x256xf32>
    %c1_372 = arith.constant 1 : index
    %c19_373 = arith.constant 19 : index
    %c0_374 = arith.constant 0 : index
    %c0_375 = arith.constant 0 : index
    %468 = vector.load %arg2[%c1_372, %c19_373, %c0_374, %c0_375] : memref<2x27x6x1xf32, #tpu.memory_space<vmem>>, vector<1x1x6x1xf32>
    %469 = vector.shape_cast %468 : vector<1x1x6x1xf32> to vector<6x1xf32>
    %470 = vector.broadcast %469 : vector<6x1xf32> to vector<6x256xf32>
    %471 = arith.mulf %467, %470 : vector<6x256xf32>
    %472 = arith.addf %465, %471 : vector<6x256xf32>
    %c2_376 = arith.constant 2 : index
    %c0_377 = arith.constant 0 : index
    %c2_378 = arith.constant 2 : index
    %473 = vector.load %arg5[%c2_376, %c0_377, %c2_378] : memref<3x6x384xf32, #tpu.memory_space<vmem>>, vector<1x6x256xf32>
    %474 = vector.shape_cast %473 : vector<1x6x256xf32> to vector<6x256xf32>
    %c1_379 = arith.constant 1 : index
    %c20_380 = arith.constant 20 : index
    %c0_381 = arith.constant 0 : index
    %c0_382 = arith.constant 0 : index
    %475 = vector.load %arg2[%c1_379, %c20_380, %c0_381, %c0_382] : memref<2x27x6x1xf32, #tpu.memory_space<vmem>>, vector<1x1x6x1xf32>
    %476 = vector.shape_cast %475 : vector<1x1x6x1xf32> to vector<6x1xf32>
    %477 = vector.broadcast %476 : vector<6x1xf32> to vector<6x256xf32>
    %478 = arith.mulf %474, %477 : vector<6x256xf32>
    %479 = arith.addf %472, %478 : vector<6x256xf32>
    %c2_383 = arith.constant 2 : index
    %c0_384 = arith.constant 0 : index
    %c16_385 = arith.constant 16 : index
    %480 = vector.load %arg5[%c2_383, %c0_384, %c16_385] : memref<3x6x384xf32, #tpu.memory_space<vmem>>, vector<1x6x256xf32>
    %481 = vector.shape_cast %480 : vector<1x6x256xf32> to vector<6x256xf32>
    %c1_386 = arith.constant 1 : index
    %c21_387 = arith.constant 21 : index
    %c0_388 = arith.constant 0 : index
    %c0_389 = arith.constant 0 : index
    %482 = vector.load %arg2[%c1_386, %c21_387, %c0_388, %c0_389] : memref<2x27x6x1xf32, #tpu.memory_space<vmem>>, vector<1x1x6x1xf32>
    %483 = vector.shape_cast %482 : vector<1x1x6x1xf32> to vector<6x1xf32>
    %484 = vector.broadcast %483 : vector<6x1xf32> to vector<6x256xf32>
    %485 = arith.mulf %481, %484 : vector<6x256xf32>
    %486 = arith.addf %479, %485 : vector<6x256xf32>
    %c2_390 = arith.constant 2 : index
    %c0_391 = arith.constant 0 : index
    %c17_392 = arith.constant 17 : index
    %487 = vector.load %arg5[%c2_390, %c0_391, %c17_392] : memref<3x6x384xf32, #tpu.memory_space<vmem>>, vector<1x6x256xf32>
    %488 = vector.shape_cast %487 : vector<1x6x256xf32> to vector<6x256xf32>
    %c1_393 = arith.constant 1 : index
    %c22_394 = arith.constant 22 : index
    %c0_395 = arith.constant 0 : index
    %c0_396 = arith.constant 0 : index
    %489 = vector.load %arg2[%c1_393, %c22_394, %c0_395, %c0_396] : memref<2x27x6x1xf32, #tpu.memory_space<vmem>>, vector<1x1x6x1xf32>
    %490 = vector.shape_cast %489 : vector<1x1x6x1xf32> to vector<6x1xf32>
    %491 = vector.broadcast %490 : vector<6x1xf32> to vector<6x256xf32>
    %492 = arith.mulf %488, %491 : vector<6x256xf32>
    %493 = arith.addf %486, %492 : vector<6x256xf32>
    %c2_397 = arith.constant 2 : index
    %c0_398 = arith.constant 0 : index
    %c18_399 = arith.constant 18 : index
    %494 = vector.load %arg5[%c2_397, %c0_398, %c18_399] : memref<3x6x384xf32, #tpu.memory_space<vmem>>, vector<1x6x256xf32>
    %495 = vector.shape_cast %494 : vector<1x6x256xf32> to vector<6x256xf32>
    %c1_400 = arith.constant 1 : index
    %c23_401 = arith.constant 23 : index
    %c0_402 = arith.constant 0 : index
    %c0_403 = arith.constant 0 : index
    %496 = vector.load %arg2[%c1_400, %c23_401, %c0_402, %c0_403] : memref<2x27x6x1xf32, #tpu.memory_space<vmem>>, vector<1x1x6x1xf32>
    %497 = vector.shape_cast %496 : vector<1x1x6x1xf32> to vector<6x1xf32>
    %498 = vector.broadcast %497 : vector<6x1xf32> to vector<6x256xf32>
    %499 = arith.mulf %495, %498 : vector<6x256xf32>
    %500 = arith.addf %493, %499 : vector<6x256xf32>
    %c2_404 = arith.constant 2 : index
    %c0_405 = arith.constant 0 : index
    %c32_406 = arith.constant 32 : index
    %501 = vector.load %arg5[%c2_404, %c0_405, %c32_406] : memref<3x6x384xf32, #tpu.memory_space<vmem>>, vector<1x6x256xf32>
    %502 = vector.shape_cast %501 : vector<1x6x256xf32> to vector<6x256xf32>
    %c1_407 = arith.constant 1 : index
    %c24_408 = arith.constant 24 : index
    %c0_409 = arith.constant 0 : index
    %c0_410 = arith.constant 0 : index
    %503 = vector.load %arg2[%c1_407, %c24_408, %c0_409, %c0_410] : memref<2x27x6x1xf32, #tpu.memory_space<vmem>>, vector<1x1x6x1xf32>
    %504 = vector.shape_cast %503 : vector<1x1x6x1xf32> to vector<6x1xf32>
    %505 = vector.broadcast %504 : vector<6x1xf32> to vector<6x256xf32>
    %506 = arith.mulf %502, %505 : vector<6x256xf32>
    %507 = arith.addf %500, %506 : vector<6x256xf32>
    %c2_411 = arith.constant 2 : index
    %c0_412 = arith.constant 0 : index
    %c33_413 = arith.constant 33 : index
    %508 = vector.load %arg5[%c2_411, %c0_412, %c33_413] : memref<3x6x384xf32, #tpu.memory_space<vmem>>, vector<1x6x256xf32>
    %509 = vector.shape_cast %508 : vector<1x6x256xf32> to vector<6x256xf32>
    %c1_414 = arith.constant 1 : index
    %c25_415 = arith.constant 25 : index
    %c0_416 = arith.constant 0 : index
    %c0_417 = arith.constant 0 : index
    %510 = vector.load %arg2[%c1_414, %c25_415, %c0_416, %c0_417] : memref<2x27x6x1xf32, #tpu.memory_space<vmem>>, vector<1x1x6x1xf32>
    %511 = vector.shape_cast %510 : vector<1x1x6x1xf32> to vector<6x1xf32>
    %512 = vector.broadcast %511 : vector<6x1xf32> to vector<6x256xf32>
    %513 = arith.mulf %509, %512 : vector<6x256xf32>
    %514 = arith.addf %507, %513 : vector<6x256xf32>
    %c2_418 = arith.constant 2 : index
    %c0_419 = arith.constant 0 : index
    %c34_420 = arith.constant 34 : index
    %515 = vector.load %arg5[%c2_418, %c0_419, %c34_420] : memref<3x6x384xf32, #tpu.memory_space<vmem>>, vector<1x6x256xf32>
    %516 = vector.shape_cast %515 : vector<1x6x256xf32> to vector<6x256xf32>
    %c1_421 = arith.constant 1 : index
    %c26_422 = arith.constant 26 : index
    %c0_423 = arith.constant 0 : index
    %c0_424 = arith.constant 0 : index
    %517 = vector.load %arg2[%c1_421, %c26_422, %c0_423, %c0_424] : memref<2x27x6x1xf32, #tpu.memory_space<vmem>>, vector<1x1x6x1xf32>
    %518 = vector.shape_cast %517 : vector<1x1x6x1xf32> to vector<6x1xf32>
    %519 = vector.broadcast %518 : vector<6x1xf32> to vector<6x256xf32>
    %520 = arith.mulf %516, %519 : vector<6x256xf32>
    %521 = arith.addf %514, %520 : vector<6x256xf32>
    %522 = arith.mulf %521, %3 : vector<6x256xf32>
    %cst_425 = arith.constant dense<0.000000e+00> : vector<6xf32>
    %523 = vector.multi_reduction <add>, %522, %cst_425 [1] : vector<6x256xf32> to vector<6xf32>
    %524 = vector.shape_cast %523 : vector<6xf32> to vector<6x1xf32>
    %525 = arith.mulf %522, %521 : vector<6x256xf32>
    %cst_426 = arith.constant dense<0.000000e+00> : vector<6xf32>
    %526 = vector.multi_reduction <add>, %525, %cst_426 [1] : vector<6x256xf32> to vector<6xf32>
    %527 = vector.shape_cast %526 : vector<6xf32> to vector<6x1xf32>
    %c9_427 = arith.constant 9 : index
    %528 = memref.load %arg3[%c9_427] : memref<18xf32, #tpu.memory_space<smem>>
    %c12_428 = arith.constant 12 : index
    %529 = memref.load %arg3[%c12_428] : memref<18xf32, #tpu.memory_space<smem>>
    %c15_429 = arith.constant 15 : index
    %530 = memref.load %arg3[%c15_429] : memref<18xf32, #tpu.memory_space<smem>>
    %531 = vector.extract_strided_slice %524 {offsets = [0, 0], sizes = [2, 1], strides = [1, 1]} : vector<6x1xf32> to vector<2x1xf32>
    %532 = vector.shape_cast %531 : vector<2x1xf32> to vector<1x2x1xf32>
    %cst_430 = arith.constant dense<0.000000e+00> : vector<1xf32>
    %533 = vector.multi_reduction <add>, %532, %cst_430 [1, 2] : vector<1x2x1xf32> to vector<1xf32>
    %534 = vector.shape_cast %533 : vector<1xf32> to vector<1x1x1xf32>
    %535 = vector.extract %534[0, 0, 0] : f32 from vector<1x1x1xf32>
    %536 = vector.extract_strided_slice %527 {offsets = [0, 0], sizes = [2, 1], strides = [1, 1]} : vector<6x1xf32> to vector<2x1xf32>
    %537 = vector.shape_cast %536 : vector<2x1xf32> to vector<1x2x1xf32>
    %cst_431 = arith.constant dense<0.000000e+00> : vector<1xf32>
    %538 = vector.multi_reduction <add>, %537, %cst_431 [1, 2] : vector<1x2x1xf32> to vector<1xf32>
    %539 = vector.shape_cast %538 : vector<1xf32> to vector<1x1x1xf32>
    %540 = vector.extract %539[0, 0, 0] : f32 from vector<1x1x1xf32>
    %cst_432 = arith.constant 2.880000e+02 : f32
    %541 = arith.divf %535, %cst_432 : f32
    %cst_433 = arith.constant 2.880000e+02 : f32
    %542 = arith.divf %540, %cst_433 : f32
    %543 = arith.mulf %541, %541 : f32
    %544 = arith.subf %542, %543 : f32
    %cst_434 = arith.constant 9.99999974E-6 : f32
    %545 = arith.addf %544, %cst_434 : f32
    %546 = math.rsqrt %545 : f32
    %547 = arith.mulf %529, %546 : f32
    %cst_435 = arith.constant 1.000000e+00 : f32
    %548 = arith.addf %cst_435, %547 : f32
    %549 = arith.addf %528, %530 : f32
    %550 = arith.mulf %541, %547 : f32
    %551 = arith.subf %549, %550 : f32
    %552 = vector.extract_strided_slice %521 {offsets = [0, 0], sizes = [2, 256], strides = [1, 1]} : vector<6x256xf32> to vector<2x256xf32>
    %553 = vector.broadcast %548 : f32 to vector<2x256xf32>
    %554 = arith.mulf %552, %553 : vector<2x256xf32>
    %555 = vector.broadcast %551 : f32 to vector<2x256xf32>
    %556 = arith.addf %554, %555 : vector<2x256xf32>
    %cst_436 = arith.constant 0.000000e+00 : f32
    %557 = vector.broadcast %cst_436 : f32 to vector<2x256xf32>
    %558 = arith.maximumf %556, %557 : vector<2x256xf32>
    %c0_437 = arith.constant 0 : index
    %c0_438 = arith.constant 0 : index
    %c0_439 = arith.constant 0 : index
    %559 = vector.load %arg4[%c0_437, %c0_438, %c0_439] : memref<3x2x256xf32, #tpu.memory_space<vmem>>, vector<1x2x256xf32>
    %560 = vector.shape_cast %559 : vector<1x2x256xf32> to vector<2x256xf32>
    %561 = vector.shape_cast %558 : vector<2x256xf32> to vector<1x2x256xf32>
    tpu.vector_store %arg4[%c0_437, %c0_438, %c0_439], %561 {strides = array<i32>} : memref<3x2x256xf32, #tpu.memory_space<vmem>>, vector<1x2x256xf32>,
    %c10_440 = arith.constant 10 : index
    %562 = memref.load %arg3[%c10_440] : memref<18xf32, #tpu.memory_space<smem>>
    %c13_441 = arith.constant 13 : index
    %563 = memref.load %arg3[%c13_441] : memref<18xf32, #tpu.memory_space<smem>>
    %c16_442 = arith.constant 16 : index
    %564 = memref.load %arg3[%c16_442] : memref<18xf32, #tpu.memory_space<smem>>
    %565 = vector.extract_strided_slice %524 {offsets = [2, 0], sizes = [2, 1], strides = [1, 1]} : vector<6x1xf32> to vector<2x1xf32>
    %566 = vector.shape_cast %565 : vector<2x1xf32> to vector<1x2x1xf32>
    %cst_443 = arith.constant dense<0.000000e+00> : vector<1xf32>
    %567 = vector.multi_reduction <add>, %566, %cst_443 [1, 2] : vector<1x2x1xf32> to vector<1xf32>
    %568 = vector.shape_cast %567 : vector<1xf32> to vector<1x1x1xf32>
    %569 = vector.extract %568[0, 0, 0] : f32 from vector<1x1x1xf32>
    %570 = vector.extract_strided_slice %527 {offsets = [2, 0], sizes = [2, 1], strides = [1, 1]} : vector<6x1xf32> to vector<2x1xf32>
    %571 = vector.shape_cast %570 : vector<2x1xf32> to vector<1x2x1xf32>
    %cst_444 = arith.constant dense<0.000000e+00> : vector<1xf32>
    %572 = vector.multi_reduction <add>, %571, %cst_444 [1, 2] : vector<1x2x1xf32> to vector<1xf32>
    %573 = vector.shape_cast %572 : vector<1xf32> to vector<1x1x1xf32>
    %574 = vector.extract %573[0, 0, 0] : f32 from vector<1x1x1xf32>
    %cst_445 = arith.constant 2.880000e+02 : f32
    %575 = arith.divf %569, %cst_445 : f32
    %cst_446 = arith.constant 2.880000e+02 : f32
    %576 = arith.divf %574, %cst_446 : f32
    %577 = arith.mulf %575, %575 : f32
    %578 = arith.subf %576, %577 : f32
    %cst_447 = arith.constant 9.99999974E-6 : f32
    %579 = arith.addf %578, %cst_447 : f32
    %580 = math.rsqrt %579 : f32
    %581 = arith.mulf %563, %580 : f32
    %cst_448 = arith.constant 1.000000e+00 : f32
    %582 = arith.addf %cst_448, %581 : f32
    %583 = arith.addf %562, %564 : f32
    %584 = arith.mulf %575, %581 : f32
    %585 = arith.subf %583, %584 : f32
    %586 = vector.extract_strided_slice %521 {offsets = [2, 0], sizes = [2, 256], strides = [1, 1]} : vector<6x256xf32> to vector<2x256xf32>
    %587 = vector.broadcast %582 : f32 to vector<2x256xf32>
    %588 = arith.mulf %586, %587 : vector<2x256xf32>
    %589 = vector.broadcast %585 : f32 to vector<2x256xf32>
    %590 = arith.addf %588, %589 : vector<2x256xf32>
    %cst_449 = arith.constant 0.000000e+00 : f32
    %591 = vector.broadcast %cst_449 : f32 to vector<2x256xf32>
    %592 = arith.maximumf %590, %591 : vector<2x256xf32>
    %c1_450 = arith.constant 1 : index
    %c0_451 = arith.constant 0 : index
    %c0_452 = arith.constant 0 : index
    %593 = vector.load %arg4[%c1_450, %c0_451, %c0_452] : memref<3x2x256xf32, #tpu.memory_space<vmem>>, vector<1x2x256xf32>
    %594 = vector.shape_cast %593 : vector<1x2x256xf32> to vector<2x256xf32>
    %595 = vector.shape_cast %592 : vector<2x256xf32> to vector<1x2x256xf32>
    tpu.vector_store %arg4[%c1_450, %c0_451, %c0_452], %595 {strides = array<i32>} : memref<3x2x256xf32, #tpu.memory_space<vmem>>, vector<1x2x256xf32>,
    %c11_453 = arith.constant 11 : index
    %596 = memref.load %arg3[%c11_453] : memref<18xf32, #tpu.memory_space<smem>>
    %c14_454 = arith.constant 14 : index
    %597 = memref.load %arg3[%c14_454] : memref<18xf32, #tpu.memory_space<smem>>
    %c17_455 = arith.constant 17 : index
    %598 = memref.load %arg3[%c17_455] : memref<18xf32, #tpu.memory_space<smem>>
    %599 = vector.extract_strided_slice %524 {offsets = [4, 0], sizes = [2, 1], strides = [1, 1]} : vector<6x1xf32> to vector<2x1xf32>
    %600 = vector.shape_cast %599 : vector<2x1xf32> to vector<1x2x1xf32>
    %cst_456 = arith.constant dense<0.000000e+00> : vector<1xf32>
    %601 = vector.multi_reduction <add>, %600, %cst_456 [1, 2] : vector<1x2x1xf32> to vector<1xf32>
    %602 = vector.shape_cast %601 : vector<1xf32> to vector<1x1x1xf32>
    %603 = vector.extract %602[0, 0, 0] : f32 from vector<1x1x1xf32>
    %604 = vector.extract_strided_slice %527 {offsets = [4, 0], sizes = [2, 1], strides = [1, 1]} : vector<6x1xf32> to vector<2x1xf32>
    %605 = vector.shape_cast %604 : vector<2x1xf32> to vector<1x2x1xf32>
    %cst_457 = arith.constant dense<0.000000e+00> : vector<1xf32>
    %606 = vector.multi_reduction <add>, %605, %cst_457 [1, 2] : vector<1x2x1xf32> to vector<1xf32>
    %607 = vector.shape_cast %606 : vector<1xf32> to vector<1x1x1xf32>
    %608 = vector.extract %607[0, 0, 0] : f32 from vector<1x1x1xf32>
    %cst_458 = arith.constant 2.880000e+02 : f32
    %609 = arith.divf %603, %cst_458 : f32
    %cst_459 = arith.constant 2.880000e+02 : f32
    %610 = arith.divf %608, %cst_459 : f32
    %611 = arith.mulf %609, %609 : f32
    %612 = arith.subf %610, %611 : f32
    %cst_460 = arith.constant 9.99999974E-6 : f32
    %613 = arith.addf %612, %cst_460 : f32
    %614 = math.rsqrt %613 : f32
    %615 = arith.mulf %597, %614 : f32
    %cst_461 = arith.constant 1.000000e+00 : f32
    %616 = arith.addf %cst_461, %615 : f32
    %617 = arith.addf %596, %598 : f32
    %618 = arith.mulf %609, %615 : f32
    %619 = arith.subf %617, %618 : f32
    %620 = vector.extract_strided_slice %521 {offsets = [4, 0], sizes = [2, 256], strides = [1, 1]} : vector<6x256xf32> to vector<2x256xf32>
    %621 = vector.broadcast %616 : f32 to vector<2x256xf32>
    %622 = arith.mulf %620, %621 : vector<2x256xf32>
    %623 = vector.broadcast %619 : f32 to vector<2x256xf32>
    %624 = arith.addf %622, %623 : vector<2x256xf32>
    %cst_462 = arith.constant 0.000000e+00 : f32
    %625 = vector.broadcast %cst_462 : f32 to vector<2x256xf32>
    %626 = arith.maximumf %624, %625 : vector<2x256xf32>
    %c2_463 = arith.constant 2 : index
    %c0_464 = arith.constant 0 : index
    %c0_465 = arith.constant 0 : index
    %627 = vector.load %arg4[%c2_463, %c0_464, %c0_465] : memref<3x2x256xf32, #tpu.memory_space<vmem>>, vector<1x2x256xf32>
    %628 = vector.shape_cast %627 : vector<1x2x256xf32> to vector<2x256xf32>
    %629 = vector.shape_cast %626 : vector<2x256xf32> to vector<1x2x256xf32>
    tpu.vector_store %arg4[%c2_463, %c0_464, %c0_465], %629 {strides = array<i32>} : memref<3x2x256xf32, #tpu.memory_space<vmem>>, vector<1x2x256xf32>,
    return
  }
}

</mosaic_0001>

<bundles_post_ra>
// kernel: tpu_custom_call.1
= control target key start
LH: loop header
LB: loop body
LE: loop exit
PB: predicated region body
PF: predicated region fallthrough
CT: control target
= control target key end

     0   :  { %9 = vsyncpa [#allocation5], 0  ;;  %s3028_s0 = inlined_call_operand.vmem [shape: f32[3,6,384], index: 0, kind: input, shape index: {}]   ;;  %s3029_s1 = inlined_call_operand.vmem [shape: f32[2,6,256], index: 1, kind: input, shape index: {}]   ;;  %s3030_s2 = inlined_call_operand.vmem [shape: f32[2,27,6,1], index: 2, kind: input, shape index: {}]   ;;  %s3031_s3 = inlined_call_operand.vmem [shape: f32[18], index: 3, kind: input, shape index: {}]   ;;  %s3032_s4 = inlined_call_operand.hbm [shape: f32[3,2,256], index: 4, kind: output, shape index: {}]  }
   0x1   :  { %10 = vsyncpa [#allocation4], 0  ;;  %s23_s17 = sshll.u32 %s3031_s3, 4  ;;  %s24_s17 = int_to_ptr.vmem [resolvable:$true] %s23_s17 }
   0x2   :  { %s1937_s18 = scalar_lea.vmem %s24_s17, 16  ;;  %p1942_p1 = scmp.lt.s32.totalorder %s24_s17, %s24_s17 }
   0x3   :  { %p1938_p0 = scmp.ne.s32.totalorder %s24_s17, %s1937_s18  ;;  %p1943_p2 = scmp.lt.s32.totalorder %s1937_s18, %s1937_s18 }
   0x5   :  { %p1944_p3 = por %p1943_p2, %p1942_p1 }
   0x7   :  { %p1945_p4 = pnand %p1944_p3, %p1938_p0 }
   0x9   :  { %1948 = shalt.err (!%p1945_p4)
}
   0xa   :  { %s1973_s19 = smov [#allocation3]  }
   0xb   :  { %26 = dma.vmem_to_smem %s24_s17, 16, %s1973_s19, [#allocation5]  }
   0xc   :  { %1969 = dma.done.wait [#allocation5], 16  }
   0xd   :  { %1970 = vsyncadd [#allocation5], 4294967280 }
   0xe   :  { %30 = sfence }
   0xf   :  { %v1792_v0 = vld [vmem:[%s3030_s2 + $0x18] sm:$0x3f]  ;;  %v1790_v1 = vld [vmem:[%s3030_s2 + $0x8] sm:$0x3f]  ;;  %v1974_v2 = vmov 0   ;;  %s1975_s3 = smov 127  }
  0x10   :  { %1924 = vset.pattern.permute.xlu1 %v1974_v2  ;;  %1923 = vset.pattern.permute.xlu0 %v1974_v2  ;;  %v1793_v3 = vld [vmem:[%s3030_s2 + $0x20] sm:$0x3f]  ;;  %v1791_v4 = vld [vmem:[%s3030_s2 + $0x10] sm:$0x3f]  ;;  %v1794_v6 = vld [vmem:[%s3030_s2 + $0x28] sm:$0x3f] }
  0x11   :  { %112 = vperm.xlu1 %1924, %v1792_v0   ;;  %60 = vperm.xlu0 %1923, %v1790_v1   ;;  %v1795_v5 = vld [vmem:[%s3030_s2 + $0x30] sm:$0x3f]  ;;  %v1797_v7 = vld [vmem:[%s3030_s2 + $0x40] sm:$0x3f]  ;;  %v1796_v8 = vld [vmem:[%s3030_s2 + $0x38] sm:$0x3f] }
  0x12   :  { %v1805_v9 = vld [vmem:[%s3030_s2 + $0x58] sm:$0x3f]  ;;  %v1804_v10 = vld [vmem:[%s3030_s2 + $0x50] sm:$0x3f]  ;;  %v1807_v11 = vld [vmem:[%s3030_s2 + $0x68] sm:$0x3f] }
  0x13   :  { %v1806_v12 = vld [vmem:[%s3030_s2 + $0x60] sm:$0x3f]  ;;  %v1809_v13 = vld [vmem:[%s3030_s2 + $0x78] sm:$0x3f]  ;;  %v1808_v14 = vld [vmem:[%s3030_s2 + $0x70] sm:$0x3f] }
  0x14   :  { %v1811_v15 = vld [vmem:[%s3030_s2 + $0x88] sm:$0x3f]  ;;  %v1810_v16 = vld [vmem:[%s3030_s2 + $0x80] sm:$0x3f]  ;;  %v1818_v18 = vld [vmem:[%s3030_s2 + $0x98] sm:$0x3f] }
  0x15   :  { %138 = vperm.xlu1 %1924, %v1793_v3   ;;  %86 = vperm.xlu0 %1923, %v1791_v4   ;;  %v1819_v17 = vld [vmem:[%s3030_s2 + $0xa0] sm:$0x3f]  ;;  %v1821_v19 = vld [vmem:[%s3030_s2 + $0xb0] sm:$0x3f]  ;;  %v1820_v20 = vld [vmem:[%s3030_s2 + $0xa8] sm:$0x3f] }
  0x16   :  { %v1823_v21 = vld [vmem:[%s3030_s2 + $0xc0] sm:$0x3f]  ;;  %v1822_v22 = vld [vmem:[%s3030_s2 + $0xb8] sm:$0x3f]  ;;  %v1825_v23 = vld [vmem:[%s3030_s2 + $0xd0] sm:$0x3f] }
  0x17   :  { %v1824_v24 = vld [vmem:[%s3030_s2 + $0xc8] sm:$0x3f]  ;;  %v43_v26 = vld [vmem:[%s3030_s2] sm:$0x3f]  ;;  %v55_v32 = vld [vmem:[%s3028_s0 + $0x10] sm:$0x3f] }
  0x18   :  { %v1800_v25 = vld [vmem:[%s3030_s2 + $0x48] sm:$0x3f]  ;;  %v53_v27 = vld [vmem:[%s3028_s0] sm:$0x3f]  ;;  %s1976_s24 = smov 126   ;;  %s1977_s25 = smov 112  }
  0x19   :  { %190 = vperm.xlu1 %1924, %v1795_v5   ;;  %164 = vperm.xlu0 %1923, %v1794_v6   ;;  %v2100_v28 = vld [vmem:[%s3028_s0 + $0x8] sm:$0x3f]  ;;  %s1978_s26 = smov 111   ;;  %s1979_s27 = smov 110   ;;  %v1802_v63 = vld [vmem:[%s3028_s0 + $0x20] sm:$0x3f] }
  0x1a   :  { %s1980_s28 = smov 96   ;;  %s1981_s29 = smov 95   ;;  %v1801_v0 = vld [vmem:[%s3028_s0 + $0x18] sm:$0x3f]  ;;  %v1803_v4 = vld [vmem:[%s3028_s0 + $0x28] sm:$0x3f] }
  0x1b   :  { %s1982_s30 = smov 94   ;;  %vm75_vm0 = vcmask 1039360   ;;  %vm101_vm1 = vcmask 1031168   ;;  %vm127_vm2 = vcmask 916480   ;;  %vm153_vm3 = vcmask 908288   ;;  %s713_s15 = sld [smem:[#allocation3]] }
  0x1c   :  { %vm179_vm4 = vcmask 900096   ;;  %vm205_vm5 = vcmask 785408   ;;  %vm231_vm6 = vcmask 777216   ;;  %vm257_vm7 = vcmask 769024   ;;  %s1827_s16 = sld [smem:[#allocation3 + $0x6]] }
  0x1d   :  { %242 = vperm.xlu1 %1924, %v1797_v7   ;;  %216 = vperm.xlu0 %1923, %v1796_v8   ;;  %vm700_vm8 = vcmask 1045504   ;;  %vm716_vm9 = vcmask 1024   ;;  %s1826_s17 = sld [smem:[#allocation3 + $0x3]] }
  0x21   :  { %310 = vperm.xlu1 %1924, %v1805_v9   ;;  %285 = vperm.xlu0 %1923, %v1804_v10  }
  0x22   :  { %s751_s19 = sadd.f32 %s1827_s16, %s713_s15 }
  0x25   :  { %360 = vperm.xlu1 %1924, %v1807_v11   ;;  %335 = vperm.xlu0 %1923, %v1806_v12  }
  0x29   :  { %410 = vperm.xlu1 %1924, %v1809_v13   ;;  %385 = vperm.xlu0 %1923, %v1808_v14  }
  0x2d   :  { %460 = vperm.xlu1 %1924, %v1811_v15   ;;  %435 = vperm.xlu0 %1923, %v1810_v16  }
  0x31   :  { %527 = vperm.xlu1 %1924, %v1819_v17   ;;  %502 = vperm.xlu0 %1923, %v1818_v18  }
  0x35   :  { %577 = vperm.xlu1 %1924, %v1821_v19   ;;  %552 = vperm.xlu0 %1923, %v1820_v20  }
  0x39   :  { %627 = vperm.xlu1 %1924, %v1823_v21   ;;  %602 = vperm.xlu0 %1923, %v1822_v22  }
  0x3d   :  { %677 = vperm.xlu1 %1924, %v1825_v23   ;;  %652 = vperm.xlu0 %1923, %v1824_v24  }
  0x41   :  { %271 = vperm.xlu1 %1924, %v1800_v25   ;;  %46 = vperm.xlu0 %1923, %v43_v26  }
  0x8c   :  { %v61_v29 = vpop.permute.xlu0 %60  ;;  %v113_v38 = vpop.permute.xlu1 %112 }
  0x8d   :  { %v63_v30 = vmul.f32 %v61_v29, %v53_v27  ;;  %v64_v31 = vmul.f32 %v61_v29, %v2100_v28  ;;  %v65_v34 = vmul.f32 %v61_v29, %v55_v32  ;;  %v115_v39 = vmul.f32 %v113_v38, %v53_v27 }
  0x8e   :  { %v116_v40 = vmul.f32 %v113_v38, %v2100_v28  ;;  %v117_v42 = vmul.f32 %v113_v38, %v55_v32 }
  0x8f   :  { %69 = vrot.lane.b32.xlu1 %v63_v30, %s1975_s3  ;;  %71 = vrot.lane.b32.xlu0 %v64_v31, %s1975_s3 }
  0x90   :  { %v87_v33 = vpop.permute.xlu0 %86  ;;  %v139_v41 = vpop.permute.xlu1 %138 }
  0x91   :  { %v89_v35 = vmul.f32 %v87_v33, %v53_v27  ;;  %v90_v36 = vmul.f32 %v87_v33, %v2100_v28  ;;  %v91_v37 = vmul.f32 %v87_v33, %v55_v32  ;;  %v141_v43 = vmul.f32 %v139_v41, %v53_v27 }
  0x92   :  { %v142_v44 = vmul.f32 %v139_v41, %v2100_v28  ;;  %v143_v45 = vmul.f32 %v139_v41, %v55_v32  ;;  %v2186_v41 = vld [vmem:[%s3028_s0 + $0x38] sm:$0x3f] }
  0x93   :  { %73 = vrot.lane.b32.xlu1 %v65_v34, %s1975_s3  ;;  %95 = vrot.lane.b32.xlu0 %v89_v35, %s1976_s24  ;;  %v2173_v35 = vld [vmem:[%s3028_s0 + $0x30] sm:$0x3f] }
  0x94   :  { %v165_v46 = vpop.permute.xlu0 %164  ;;  %v191_v49 = vpop.permute.xlu1 %190 }
  0x95   :  { %v167_v47 = vmul.f32 %v165_v46, %v53_v27  ;;  %v168_v48 = vmul.f32 %v165_v46, %v2100_v28  ;;  %v169_v50 = vmul.f32 %v165_v46, %v55_v32  ;;  %v193_v51 = vmul.f32 %v191_v49, %v53_v27 }
  0x96   :  { %v194_v52 = vmul.f32 %v191_v49, %v2100_v28  ;;  %v195_v53 = vmul.f32 %v191_v49, %v55_v32 }
  0x97   :  { %97 = vrot.lane.b32.xlu1 %v90_v36, %s1976_s24  ;;  %99 = vrot.lane.b32.xlu0 %v91_v37, %s1976_s24 }
  0x98   :  { %v217_v54 = vpop.permute.xlu0 %216  ;;  %v243_v57 = vpop.permute.xlu1 %242 }
  0x99   :  { %v220_v55 = vmul.f32 %v217_v54, %v2100_v28  ;;  %v219_v56 = vmul.f32 %v217_v54, %v53_v27  ;;  %v245_v58 = vmul.f32 %v243_v57, %v53_v27  ;;  %v221_v59 = vmul.f32 %v217_v54, %v55_v32  ;;  %v1814_v27 = vld [vmem:[%s3030_s2 + $0x90] sm:$0x3f] }
  0x9a   :  { %v247_v60 = vmul.f32 %v243_v57, %v55_v32  ;;  %v246_v61 = vmul.f32 %v243_v57, %v2100_v28 }
  0x9b   :  { %121 = vrot.lane.b32.xlu1 %v115_v39, %s1977_s25  ;;  %123 = vrot.lane.b32.xlu0 %v116_v40, %s1977_s25  ;;  %v2181_v40 = vld [vmem:[%s3028_s0 + $0x40] sm:$0x3f] }
  0x9c   :  { %v286_v62 = vpop.permute.xlu0 %285  ;;  %v311_v3 = vpop.permute.xlu1 %310 }
  0x9d   :  { %v289_v1 = vmul.f32 %v1802_v63, %v286_v62  ;;  %v288_v2 = vmul.f32 %v1801_v0, %v286_v62  ;;  %v313_v5 = vmul.f32 %v1801_v0, %v311_v3  ;;  %v290_v6 = vmul.f32 %v1803_v4, %v286_v62 }
  0x9e   :  { %v315_v7 = vmul.f32 %v1803_v4, %v311_v3  ;;  %v314_v8 = vmul.f32 %v1802_v63, %v311_v3 }
  0x9f   :  { %125 = vrot.lane.b32.xlu1 %v117_v42, %s1977_s25  ;;  %147 = vrot.lane.b32.xlu0 %v141_v43, %s1978_s26 }
  0xa0   :  { %v336_v9 = vpop.permute.xlu0 %335  ;;  %v361_v12 = vpop.permute.xlu1 %360 }
  0xa1   :  { %v339_v10 = vmul.f32 %v1802_v63, %v336_v9  ;;  %v338_v11 = vmul.f32 %v1801_v0, %v336_v9  ;;  %v363_v13 = vmul.f32 %v1801_v0, %v361_v12  ;;  %v340_v14 = vmul.f32 %v1803_v4, %v336_v9 }
  0xa2   :  { %v365_v15 = vmul.f32 %v1803_v4, %v361_v12  ;;  %v364_v16 = vmul.f32 %v1802_v63, %v361_v12 }
  0xa3   :  { %149 = vrot.lane.b32.xlu1 %v142_v44, %s1978_s26  ;;  %151 = vrot.lane.b32.xlu0 %v143_v45, %s1978_s26 }
  0xa4   :  { %v386_v17 = vpop.permute.xlu0 %385  ;;  %v411_v20 = vpop.permute.xlu1 %410 }
  0xa5   :  { %v389_v18 = vmul.f32 %v1802_v63, %v386_v17  ;;  %v388_v19 = vmul.f32 %v1801_v0, %v386_v17  ;;  %v413_v21 = vmul.f32 %v1801_v0, %v411_v20  ;;  %v390_v22 = vmul.f32 %v1803_v4, %v386_v17 }
  0xa6   :  { %v415_v23 = vmul.f32 %v1803_v4, %v411_v20  ;;  %v414_v24 = vmul.f32 %v1802_v63, %v411_v20 }
  0xa7   :  { %173 = vrot.lane.b32.xlu1 %v167_v47, %s1979_s27  ;;  %175 = vrot.lane.b32.xlu0 %v168_v48, %s1979_s27 }
  0xa8   :  { %v436_v25 = vpop.permute.xlu0 %435  ;;  %v461_v26 = vpop.permute.xlu1 %460 }
  0xa9   :  { %v438_v28 = vmul.f32 %v1801_v0, %v436_v25  ;;  %v440_v31 = vmul.f32 %v1803_v4, %v436_v25  ;;  %v439_v32 = vmul.f32 %v1802_v63, %v436_v25  ;;  %v464_v33 = vmul.f32 %v1802_v63, %v461_v26 }
  0xaa   :  { %v463_v34 = vmul.f32 %v1801_v0, %v461_v26  ;;  %v465_v39 = vmul.f32 %v1803_v4, %v461_v26 }
  0xab   :  { %177 = vrot.lane.b32.xlu1 %v169_v50, %s1979_s27  ;;  %199 = vrot.lane.b32.xlu0 %v193_v51, %s1980_s28 }
  0xac   :  { %v528_v29 = vpop.permute.xlu1 %527  ;;  %v503_v30 = vpop.permute.xlu0 %502 }
  0xad   :  { %v505_v38 = vmul.f32 %v2173_v35, %v503_v30  ;;  %v507_v44 = vmul.f32 %v2181_v40, %v503_v30  ;;  %v506_v45 = vmul.f32 %v2186_v41, %v503_v30  ;;  %v531_v46 = vmul.f32 %v2186_v41, %v528_v29 }
  0xae   :  { %v530_v47 = vmul.f32 %v2173_v35, %v528_v29  ;;  %v532_v51 = vmul.f32 %v2181_v40, %v528_v29 }
  0xaf   :  { %201 = vrot.lane.b32.xlu1 %v194_v52, %s1980_s28  ;;  %203 = vrot.lane.b32.xlu0 %v195_v53, %s1980_s28 }
  0xb0   :  { %v578_v36 = vpop.permute.xlu1 %577  ;;  %v553_v37 = vpop.permute.xlu0 %552 }
  0xb1   :  { %v555_v50 = vmul.f32 %v2173_v35, %v553_v37  ;;  %v557_v54 = vmul.f32 %v2181_v40, %v553_v37  ;;  %v582_v63 = vmul.f32 %v2181_v40, %v578_v36 }
  0xb3   :  { %227 = vrot.lane.b32.xlu1 %v220_v55, %s1981_s29  ;;  %225 = vrot.lane.b32.xlu0 %v219_v56, %s1981_s29  ;;  %v556_v55 = vmul.f32 %v2186_v41, %v553_v37 }
  0xb4   :  { %v628_v42 = vpop.permute.xlu1 %627  ;;  %v603_v43 = vpop.permute.xlu0 %602 }
  0xb5   :  { %v605_v62 = vmul.f32 %v2173_v35, %v603_v43  ;;  %v606_v3 = vmul.f32 %v2186_v41, %v603_v43 }
  0xb7   :  { %251 = vrot.lane.b32.xlu1 %v245_v58, %s1982_s30  ;;  %229 = vrot.lane.b32.xlu0 %v221_v59, %s1981_s29  ;;  %v581_v58 = vmul.f32 %v2186_v41, %v578_v36  ;;  %v580_v59 = vmul.f32 %v2173_v35, %v578_v36 }
  0xb8   :  { %v678_v48 = vpop.permute.xlu1 %677  ;;  %v653_v49 = vpop.permute.xlu0 %652 }
  0xb9   :  { %v682_v20 = vmul.f32 %v2181_v40, %v678_v48 }
  0xbb   :  { %255 = vrot.lane.b32.xlu1 %v247_v60, %s1982_s30  ;;  %253 = vrot.lane.b32.xlu0 %v246_v61, %s1982_s30 }
  0xbc   :  { %v2202_v52 = vpop.permute.xlu1 %271  ;;  %v2204_v53 = vpop.permute.xlu0 %46 }
  0xbf   :  { %296 = vrot.lane.b32.xlu1 %v289_v1, %s1975_s3  ;;  %294 = vrot.lane.b32.xlu0 %v288_v2, %s1975_s3  ;;  %v607_v2 = vmul.f32 %v2181_v40, %v603_v43 }
  0xc3   :  { %319 = vrot.lane.b32.xlu1 %v313_v5, %s1976_s24  ;;  %298 = vrot.lane.b32.xlu0 %v290_v6, %s1975_s3  ;;  %v631_v6 = vmul.f32 %v2186_v41, %v628_v42 }
  0xc7   :  { %323 = vrot.lane.b32.xlu1 %v315_v7, %s1976_s24  ;;  %321 = vrot.lane.b32.xlu0 %v314_v8, %s1976_s24  ;;  %v630_v7 = vmul.f32 %v2173_v35, %v628_v42 }
  0xcb   :  { %346 = vrot.lane.b32.xlu1 %v339_v10, %s1977_s25  ;;  %344 = vrot.lane.b32.xlu0 %v338_v11, %s1977_s25  ;;  %v655_v10 = vmul.f32 %v2173_v35, %v653_v49  ;;  %v632_v11 = vmul.f32 %v2181_v40, %v628_v42 }
  0xcf   :  { %369 = vrot.lane.b32.xlu1 %v363_v13, %s1978_s26  ;;  %348 = vrot.lane.b32.xlu0 %v340_v14, %s1977_s25  ;;  %v657_v14 = vmul.f32 %v2181_v40, %v653_v49 }
  0xd3   :  { %373 = vrot.lane.b32.xlu1 %v365_v15, %s1978_s26  ;;  %371 = vrot.lane.b32.xlu0 %v364_v16, %s1978_s26  ;;  %v656_v15 = vmul.f32 %v2186_v41, %v653_v49 }
  0xd7   :  { %396 = vrot.lane.b32.xlu1 %v389_v18, %s1979_s27  ;;  %394 = vrot.lane.b32.xlu0 %v388_v19, %s1979_s27  ;;  %v681_v18 = vmul.f32 %v2186_v41, %v678_v48  ;;  %v680_v19 = vmul.f32 %v2173_v35, %v678_v48 }
  0xdb   :  { %419 = vrot.lane.b32.xlu1 %v413_v21, %s1980_s28  ;;  %398 = vrot.lane.b32.xlu0 %v390_v22, %s1979_s27 }
  0xdf   :  { %423 = vrot.lane.b32.xlu1 %v415_v23, %s1980_s28  ;;  %421 = vrot.lane.b32.xlu0 %v414_v24, %s1980_s28 }
  0xe3   :  { %444 = vrot.lane.b32.xlu1 %v438_v28, %s1981_s29  ;;  %488 = vperm.xlu0 %1923, %v1814_v27  }
  0xe7   :  { %448 = vrot.lane.b32.xlu1 %v440_v31, %s1981_s29  ;;  %446 = vrot.lane.b32.xlu0 %v439_v32, %s1981_s29 }
  0xeb   :  { %471 = vrot.lane.b32.xlu1 %v464_v33, %s1982_s30  ;;  %469 = vrot.lane.b32.xlu0 %v463_v34, %s1982_s30 }
  0xef   :  { %511 = vrot.lane.b32.xlu1 %v505_v38, %s1975_s3  ;;  %473 = vrot.lane.b32.xlu0 %v465_v39, %s1982_s30 }
  0xf3   :  { %515 = vrot.lane.b32.xlu1 %v507_v44, %s1975_s3  ;;  %513 = vrot.lane.b32.xlu0 %v506_v45, %s1975_s3 }
  0xf7   :  { %538 = vrot.lane.b32.xlu1 %v531_v46, %s1976_s24  ;;  %536 = vrot.lane.b32.xlu0 %v530_v47, %s1976_s24 }
  0xfb   :  { %561 = vrot.lane.b32.xlu1 %v555_v50, %s1977_s25  ;;  %540 = vrot.lane.b32.xlu0 %v532_v51, %s1976_s24  ;;  %v41_v51 = vld [vmem:[%s3028_s0] sm:$0x3f] }
  0xff   :  { %565 = vrot.lane.b32.xlu1 %v557_v54, %s1977_s25  ;;  %563 = vrot.lane.b32.xlu0 %v556_v55, %s1977_s25 }
 0x101   :  { %v2210_v56 = vpop.permute.xlu1 %69  ;;  %v2212_v57 = vpop.permute.xlu0 %71 }
 0x102   :  { %v76_v54 = vsel %vm75_vm0, %v2210_v56, %v2212_v57 }
 0x103   :  { %588 = vrot.lane.b32.xlu1 %v581_v58, %s1978_s26  ;;  %586 = vrot.lane.b32.xlu0 %v580_v59, %s1978_s26  ;;  %v49_v58 = vmul.f32 %v2204_v53, %v41_v51 }
 0x105   :  { %v2218_v60 = vpop.permute.xlu1 %73  ;;  %v2220_v61 = vpop.permute.xlu0 %95 }
 0x106   :  { %v77_v56 = vsel %vm75_vm0, %v2212_v57, %v2218_v60 }
 0x107   :  { %611 = vrot.lane.b32.xlu1 %v605_v62, %s1979_s27  ;;  %590 = vrot.lane.b32.xlu0 %v582_v63, %s1978_s26  ;;  %v42_v62 = vld [vmem:[%s3028_s0 + $0x8] sm:$0x3f] }
 0x109   :  { %v2226_v0 = vpop.permute.xlu1 %97  ;;  %v2228_v1 = vpop.permute.xlu0 %99 }
 0x10a   :  { %v102_v63 = vsel %vm101_vm1, %v2220_v61, %v2226_v0  ;;  %v103_v61 = vsel %vm101_vm1, %v2226_v0, %v2228_v1 }
 0x10b   :  { %615 = vrot.lane.b32.xlu1 %v607_v2, %s1979_s27  ;;  %613 = vrot.lane.b32.xlu0 %v606_v3, %s1979_s27  ;;  %v80_v2 = vadd.f32 %v76_v54, %v49_v58 }
 0x10d   :  { %v2234_v4 = vpop.permute.xlu1 %121  ;;  %v2236_v5 = vpop.permute.xlu0 %123 }
 0x10e   :  { %v128_v3 = vsel %vm127_vm2, %v2234_v4, %v2236_v5 }
 0x10f   :  { %638 = vrot.lane.b32.xlu1 %v631_v6, %s1980_s28  ;;  %636 = vrot.lane.b32.xlu0 %v630_v7, %s1980_s28  ;;  %v50_v7 = vmul.f32 %v2204_v53, %v42_v62 }
 0x111   :  { %v2242_v8 = vpop.permute.xlu1 %125  ;;  %v2244_v9 = vpop.permute.xlu0 %147  ;;  %v81_v60 = vadd.f32 %v77_v56, %v50_v7  ;;  %v1799_v7 = vld [vmem:[%s3028_s0 + $0x20] sm:$0x3f] }
 0x112   :  { %v129_v4 = vsel %vm127_vm2, %v2236_v5, %v2242_v8 }
 0x113   :  { %661 = vrot.lane.b32.xlu1 %v655_v10, %s1981_s29  ;;  %640 = vrot.lane.b32.xlu0 %v632_v11, %s1980_s28  ;;  %v106_v10 = vadd.f32 %v102_v63, %v80_v2 }
 0x115   :  { %v2250_v12 = vpop.permute.xlu1 %149  ;;  %v2252_v13 = vpop.permute.xlu0 %151 }
 0x116   :  { %v154_v57 = vsel %vm153_vm3, %v2244_v9, %v2250_v12  ;;  %v155_v1 = vsel %vm153_vm3, %v2250_v12, %v2252_v13 }
 0x117   :  { %665 = vrot.lane.b32.xlu1 %v657_v14, %s1981_s29  ;;  %663 = vrot.lane.b32.xlu0 %v656_v15, %s1981_s29  ;;  %v132_v14 = vadd.f32 %v128_v3, %v106_v10 }
 0x119   :  { %v2258_v16 = vpop.permute.xlu1 %173  ;;  %v2260_v17 = vpop.permute.xlu0 %175 }
 0x11a   :  { %v180_v53 = vsel %vm179_vm4, %v2258_v16, %v2260_v17 }
 0x11b   :  { %688 = vrot.lane.b32.xlu1 %v681_v18, %s1982_s30  ;;  %686 = vrot.lane.b32.xlu0 %v680_v19, %s1982_s30  ;;  %v107_v18 = vadd.f32 %v103_v61, %v81_v60  ;;  %v158_v19 = vadd.f32 %v154_v57, %v132_v14  ;;  %v275_v60 = vmul.f32 %v1799_v7, %v2202_v52 }
 0x11d   :  { %v2267_v21 = vpop.permute.xlu1 %177  ;;  %v2269_v22 = vpop.permute.xlu0 %199  ;;  %v133_v5 = vadd.f32 %v129_v4, %v107_v18  ;;  %v184_v8 = vadd.f32 %v180_v53, %v158_v19 }
 0x11e   :  { %v181_v16 = vsel %vm179_vm4, %v2260_v17, %v2267_v21  ;;  %v1798_v17 = vld [vmem:[%s3028_s0 + $0x18] sm:$0x3f] }
 0x11f   :  { %690 = vrot.lane.b32.xlu0 %v682_v20, %s1982_s30  ;;  %v159_v54 = vadd.f32 %v155_v1, %v133_v5 }
 0x121   :  { %v2272_v23 = vpop.permute.xlu1 %201  ;;  %v2274_v24 = vpop.permute.xlu0 %203  ;;  %v185_v62 = vadd.f32 %v181_v16, %v159_v54 }
 0x122   :  { %v206_v9 = vsel %vm205_vm5, %v2269_v22, %v2272_v23  ;;  %v207_v13 = vsel %vm205_vm5, %v2272_v23, %v2274_v24  ;;  %v274_v24 = vmul.f32 %v1798_v17, %v2202_v52 }
 0x123   :  { %v210_v58 = vadd.f32 %v206_v9, %v184_v8  ;;  %v211_v2 = vadd.f32 %v207_v13, %v185_v62 }
 0x125   :  { %v2276_v25 = vpop.permute.xlu1 %227  ;;  %v2278_v26 = vpop.permute.xlu0 %225 }
 0x126   :  { %v232_v20 = vsel %vm231_vm6, %v2278_v26, %v2276_v25 }
 0x127   :  { %v236_v63 = vadd.f32 %v232_v20, %v210_v58 }
 0x129   :  { %v2280_v27 = vpop.permute.xlu1 %251  ;;  %v2282_v28 = vpop.permute.xlu0 %229 }
 0x12a   :  { %v233_v21 = vsel %vm231_vm6, %v2276_v25, %v2282_v28 }
 0x12d   :  { %v2284_v29 = vpop.permute.xlu1 %255  ;;  %v2286_v30 = vpop.permute.xlu0 %253 }
 0x12e   :  { %v258_v22 = vsel %vm257_vm7, %v2280_v27, %v2286_v30  ;;  %v259_v23 = vsel %vm257_vm7, %v2286_v30, %v2284_v29  ;;  %v237_v27 = vadd.f32 %v233_v21, %v211_v2 }
 0x12f   :  { %v262_v56 = vadd.f32 %v258_v22, %v236_v63 }
 0x130   :  { %v263_v25 = vadd.f32 %v259_v23, %v237_v27 }
 0x131   :  { %v2288_v31 = vpop.permute.xlu1 %296  ;;  %v2290_v32 = vpop.permute.xlu0 %294  ;;  %v276_v28 = vadd.f32 %v274_v24, %v262_v56 }
 0x132   :  { %v300_v57 = vsel %vm75_vm0, %v2290_v32, %v2288_v31  ;;  %v277_v53 = vadd.f32 %v275_v60, %v263_v25 }
 0x133   :  { %v304_v4 = vadd.f32 %v300_v57, %v276_v28 }
 0x135   :  { %v2292_v33 = vpop.permute.xlu1 %319  ;;  %v2294_v34 = vpop.permute.xlu0 %298 }
 0x136   :  { %v301_v29 = vsel %vm75_vm0, %v2288_v31, %v2294_v34 }
 0x137   :  { %v305_v32 = vadd.f32 %v301_v29, %v277_v53 }
 0x139   :  { %v2296_v35 = vpop.permute.xlu1 %323  ;;  %v2298_v36 = vpop.permute.xlu0 %321 }
 0x13a   :  { %v325_v30 = vsel %vm101_vm1, %v2292_v33, %v2298_v36  ;;  %v326_v19 = vsel %vm101_vm1, %v2298_v36, %v2296_v35 }
 0x13b   :  { %v329_v1 = vadd.f32 %v325_v30, %v304_v4  ;;  %v330_v9 = vadd.f32 %v326_v19, %v305_v32 }
 0x13d   :  { %v2300_v37 = vpop.permute.xlu1 %346  ;;  %v2302_v38 = vpop.permute.xlu0 %344 }
 0x13e   :  { %v350_v52 = vsel %vm127_vm2, %v2302_v38, %v2300_v37 }
 0x13f   :  { %v354_v5 = vadd.f32 %v350_v52, %v329_v1 }
 0x141   :  { %v2304_v39 = vpop.permute.xlu1 %369  ;;  %v2306_v40 = vpop.permute.xlu0 %348 }
 0x142   :  { %v351_v31 = vsel %vm127_vm2, %v2300_v37, %v2306_v40 }
 0x143   :  { %v355_v38 = vadd.f32 %v351_v31, %v330_v9 }
 0x145   :  { %v2308_v41 = vpop.permute.xlu1 %373  ;;  %v2310_v42 = vpop.permute.xlu0 %371 }
 0x146   :  { %v375_v33 = vsel %vm153_vm3, %v2304_v39, %v2310_v42  ;;  %v376_v35 = vsel %vm153_vm3, %v2310_v42, %v2308_v41 }
 0x147   :  { %v379_v16 = vadd.f32 %v375_v33, %v354_v5  ;;  %v380_v40 = vadd.f32 %v376_v35, %v355_v38 }
 0x149   :  { %v2312_v43 = vpop.permute.xlu1 %396  ;;  %v2316_v45 = vpop.permute.xlu0 %394 }
 0x14a   :  { %v400_v36 = vsel %vm179_vm4, %v2316_v45, %v2312_v43 }
 0x14b   :  { %v404_v20 = vadd.f32 %v400_v36, %v379_v16  ;;  %v31_v36 = vld [vmem:[%s3029_s1] sm:$0x3f] }
 0x14d   :  { %v2314_v44 = vpop.permute.xlu1 %419  ;;  %v2320_v47 = vpop.permute.xlu0 %398 }
 0x14e   :  { %v401_v37 = vsel %vm179_vm4, %v2312_v43, %v2320_v47 }
 0x14f   :  { %v405_v45 = vadd.f32 %v401_v37, %v380_v40 }
 0x151   :  { %v2318_v46 = vpop.permute.xlu1 %423  ;;  %v2326_v50 = vpop.permute.xlu0 %421 }
 0x152   :  { %v425_v39 = vsel %vm205_vm5, %v2314_v44, %v2326_v50  ;;  %v426_v41 = vsel %vm205_vm5, %v2326_v50, %v2318_v46  ;;  %v1812_v46 = vld [vmem:[%s3028_s0 + $0x30] sm:$0x3f] }
 0x153   :  { %v429_v13 = vadd.f32 %v425_v39, %v404_v20  ;;  %v430_v47 = vadd.f32 %v426_v41, %v405_v45 }
 0x155   :  { %v2322_v48 = vpop.permute.xlu1 %444 }
 0x159   :  { %v2324_v49 = vpop.permute.xlu1 %448 }
 0x15d   :  { %v2334_v55 = vpop.permute.xlu1 %471 }
 0x15e   :  { %v2337_v59 = vpop.permute.xlu0 %488 }
 0x161   :  { %v2351_v6 = vpop.permute.xlu1 %511 }
 0x162   :  { %v2354_v11 = vpop.permute.xlu0 %446 }
 0x163   :  { %v450_v42 = vsel %vm231_vm6, %v2322_v48, %v2354_v11  ;;  %v451_v43 = vsel %vm231_vm6, %v2354_v11, %v2324_v49  ;;  %v1813_v49 = vld [vmem:[%s3028_s0 + $0x38] sm:$0x3f]  ;;  %v491_v11 = vmul.f32 %v1812_v46, %v2337_v59 }
 0x164   :  { %v454_v22 = vadd.f32 %v450_v42, %v429_v13  ;;  %v455_v50 = vadd.f32 %v451_v43, %v430_v47  ;;  %v492_v56 = vmul.f32 %v1813_v49, %v2337_v59 }
 0x165   :  { %v2368_v15 = vpop.permute.xlu1 %515 }
 0x166   :  { %v2370_v0 = vpop.permute.xlu0 %469 }
 0x167   :  { %v475_v44 = vsel %vm257_vm7, %v2370_v0, %v2334_v55 }
 0x168   :  { %v479_v63 = vadd.f32 %v475_v44, %v454_v22 }
 0x169   :  { %v2384_v51 = vpop.permute.xlu1 %538 }
 0x16a   :  { %v474_v12 = vpop.permute.xlu0 %473  ;;  %v493_v23 = vadd.f32 %v491_v11, %v479_v63 }
 0x16b   :  { %v476_v48 = vsel %vm257_vm7, %v2334_v55, %v474_v12 }
 0x16c   :  { %v480_v0 = vadd.f32 %v476_v48, %v455_v50 }
 0x16d   :  { %v2398_v26 = vpop.permute.xlu1 %561 }
 0x16e   :  { %v2400_v3 = vpop.permute.xlu0 %513  ;;  %v494_v12 = vadd.f32 %v492_v56, %v480_v0 }
 0x16f   :  { %v517_v2 = vsel %vm75_vm0, %v2351_v6, %v2400_v3  ;;  %v518_v25 = vsel %vm75_vm0, %v2400_v3, %v2368_v15 }
 0x170   :  { %v521_v24 = vadd.f32 %v517_v2, %v493_v23  ;;  %v522_v60 = vadd.f32 %v518_v25, %v494_v12  ;;  %v1836_v12 = vld [vmem:[%s3030_s2 + $0xe8] sm:$0x3f]  ;;  %v1839_v25 = vld [vmem:[%s3030_s2 + $0x100] sm:$0x3f] }
 0x171   :  { %v2409_v10 = vpop.permute.xlu1 %565 }
 0x172   :  { %v537_v61 = vpop.permute.xlu0 %536 }
 0x173   :  { %v542_v55 = vsel %vm101_vm1, %v537_v61, %v2384_v51 }
 0x174   :  { %v546_v57 = vadd.f32 %v542_v55, %v521_v24  ;;  %v1983_v55 = vmov 0.0   ;;  %v1835_v24 = vld [vmem:[%s3030_s2 + $0xe0] sm:$0x3f] }
 0x175   :  { %v2421_v14 = vpop.permute.xlu1 %588  ;;  %36 = vst [vmem:[#allocation2 + $0x20] sm:$0x3f] %v1983_v55  ;;  %38 = vst [vmem:[#allocation2 + $0x10] sm:$0x3f] %v1983_v55 }
 0x176   :  { %v541_v18 = vpop.permute.xlu0 %540  ;;  %40 = vst [vmem:[#allocation2] sm:$0x3f] %v1983_v55 }
 0x177   :  { %v543_v6 = vsel %vm101_vm1, %v2384_v51, %v541_v18 }
 0x178   :  { %v547_v53 = vadd.f32 %v543_v6, %v522_v60  ;;  %v1842_v6 = vld [vmem:[%s3030_s2 + $0x118] sm:$0x3f]  ;;  %v1845_v60 = vld [vmem:[%s3030_s2 + $0x130] sm:$0x3f] }
 0x179   :  { %v612_v34 = vpop.permute.xlu1 %611 }
 0x17a   :  { %v564_v8 = vpop.permute.xlu0 %563 }
 0x17b   :  { %v567_v28 = vsel %vm127_vm2, %v2398_v26, %v564_v8  ;;  %v568_v30 = vsel %vm127_vm2, %v564_v8, %v2409_v10 }
 0x17c   :  { %v571_v61 = vadd.f32 %v567_v28, %v546_v57  ;;  %v572_v51 = vadd.f32 %v568_v30, %v547_v53  ;;  %v1840_v28 = vld [vmem:[%s3030_s2 + $0x108] sm:$0x3f]  ;;  %v1841_v57 = vld [vmem:[%s3030_s2 + $0x110] sm:$0x3f]  ;;  %v1850_v53 = vld [vmem:[%s3030_s2 + $0x158] sm:$0x3f] }
 0x17d   :  { %v616_v54 = vpop.permute.xlu1 %615  ;;  %v1848_v30 = vld [vmem:[%s3030_s2 + $0x148] sm:$0x3f] }
 0x17e   :  { %v587_v58 = vpop.permute.xlu0 %586 }
 0x17f   :  { %v592_v59 = vsel %vm153_vm3, %v587_v58, %v2421_v14 }
 0x180   :  { %v596_v15 = vadd.f32 %v592_v59, %v571_v61  ;;  %v1844_v59 = vld [vmem:[%s3030_s2 + $0x128] sm:$0x3f]  ;;  %v1846_v61 = vld [vmem:[%s3030_s2 + $0x138] sm:$0x3f] }
 0x181   :  { %v639_v17 = vpop.permute.xlu1 %638 }
 0x182   :  { %v591_v62 = vpop.permute.xlu0 %590 }
 0x183   :  { %v593_v26 = vsel %vm153_vm3, %v2421_v14, %v591_v62 }
 0x184   :  { %v597_v31 = vadd.f32 %v593_v26, %v572_v51  ;;  %v1854_v26 = vld [vmem:[%s3030_s2 + $0x178] sm:$0x3f]  ;;  %v1856_v51 = vld [vmem:[%s3030_s2 + $0x188] sm:$0x3f] }
 0x185   :  { %v662_v27 = vpop.permute.xlu1 %661 }
 0x186   :  { %v614_v21 = vpop.permute.xlu0 %613 }
 0x187   :  { %v617_v4 = vsel %vm179_vm4, %v612_v34, %v614_v21  ;;  %v618_v32 = vsel %vm179_vm4, %v614_v21, %v616_v54  ;;  %v32_v54 = vld [vmem:[%s3029_s1 + $0x8] sm:$0x3f] }
 0x188   :  { %v621_v18 = vadd.f32 %v617_v4, %v596_v15  ;;  %v622_v34 = vadd.f32 %v618_v32, %v597_v31  ;;  %v1849_v4 = vld [vmem:[%s3030_s2 + $0x150] sm:$0x3f]  ;;  %v1851_v15 = vld [vmem:[%s3030_s2 + $0x160] sm:$0x3f]  ;;  %v1834_v31 = vld [vmem:[%s3030_s2 + $0xd8] sm:$0x3f] }
 0x189   :  { %v666_v3 = vpop.permute.xlu1 %665  ;;  %v1859_v32 = vld [vmem:[%s3030_s2 + $0x1a0] sm:$0x3f] }
 0x18a   :  { %v637_v7 = vpop.permute.xlu0 %636 }
 0x18b   :  { %v642_v19 = vsel %vm205_vm5, %v637_v7, %v639_v17  ;;  %v1838_v7 = vld [vmem:[%s3030_s2 + $0xf8] sm:$0x3f] }
 0x18c   :  { %v646_v33 = vadd.f32 %v642_v19, %v621_v18  ;;  %v1855_v19 = vld [vmem:[%s3030_s2 + $0x180] sm:$0x3f]  ;;  %v1857_v18 = vld [vmem:[%s3030_s2 + $0x190] sm:$0x3f] }
 0x18d   :  { %v689_v9 = vpop.permute.xlu1 %688 }
 0x18e   :  { %v641_v29 = vpop.permute.xlu0 %640 }
 0x18f   :  { %v643_v10 = vsel %vm205_vm5, %v639_v17, %v641_v29  ;;  %v1847_v29 = vld [vmem:[%s3030_s2 + $0x140] sm:$0x3f] }
 0x190   :  { %v647_v38 = vadd.f32 %v643_v10, %v622_v34 }
 0x192   :  { %v664_v52 = vpop.permute.xlu0 %663 }
 0x193   :  { %v667_v1 = vsel %vm231_vm6, %v662_v27, %v664_v52  ;;  %v668_v35 = vsel %vm231_vm6, %v664_v52, %v666_v3  ;;  %v1837_v27 = vld [vmem:[%s3030_s2 + $0xf0] sm:$0x3f]  ;;  %v1858_v52 = vld [vmem:[%s3030_s2 + $0x198] sm:$0x3f] }
 0x194   :  { %v671_v5 = vadd.f32 %v667_v1, %v646_v33  ;;  %v672_v37 = vadd.f32 %v668_v35, %v647_v38  ;;  %v1853_v3 = vld [vmem:[%s3030_s2 + $0x170] sm:$0x3f]  ;;  %v1860_v1 = vld [vmem:[%s3030_s2 + $0x1a8] sm:$0x3f] }
 0x196   :  { %v687_v8 = vpop.permute.xlu0 %686 }
 0x197   :  { %v692_v14 = vsel %vm257_vm7, %v687_v8, %v689_v9 }
 0x198   :  { %v2497_v16 = vadd.f32 %v692_v14, %v671_v5 }
 0x19a   :  { %v691_v39 = vpop.permute.xlu0 %690  ;;  %v698_v40 = vmul.f32 %v2497_v16, %v31_v36 }
 0x19b   :  { %v693_v20 = vsel %vm257_vm7, %v689_v9, %v691_v39 }
 0x19c   :  { %v2504_v58 = vadd.f32 %v693_v20, %v672_v37  ;;  %v706_v42 = vmul.f32 %v698_v40, %v2497_v16  ;;  %v701_v45 = vsel %vm700_vm8, %v698_v40, 0.0 }
 0x19e   :  { %v699_v41 = vmul.f32 %v2504_v58, %v32_v54  ;;  %v708_v47 = vsel %vm700_vm8, %v706_v42, 0.0 }
 0x1a0   :  { %v702_v13 = vsel %vm700_vm8, %v699_v41, 0.0  ;;  %v707_v43 = vmul.f32 %v699_v41, %v2504_v58 }
 0x1a1   :  { %v703_v44 = vadd.f32 %v702_v13, %v701_v45  ;;  %v931_v45 = vld [vmem:[#allocation2 + $0x20] sm:$0x3f] }
 0x1a2   :  { %v709_v22 = vsel %vm700_vm8, %v707_v43, 0.0 }
 0x1a3   :  { %704 = vadd.xlane.f32.xlu1 %v703_v44  ;;  %v710_v62 = vadd.f32 %v709_v22, %v708_v47 }
 0x1a5   :  { %711 = vadd.xlane.f32.xlu0 %v710_v62 }
 0x22c   :  { %v705_v46 = vpop.xlane.xlu1 %704 }
 0x22d   :  { %v717_v48 = vsel %vm716_vm9, %v705_v46, 0.0  ;;  %v782_v50 = vrot.slane %v705_v46, 2  ;;  %v851_v0 = vrot.slane %v705_v46, 4 }
 0x22e   :  { %v712_v63 = vpop.xlane.xlu0 %711  ;;  %718 = vadd.xlane.f32.xlu0 %v717_v48 }
 0x22f   :  { %v727_v17 = vsel %vm716_vm9, %v712_v63, 0.0  ;;  %v795_v49 = vrot.slane %v712_v63, 2  ;;  %v784_v11 = vsel %vm716_vm9, %v782_v50, 0.0  ;;  %v863_v2 = vrot.slane %v712_v63, 4 }
 0x230   :  { %728 = vadd.xlane.f32.xlu1 %v727_v17  ;;  %v853_v56 = vsel %vm716_vm9, %v851_v0, 0.0 }
 0x231   :  { %v797_v21 = vsel %vm716_vm9, %v795_v49, 0.0  ;;  %v865_v23 = vsel %vm716_vm9, %v863_v2, 0.0  ;;  %v1843_v2 = vld [vmem:[%s3030_s2 + $0x120] sm:$0x3f] }
 0x232   :  { %785 = vadd.xlane.f32.xlu0 %v784_v11 }
 0x234   :  { %798 = vadd.xlane.f32.xlu1 %v797_v21 }
 0x236   :  { %854 = vadd.xlane.f32.xlu0 %v853_v56 }
 0x238   :  { %866 = vadd.xlane.f32.xlu1 %v865_v23  ;;  %v1147_v23 = vld [vmem:[#allocation2 + $0x10] sm:$0x3f] }
 0x249   :  { %961 = vperm.xlu1 %1924, %v1836_v12  }
 0x24c   :  { %936 = vperm.xlu0 %1923, %v1835_v24  }
 0x24d   :  { %986 = vperm.xlu1 %1924, %v1837_v27  }
 0x250   :  { %1011 = vperm.xlu0 %1923, %v1838_v7  }
 0x251   :  { %1036 = vperm.xlu1 %1924, %v1839_v25  }
 0x254   :  { %1061 = vperm.xlu0 %1923, %v1840_v28  }
 0x255   :  { %1086 = vperm.xlu1 %1924, %v1841_v57  }
 0x258   :  { %1111 = vperm.xlu0 %1923, %v1842_v6  }
 0x259   :  { %1152 = vperm.xlu1 %1924, %v1844_v59  }
 0x25c   :  { %1177 = vperm.xlu0 %1923, %v1845_v60  }
 0x25d   :  { %1202 = vperm.xlu1 %1924, %v1846_v61  }
 0x260   :  { %1227 = vperm.xlu0 %1923, %v1847_v29  }
 0x261   :  { %1252 = vperm.xlu1 %1924, %v1848_v30  }
 0x264   :  { %1277 = vperm.xlu0 %1923, %v1849_v4   ;;  %v1852_v4 = vld [vmem:[%s3030_s2 + $0x168] sm:$0x3f] }
 0x265   :  { %1302 = vperm.xlu1 %1924, %v1850_v53  }
 0x268   :  { %1327 = vperm.xlu0 %1923, %v1851_v15  }
 0x269   :  { %1368 = vperm.xlu1 %1924, %v1853_v3  }
 0x26c   :  { %1393 = vperm.xlu0 %1923, %v1854_v26  }
 0x26d   :  { %1418 = vperm.xlu1 %1924, %v1855_v19  }
 0x270   :  { %1443 = vperm.xlu0 %1923, %v1856_v51   ;;  %v2674_v51 = vld [vmem:[#allocation2] sm:$0x3f] }
 0x271   :  { %1468 = vperm.xlu1 %1924, %v1857_v18  }
 0x274   :  { %1493 = vperm.xlu0 %1923, %v1858_v52  }
 0x275   :  { %1518 = vperm.xlu1 %1924, %v1859_v32  }
 0x278   :  { %1543 = vperm.xlu0 %1923, %v1860_v1  }
 0x279   :  { %922 = vperm.xlu1 %1924, %v1834_v31  }
 0x2b7   :  { %v719_v33 = vpop.xlane.xlu0 %718 }
 0x2b8   :  { %v720_v10 = vrot.slane %v719_v33, 4 }
 0x2b9   :  { %v729_v34 = vpop.xlane.xlu1 %728 }
 0x2ba   :  { %v721_v9 = vadd.f32 %v720_v10, %v719_v33  ;;  %v730_v5 = vrot.slane %v729_v34, 4 }
 0x2bb   :  { %v2594_v14 = vpop.xlane.xlu0 %785 }
 0x2bc   :  { %v731_v8 = vadd.f32 %v730_v5, %v729_v34  ;;  %v722_v35 = vrot.slane %v721_v9, 2 }
 0x2bd   :  { %v2596_v36 = vpop.xlane.xlu1 %798 }
 0x2be   :  { %v723_v38 = vadd.f32 %v722_v35, %v721_v9  ;;  %v732_v37 = vrot.slane %v731_v8, 2 }
 0x2bf   :  { %v2600_v42 = vpop.xlane.xlu0 %854 }
 0x2c0   :  { %v724_v39 = vrot.slane %v723_v38, 1  ;;  %v733_v40 = vadd.f32 %v732_v37, %v731_v8  ;;  %v800_v37 = vrot.slane %v2596_v36, 4 }
 0x2c1   :  { %v2598_v20 = vpop.xlane.xlu1 %866 }
 0x2c2   :  { %v725_v54 = vadd.f32 %v724_v39, %v723_v38  ;;  %v734_v41 = vrot.slane %v733_v40, 1  ;;  %v787_v38 = vrot.slane %v2594_v14, 4 }
 0x2c4   :  { %1872 = vpush %v725_v54  ;;  %v735_v13 = vadd.f32 %v734_v41, %v733_v40  ;;  %v788_v39 = vadd.f32 %v787_v38, %v2594_v14  ;;  %v801_v40 = vadd.f32 %v800_v37, %v2596_v36  ;;  %v856_v36 = vrot.slane %v2600_v42, 4 }
 0x2c5   :  { %v2602_v43 = vpop.permute.xlu1 %961 }
 0x2c6   :  { %v966_v44 = vmul.f32 %v2602_v43, %v931_v45  ;;  %1874 = vpush %v735_v13  ;;  %v789_v41 = vrot.slane %v788_v39, 2 }
 0x2c7   :  { %v2605_v47 = vpop.permute.xlu0 %936 }
 0x2c8   :  { %v941_v22 = vmul.f32 %v2605_v47, %v931_v45  ;;  %974 = vrot.lane.b32.xlu1 %v966_v44, %s1976_s24  ;;  %v790_v13 = vadd.f32 %v789_v41, %v788_v39 }
 0x2c9   :  { %v2609_v62 = vpop.permute.xlu1 %986 }
 0x2ca   :  { %949 = vrot.lane.b32.xlu0 %v941_v22, %s1975_s3  ;;  %v991_v48 = vmul.f32 %v2609_v62, %v931_v45  ;;  %v791_v22 = vrot.slane %v790_v13, 1 }
 0x2cb   :  { %v2612_v46 = vpop.permute.xlu0 %1011 }
 0x2cc   :  { %v1016_v50 = vmul.f32 %v2612_v46, %v931_v45 }
 0x2cd   :  { %v2616_v63 = vpop.permute.xlu1 %1036 }
 0x2ce   :  { %1024 = vrot.lane.b32.xlu1 %v1016_v50, %s1978_s26  ;;  %999 = vrot.lane.b32.xlu0 %v991_v48, %s1977_s25  ;;  %v1041_v49 = vmul.f32 %v2616_v63, %v931_v45 }
 0x2cf   :  { %v2620_v17 = vpop.permute.xlu0 %1061 }
 0x2d0   :  { %v1066_v11 = vmul.f32 %v2620_v17, %v931_v45 }
 0x2d1   :  { %v2624_v0 = vpop.permute.xlu1 %1086 }
 0x2d2   :  { %1074 = vrot.lane.b32.xlu1 %v1066_v11, %s1980_s28  ;;  %1049 = vrot.lane.b32.xlu0 %v1041_v49, %s1979_s27  ;;  %v1091_v56 = vmul.f32 %v2624_v0, %v931_v45  ;;  %v792_v49 = vadd.f32 %v791_v22, %v790_v13 }
 0x2d3   :  { %v2628_v21 = vpop.permute.xlu0 %1111 }
 0x2d4   :  { %v1116_v24 = vmul.f32 %v2628_v21, %v931_v45  ;;  %v802_v45 = vrot.slane %v801_v40, 2 }
 0x2d5   :  { %v2634_v55 = vpop.permute.xlu1 %1152 }
 0x2d6   :  { %1138 = vperm.xlu0 %1923, %v1843_v2   ;;  %1099 = vrot.lane.b32.xlu1 %v1091_v56, %s1981_s29  ;;  %v1157_v27 = vmul.f32 %v2634_v55, %v1147_v23  ;;  %v803_v44 = vadd.f32 %v802_v45, %v801_v40 }
 0x2d7   :  { %v2637_v12 = vpop.permute.xlu0 %1177 }
 0x2d8   :  { %v1182_v28 = vmul.f32 %v2637_v12, %v1147_v23  ;;  %v804_v48 = vrot.slane %v803_v44, 1 }
 0x2d9   :  { %v2641_v7 = vpop.permute.xlu1 %1202 }
 0x2da   :  { %1124 = vrot.lane.b32.xlu0 %v1116_v24, %s1982_s30  ;;  %1165 = vrot.lane.b32.xlu1 %v1157_v27, %s1975_s3  ;;  %v1207_v57 = vmul.f32 %v2641_v7, %v1147_v23  ;;  %v805_v11 = vadd.f32 %v804_v48, %v803_v44 }
 0x2db   :  { %v2645_v25 = vpop.permute.xlu0 %1227 }
 0x2dc   :  { %v1232_v60 = vmul.f32 %v2645_v25, %v1147_v23 }
 0x2dd   :  { %v2649_v6 = vpop.permute.xlu1 %1252 }
 0x2de   :  { %1190 = vrot.lane.b32.xlu0 %v1182_v28, %s1976_s24  ;;  %1215 = vrot.lane.b32.xlu1 %v1207_v57, %s1977_s25  ;;  %v1257_v61 = vmul.f32 %v2649_v6, %v1147_v23  ;;  %v857_v57 = vadd.f32 %v856_v36, %v2600_v42 }
 0x2df   :  { %v2653_v59 = vpop.permute.xlu0 %1277 }
 0x2e0   :  { %v1282_v53 = vmul.f32 %v2653_v59, %v1147_v23 }
 0x2e1   :  { %v2657_v29 = vpop.permute.xlu1 %1302 }
 0x2e2   :  { %1240 = vrot.lane.b32.xlu0 %v1232_v60, %s1978_s26  ;;  %1265 = vrot.lane.b32.xlu1 %v1257_v61, %s1979_s27  ;;  %v1307_v26 = vmul.f32 %v2657_v29, %v1147_v23 }
 0x2e3   :  { %v2661_v30 = vpop.permute.xlu0 %1327 }
 0x2e4   :  { %v1332_v19 = vmul.f32 %v2661_v30, %v1147_v23  ;;  %v868_v23 = vrot.slane %v2598_v20, 4 }
 0x2e5   :  { %v2667_v15 = vpop.permute.xlu1 %1368 }
 0x2e6   :  { %1290 = vrot.lane.b32.xlu0 %v1282_v53, %s1980_s28  ;;  %1354 = vperm.xlu1 %1924, %v1852_v4   ;;  %v1373_v32 = vmul.f32 %v2667_v15, %v2674_v51  ;;  %v869_v4 = vadd.f32 %v868_v23, %v2598_v20 }
 0x2e7   :  { %v2670_v3 = vpop.permute.xlu0 %1393 }
 0x2e8   :  { %v1398_v1 = vmul.f32 %v2670_v3, %v2674_v51 }
 0x2e9   :  { %v2676_v18 = vpop.permute.xlu1 %1418 }
 0x2ea   :  { %1340 = vrot.lane.b32.xlu1 %v1332_v19, %s1982_s30  ;;  %1315 = vrot.lane.b32.xlu0 %v1307_v26, %s1981_s29  ;;  %v1423_v33 = vmul.f32 %v2676_v18, %v2674_v51 }
 0x2eb   :  { %v2680_v52 = vpop.permute.xlu0 %1443 }
 0x2ec   :  { %v1448_v10 = vmul.f32 %v2680_v52, %v2674_v51 }
 0x2ed   :  { %v2688_v31 = vpop.permute.xlu1 %1468 }
 0x2ee   :  { %1406 = vrot.lane.b32.xlu1 %v1398_v1, %s1976_s24  ;;  %1381 = vrot.lane.b32.xlu0 %v1373_v32, %s1975_s3  ;;  %v1473_v9 = vmul.f32 %v2688_v31, %v2674_v51 }
 0x2ef   :  { %v2694_v34 = vpop.permute.xlu0 %1493 }
 0x2f0   :  { %v1498_v5 = vmul.f32 %v2694_v34, %v2674_v51 }
 0x2f1   :  { %v2702_v8 = vpop.permute.xlu1 %1518 }
 0x2f2   :  { %1456 = vrot.lane.b32.xlu1 %v1448_v10, %s1978_s26  ;;  %1431 = vrot.lane.b32.xlu0 %v1423_v33, %s1977_s25  ;;  %v1523_v35 = vmul.f32 %v2702_v8, %v2674_v51  ;;  %v858_v33 = vrot.slane %v857_v57, 2  ;;  %v870_v10 = vrot.slane %v869_v4, 2 }
 0x2f4   :  { %v871_v42 = vadd.f32 %v870_v10, %v869_v4 }
 0x2f5   :  { %s1873_s2 = spop %1872 }
 0x2f6   :  { %s2704_s10 = smul.f32 0.0025510204, %s1873_s2  ;;  %1506 = vrot.lane.b32.xlu1 %v1498_v5, %s1980_s28  ;;  %1481 = vrot.lane.b32.xlu0 %v1473_v9, %s1979_s27  ;;  %v859_v9 = vadd.f32 %v858_v33, %v857_v57  ;;  %v872_v39 = vrot.slane %v871_v42, 1 }
 0x2f7   :  { %s1875_s11 = spop %1874 }
 0x2f8   :  { %s743_s0 = smul.f32 %s2704_s10, %s2704_s10  ;;  %v860_v38 = vrot.slane %v859_v9, 1  ;;  %v873_v13 = vadd.f32 %v872_v39, %v871_v42  ;;  %v2801_v39 = vpop.permute.xlu1 %922 }
 0x2f9   :  { %s742_s12 = smul.f32 0.0025510204, %s1875_s11 }
 0x2fa   :  { %1531 = vrot.lane.b32.xlu0 %v1523_v35, %s1981_s29 }
 0x2fb   :  { %s744_s13 = ssub.f32 %s742_s12, %s743_s0 }
 0x2fc   :  { %s1830_s0 = sld [smem:[#allocation3 + $0x7]] }
 0x2fd   :  { %s745_s14 = sadd.f32 1e-05, %s744_s13 }
 0x2fe   :  { %s1829_s12 = sld [smem:[#allocation3 + $0x4]] }
 0x2ff   :  { %v746_v54 = vstv %s745_s14 }
 0x300   :  { %1925 = vrsqrt.f32 %v746_v54  ;;  %v861_v54 = vadd.f32 %v860_v38, %v859_v9  ;;  %v2789_v38 = vpop.permute.xlu0 %1543 }
 0x30d   :  { %v1926_v50 = vpop.eup %1925 }
 0x30e   :  { %1876 = vpush %v1926_v50 }
 0x30f   :  { %1878 = vpush %v792_v49 }
 0x310   :  { %1880 = vpush %v805_v11 }
 0x33f   :  { %s1877_s18 = spop %1876 }
 0x340   :  { %s749_s20 = smul.f32 %s1877_s18, %s1826_s17  ;;  %s1879_s21 = spop %1878 }
 0x341   :  { %s2717_s22 = smul.f32 0.0025510204, %s1879_s21  ;;  %s1881_s23 = spop %1880 }
 0x342   :  { %s750_s5 = sadd.f32 1.0, %s749_s20  ;;  %s752_s6 = smul.f32 %s749_s20, %s2704_s10 }
 0x343   :  { %s813_s7 = smul.f32 %s2717_s22, %s2717_s22  ;;  %s1828_s10 = sld [smem:[#allocation3 + $0x1]] }
 0x344   :  { %s753_s8 = ssub.f32 %s751_s19, %s752_s6  ;;  %v754_v14 = vstv %s750_s5  ;;  %s812_s9 = smul.f32 0.0025510204, %s1881_s23 }
 0x345   :  { %v755_v2 = vmul.f32 %v754_v14, %v2497_v16  ;;  %v756_v56 = vmul.f32 %v754_v14, %v2504_v58 }
 0x346   :  { %v757_v24 = vstv %s753_s8  ;;  %s814_s2 = ssub.f32 %s812_s9, %s813_s7 }
 0x347   :  { %v758_v27 = vadd.f32 %v757_v24, %v755_v2  ;;  %v759_v28 = vadd.f32 %v757_v24, %v756_v56  ;;  %s1832_s8 = sld [smem:[#allocation3 + $0x5]] }
 0x348   :  { %s815_s11 = sadd.f32 1e-05, %s814_s2 }
 0x349   :  { %v760_v60 = vmax.f32 %v758_v27, 0.0  ;;  %v761_v61 = vmax.f32 %v759_v28, 0.0  ;;  %s821_s14 = sadd.f32 %s1830_s0, %s1828_s10 }
 0x34a   :  { %v816_v53 = vstv %s815_s11  ;;  %s1833_s9 = sld [smem:[#allocation3 + $0x8]] }
 0x34b   :  { %762 = vst [vmem:[#allocation2 + $0x40] sm:$0x3] %v760_v60  ;;  %763 = vst [vmem:[#allocation2 + $0x8] sm:$0x3] %v761_v61  ;;  %v766_v26 = vrot.slane %v760_v60, 6  ;;  %v767_v19 = vrot.slane %v761_v61, 6  ;;  %1927 = vrsqrt.f32 %v816_v53 }
 0x34c   :  { %v772_v32 = vrot.slane %v760_v60, 4  ;;  %v773_v1 = vrot.slane %v761_v61, 4 }
 0x34d   :  { %770 = vst [vmem:[#allocation2 + $0x40] sm:$0xc] %v766_v26  ;;  %771 = vst [vmem:[#allocation2 + $0x8] sm:$0xc] %v767_v19 }
 0x34e   :  { %776 = vst [vmem:[#allocation2 + $0x40] sm:$0x30] %v772_v32  ;;  %777 = vst [vmem:[#allocation2 + $0x8] sm:$0x30] %v773_v1 }
 0x355   :  { %v930_v5 = vld [vmem:[#allocation2 + $0x8] sm:$0x3f]  ;;  %v929_v35 = vld [vmem:[#allocation2 + $0x40] sm:$0x3f] }
 0x356   :  { %v940_v20 = vmul.f32 %v2605_v47, %v930_v5  ;;  %v939_v37 = vmul.f32 %v2605_v47, %v929_v35  ;;  %v964_v41 = vmul.f32 %v2602_v43, %v929_v35  ;;  %v965_v45 = vmul.f32 %v2602_v43, %v930_v5 }
 0x357   :  { %v990_v47 = vmul.f32 %v2609_v62, %v930_v5  ;;  %v989_v44 = vmul.f32 %v2609_v62, %v929_v35  ;;  %v1014_v22 = vmul.f32 %v2612_v46, %v929_v35  ;;  %v1015_v43 = vmul.f32 %v2612_v46, %v930_v5 }
 0x358   :  { %947 = vrot.lane.b32.xlu1 %v940_v20, %s1975_s3  ;;  %945 = vrot.lane.b32.xlu0 %v939_v37, %s1975_s3  ;;  %v1928_v40 = vpop.eup %1927  ;;  %v1040_v48 = vmul.f32 %v2616_v63, %v930_v5  ;;  %v1039_v50 = vmul.f32 %v2616_v63, %v929_v35  ;;  %v1064_v62 = vmul.f32 %v2620_v17, %v929_v35  ;;  %v2795_v37 = vpop.permute.xlu0 %949 }
 0x359   :  { %1882 = vpush %v1928_v40  ;;  %v1065_v49 = vmul.f32 %v2620_v17, %v930_v5  ;;  %v1089_v46 = vmul.f32 %v2624_v0, %v929_v35  ;;  %v1090_v11 = vmul.f32 %v2624_v0, %v930_v5  ;;  %v1115_v63 = vmul.f32 %v2628_v21, %v930_v5 }
 0x35a   :  { %1884 = vpush %v861_v54  ;;  %v1114_v14 = vmul.f32 %v2628_v21, %v929_v35  ;;  %v2807_v54 = vpop.permute.xlu1 %974 }
 0x35b   :  { %1886 = vpush %v873_v13 }
 0x35c   :  { %970 = vrot.lane.b32.xlu1 %v964_v41, %s1976_s24  ;;  %972 = vrot.lane.b32.xlu0 %v965_v45, %s1976_s24  ;;  %v2805_v40 = vpop.permute.xlu0 %999 }
 0x360   :  { %997 = vrot.lane.b32.xlu1 %v990_v47, %s1977_s25  ;;  %995 = vrot.lane.b32.xlu0 %v989_v44, %s1977_s25  ;;  %v2811_v41 = vpop.permute.xlu0 %1049 }
 0x364   :  { %1020 = vrot.lane.b32.xlu1 %v1014_v22, %s1978_s26  ;;  %1022 = vrot.lane.b32.xlu0 %v1015_v43, %s1978_s26  ;;  %v2813_v45 = vpop.permute.xlu0 %1138 }
 0x368   :  { %1047 = vrot.lane.b32.xlu1 %v1040_v48, %s1979_s27  ;;  %1045 = vrot.lane.b32.xlu0 %v1039_v50, %s1979_s27 }
 0x36c   :  { %1070 = vrot.lane.b32.xlu1 %v1064_v62, %s1980_s28  ;;  %1072 = vrot.lane.b32.xlu0 %v1065_v49, %s1980_s28 }
 0x370   :  { %1095 = vrot.lane.b32.xlu1 %v1089_v46, %s1981_s29  ;;  %1097 = vrot.lane.b32.xlu0 %v1090_v11, %s1981_s29 }
 0x374   :  { %1122 = vrot.lane.b32.xlu1 %v1115_v63, %s1982_s30  ;;  %1120 = vrot.lane.b32.xlu0 %v1114_v14, %s1982_s30 }
 0x38a   :  { %s1883_s13 = spop %1882 }
 0x38b   :  { %s819_s15 = smul.f32 %s1883_s13, %s1829_s12  ;;  %s1885_s16 = spop %1884 }
 0x38c   :  { %s2760_s17 = smul.f32 0.0025510204, %s1885_s16  ;;  %s1887_s18 = spop %1886 }
 0x38d   :  { %s820_s19 = sadd.f32 1.0, %s819_s15  ;;  %s822_s20 = smul.f32 %s819_s15, %s2717_s22 }
 0x38e   :  { %s881_s21 = smul.f32 %s2760_s17, %s2760_s17  ;;  %s1831_s22 = sld [smem:[#allocation3 + $0x2]] }
 0x38f   :  { %s823_s23 = ssub.f32 %s821_s14, %s822_s20  ;;  %v824_v17 = vstv %s820_s19  ;;  %s880_s5 = smul.f32 0.0025510204, %s1887_s18 }
 0x390   :  { %v825_v0 = vmul.f32 %v824_v17, %v2497_v16  ;;  %v826_v21 = vmul.f32 %v824_v17, %v2504_v58  ;;  %s1861_s16 = sld [smem:[#allocation3 + $0x9]] }
 0x391   :  { %v827_v36 = vstv %s823_s23  ;;  %s882_s6 = ssub.f32 %s880_s5, %s881_s21 }
 0x392   :  { %v828_v2 = vadd.f32 %v827_v36, %v825_v0  ;;  %v829_v56 = vadd.f32 %v827_v36, %v826_v21  ;;  %s1862_s18 = sld [smem:[#allocation3 + $0xc]] }
 0x393   :  { %s883_s7 = sadd.f32 1e-05, %s882_s6 }
 0x394   :  { %v830_v23 = vmax.f32 %v828_v2, 0.0  ;;  %v831_v24 = vmax.f32 %v829_v56, 0.0  ;;  %s889_s10 = sadd.f32 %s1833_s9, %s1831_s22 }
 0x395   :  { %v884_v27 = vstv %s883_s7 }
 0x396   :  { %v834_v28 = vrot.slane %v830_v23, 2  ;;  %v835_v57 = vrot.slane %v831_v24, 2  ;;  %840 = vst [vmem:[#allocation2 + $0x18] sm:$0xc] %v830_v23  ;;  %841 = vst [vmem:[#allocation2 + $0x38] sm:$0xc] %v831_v24  ;;  %1929 = vrsqrt.f32 %v884_v27 }
 0x397   :  { %v842_v60 = vrot.slane %v830_v23, 6  ;;  %v843_v61 = vrot.slane %v831_v24, 6 }
 0x398   :  { %838 = vst [vmem:[#allocation2 + $0x18] sm:$0x3] %v834_v28  ;;  %839 = vst [vmem:[#allocation2 + $0x38] sm:$0x3] %v835_v57 }
 0x399   :  { %846 = vst [vmem:[#allocation2 + $0x18] sm:$0x30] %v842_v60  ;;  %847 = vst [vmem:[#allocation2 + $0x38] sm:$0x30] %v843_v61 }
 0x3a0   :  { %v1145_v4 = vld [vmem:[#allocation2 + $0x18] sm:$0x3f] }
 0x3a1   :  { %v1146_v53 = vld [vmem:[#allocation2 + $0x38] sm:$0x3f]  ;;  %v1155_v26 = vmul.f32 %v2634_v55, %v1145_v4  ;;  %v1180_v33 = vmul.f32 %v2637_v12, %v1145_v4  ;;  %v1205_v10 = vmul.f32 %v2641_v7, %v1145_v4  ;;  %v1230_v42 = vmul.f32 %v2645_v25, %v1145_v4 }
 0x3a2   :  { %v1156_v19 = vmul.f32 %v2634_v55, %v1146_v53  ;;  %v1181_v1 = vmul.f32 %v2637_v12, %v1146_v53  ;;  %v1206_v9 = vmul.f32 %v2641_v7, %v1146_v53  ;;  %v1231_v55 = vmul.f32 %v2645_v25, %v1146_v53 }
 0x3a3   :  { %1161 = vrot.lane.b32.xlu1 %v1155_v26, %s1975_s3  ;;  %v1930_v32 = vpop.eup %1929  ;;  %v1255_v12 = vmul.f32 %v2649_v6, %v1145_v4  ;;  %v1256_v5 = vmul.f32 %v2649_v6, %v1146_v53  ;;  %v1281_v7 = vmul.f32 %v2653_v59, %v1146_v53  ;;  %v1280_v35 = vmul.f32 %v2653_v59, %v1145_v4 }
 0x3a4   :  { %1163 = vrot.lane.b32.xlu0 %v1156_v19, %s1975_s3  ;;  %1888 = vpush %v1930_v32  ;;  %v1306_v25 = vmul.f32 %v2657_v29, %v1146_v53  ;;  %v1305_v20 = vmul.f32 %v2657_v29, %v1145_v4  ;;  %v1330_v6 = vmul.f32 %v2661_v30, %v1145_v4  ;;  %v2809_v29 = vpop.permute.xlu1 %1024 }
 0x3a5   :  { %v1331_v59 = vmul.f32 %v2661_v30, %v1146_v53  ;;  %v2817_v30 = vpop.permute.xlu0 %1124 }
 0x3a7   :  { %1188 = vrot.lane.b32.xlu1 %v1181_v1, %s1976_s24 }
 0x3a8   :  { %1186 = vrot.lane.b32.xlu0 %v1180_v33, %s1976_s24  ;;  %v2815_v13 = vpop.permute.xlu1 %1074 }
 0x3a9   :  { %v2821_v44 = vpop.permute.xlu0 %1190 }
 0x3ab   :  { %1211 = vrot.lane.b32.xlu1 %v1205_v10, %s1977_s25 }
 0x3ac   :  { %1213 = vrot.lane.b32.xlu0 %v1206_v9, %s1977_s25  ;;  %v2819_v47 = vpop.permute.xlu1 %1099 }
 0x3ad   :  { %v2826_v48 = vpop.permute.xlu0 %1240 }
 0x3af   :  { %1238 = vrot.lane.b32.xlu1 %v1231_v55, %s1978_s26 }
 0x3b0   :  { %1236 = vrot.lane.b32.xlu0 %v1230_v42, %s1978_s26  ;;  %v2823_v22 = vpop.permute.xlu1 %1165 }
 0x3b1   :  { %v2832_v0 = vpop.permute.xlu0 %1290 }
 0x3b3   :  { %1261 = vrot.lane.b32.xlu1 %v1255_v12, %s1979_s27 }
 0x3b4   :  { %1263 = vrot.lane.b32.xlu0 %v1256_v5, %s1979_s27  ;;  %v2830_v46 = vpop.permute.xlu1 %1215 }
 0x3b7   :  { %1288 = vrot.lane.b32.xlu1 %v1281_v7, %s1980_s28 }
 0x3b8   :  { %1286 = vrot.lane.b32.xlu0 %v1280_v35, %s1980_s28  ;;  %v2834_v23 = vpop.permute.xlu1 %1265 }
 0x3bb   :  { %1313 = vrot.lane.b32.xlu1 %v1306_v25, %s1981_s29 }
 0x3bc   :  { %1311 = vrot.lane.b32.xlu0 %v1305_v20, %s1981_s29 }
 0x3bf   :  { %1336 = vrot.lane.b32.xlu1 %v1330_v6, %s1982_s30 }
 0x3c0   :  { %1338 = vrot.lane.b32.xlu0 %v1331_v59, %s1982_s30  ;;  %v1548_v59 = vmul.f32 %v2789_v38, %v2674_v51 }
 0x3d5   :  { %s1889_s2 = spop %1888 }
 0x3d6   :  { %s887_s11 = smul.f32 %s1889_s2, %s1832_s8 }
 0x3d8   :  { %s888_s0 = sadd.f32 1.0, %s887_s11  ;;  %s890_s12 = smul.f32 %s887_s11, %s2760_s17 }
 0x3d9   :  { %s1863_s17 = sld [smem:[#allocation3 + $0xf]] }
 0x3da   :  { %s891_s13 = ssub.f32 %s889_s10, %s890_s12  ;;  %v892_v43 = vstv %s888_s0 }
 0x3db   :  { %v893_v50 = vmul.f32 %v892_v43, %v2497_v16  ;;  %v894_v62 = vmul.f32 %v892_v43, %v2504_v58  ;;  %v2836_v16 = vpop.permute.xlu1 %1354  ;;  %v2838_v58 = vpop.permute.xlu0 %1315  ;;  %s1865_s0 = sld [smem:[#allocation3 + $0xa]] }
 0x3dc   :  { %v895_v49 = vstv %s891_s13  ;;  %s1867_s12 = sld [smem:[#allocation3 + $0x10]] }
 0x3dd   :  { %v896_v11 = vadd.f32 %v895_v49, %v893_v50  ;;  %v897_v63 = vadd.f32 %v895_v49, %v894_v62  ;;  %s1866_s13 = sld [smem:[#allocation3 + $0xd]] }
 0x3df   :  { %v898_v14 = vmax.f32 %v896_v11, 0.0  ;;  %v899_v17 = vmax.f32 %v897_v63, 0.0  ;;  %v2842_v60 = vpop.permute.xlu1 %1340  ;;  %v2844_v61 = vpop.permute.xlu0 %1381  ;;  %s1615_s20 = sadd.f32 %s1863_s17, %s1861_s16 }
 0x3e1   :  { %v902_v21 = vrot.slane %v898_v14, 4  ;;  %v903_v36 = vrot.slane %v899_v17, 4  ;;  %v908_v2 = vrot.slane %v898_v14, 2  ;;  %v909_v56 = vrot.slane %v899_v17, 2  ;;  %914 = vst [vmem:[#allocation2 + $0x30] sm:$0x30] %v898_v14 }
 0x3e2   :  { %915 = vst [vmem:[#allocation2 + $0x28] sm:$0x30] %v899_v17 }
 0x3e3   :  { %906 = vst [vmem:[#allocation2 + $0x30] sm:$0x3] %v902_v21  ;;  %907 = vst [vmem:[#allocation2 + $0x28] sm:$0x3] %v903_v36  ;;  %v2852_v26 = vpop.permute.xlu1 %1406  ;;  %v2854_v19 = vpop.permute.xlu0 %1431 }
 0x3e4   :  { %912 = vst [vmem:[#allocation2 + $0x30] sm:$0xc] %v908_v2  ;;  %913 = vst [vmem:[#allocation2 + $0x28] sm:$0xc] %v909_v56 }
 0x3e7   :  { %v2862_v33 = vpop.permute.xlu1 %1456  ;;  %v2864_v10 = vpop.permute.xlu0 %1481 }
 0x3eb   :  { %v1362_v24 = vld [vmem:[#allocation2 + $0x28] sm:$0x3f]  ;;  %v1361_v27 = vld [vmem:[#allocation2 + $0x30] sm:$0x3f]  ;;  %v2872_v55 = vpop.permute.xlu1 %1506  ;;  %v2874_v42 = vpop.permute.xlu0 %1531 }
 0x3ec   :  { %v1372_v28 = vmul.f32 %v2667_v15, %v1362_v24  ;;  %v1371_v57 = vmul.f32 %v2667_v15, %v1361_v27  ;;  %v1396_v4 = vmul.f32 %v2670_v3, %v1361_v27  ;;  %v1397_v53 = vmul.f32 %v2670_v3, %v1362_v24 }
 0x3ed   :  { %v1422_v15 = vmul.f32 %v2676_v18, %v1362_v24  ;;  %v1421_v32 = vmul.f32 %v2676_v18, %v1361_v27  ;;  %v1446_v1 = vmul.f32 %v2680_v52, %v1361_v27  ;;  %v1447_v3 = vmul.f32 %v2680_v52, %v1362_v24 }
 0x3ee   :  { %1379 = vrot.lane.b32.xlu1 %v1372_v28, %s1975_s3  ;;  %1377 = vrot.lane.b32.xlu0 %v1371_v57, %s1975_s3  ;;  %v1472_v9 = vmul.f32 %v2688_v31, %v1362_v24  ;;  %v1471_v18 = vmul.f32 %v2688_v31, %v1361_v27  ;;  %v1496_v52 = vmul.f32 %v2694_v34, %v1361_v27 }
 0x3ef   :  { %v1497_v12 = vmul.f32 %v2694_v34, %v1362_v24  ;;  %v946_v5 = vpop.permute.xlu0 %945  ;;  %v948_v7 = vpop.permute.xlu1 %947  ;;  %v1522_v31 = vmul.f32 %v2702_v8, %v1362_v24  ;;  %v1521_v35 = vmul.f32 %v2702_v8, %v1361_v27  ;;  %v1546_v25 = vmul.f32 %v2789_v38, %v1361_v27 }
 0x3f0   :  { %v1547_v20 = vmul.f32 %v2789_v38, %v1362_v24  ;;  %v916_v38 = vld [vmem:[#allocation2 + $0x40] sm:$0x3f] }
 0x3f2   :  { %1402 = vrot.lane.b32.xlu1 %v1396_v4, %s1976_s24  ;;  %1404 = vrot.lane.b32.xlu0 %v1397_v53, %s1976_s24  ;;  %s1681_s24 = sadd.f32 %s1867_s12, %s1865_s0 }
 0x3f3   :  { %v973_v6 = vpop.permute.xlu0 %972  ;;  %v971_v34 = vpop.permute.xlu1 %970 }
 0x3f6   :  { %1429 = vrot.lane.b32.xlu1 %v1422_v15, %s1977_s25  ;;  %1427 = vrot.lane.b32.xlu0 %v1421_v32, %s1977_s25  ;;  %v951_v15 = vsel %vm75_vm0, %v946_v5, %v948_v7  ;;  %v925_v32 = vmul.f32 %v2801_v39, %v916_v38  ;;  %v977_v5 = vsel %vm101_vm1, %v973_v6, %v2807_v54 }
 0x3f7   :  { %v996_v8 = vpop.permute.xlu0 %995  ;;  %v998_v43 = vpop.permute.xlu1 %997 }
 0x3fa   :  { %1452 = vrot.lane.b32.xlu1 %v1446_v1, %s1978_s26  ;;  %1454 = vrot.lane.b32.xlu0 %v1447_v3, %s1978_s26  ;;  %v917_v1 = vld [vmem:[#allocation2 + $0x8] sm:$0x3f]  ;;  %v976_v3 = vsel %vm101_vm1, %v971_v34, %v973_v6  ;;  %v1002_v34 = vsel %vm127_vm2, %v998_v43, %v2805_v40 }
 0x3fb   :  { %v1023_v50 = vpop.permute.xlu0 %1022  ;;  %v1021_v62 = vpop.permute.xlu1 %1020 }
 0x3fe   :  { %1479 = vrot.lane.b32.xlu1 %v1472_v9, %s1979_s27  ;;  %1477 = vrot.lane.b32.xlu0 %v1471_v18, %s1979_s27  ;;  %v955_v9 = vadd.f32 %v951_v15, %v925_v32  ;;  %v952_v18 = vsel %vm75_vm0, %v948_v7, %v2795_v37 }
 0x3ff   :  { %v1046_v49 = vpop.permute.xlu0 %1045  ;;  %v1048_v11 = vpop.permute.xlu1 %1047 }
 0x400   :  { %v1051_v37 = vsel %vm179_vm4, %v1046_v49, %v1048_v11  ;;  %v1052_v6 = vsel %vm179_vm4, %v1048_v11, %v2811_v41 }
 0x402   :  { %1502 = vrot.lane.b32.xlu1 %v1496_v52, %s1980_s28  ;;  %1504 = vrot.lane.b32.xlu0 %v1497_v12, %s1980_s28  ;;  %v1001_v52 = vsel %vm127_vm2, %v996_v8, %v998_v43  ;;  %v926_v12 = vmul.f32 %v2801_v39, %v917_v1  ;;  %v1027_v39 = vsel %vm153_vm3, %v1023_v50, %v2809_v29 }
 0x403   :  { %v1073_v63 = vpop.permute.xlu0 %1072  ;;  %v1071_v14 = vpop.permute.xlu1 %1070 }
 0x404   :  { %v1076_v15 = vsel %vm205_vm5, %v1071_v14, %v1073_v63  ;;  %v1077_v43 = vsel %vm205_vm5, %v1073_v63, %v2815_v13  ;;  %v1132_v14 = vld [vmem:[#allocation2 + $0x18] sm:$0x3f] }
 0x406   :  { %1529 = vrot.lane.b32.xlu1 %v1522_v31, %s1981_s29  ;;  %1527 = vrot.lane.b32.xlu0 %v1521_v35, %s1981_s29  ;;  %v980_v31 = vadd.f32 %v976_v3, %v955_v9 }
 0x407   :  { %v1098_v17 = vpop.permute.xlu0 %1097  ;;  %v1096_v21 = vpop.permute.xlu1 %1095 }
 0x408   :  { %v1005_v38 = vadd.f32 %v1001_v52, %v980_v31 }
 0x40a   :  { %1552 = vrot.lane.b32.xlu1 %v1546_v25, %s1982_s30  ;;  %1554 = vrot.lane.b32.xlu0 %v1547_v20, %s1982_s30  ;;  %v1026_v20 = vsel %vm153_vm3, %v1021_v62, %v1023_v50  ;;  %v1101_v62 = vsel %vm231_vm6, %v1096_v21, %v1098_v17  ;;  %v1102_v50 = vsel %vm231_vm6, %v1098_v17, %v2819_v47 }
 0x40b   :  { %v1121_v36 = vpop.permute.xlu0 %1120  ;;  %v1123_v2 = vpop.permute.xlu1 %1122  ;;  %v1030_v8 = vadd.f32 %v1026_v20, %v1005_v38  ;;  %v1141_v21 = vmul.f32 %v2813_v45, %v1132_v14  ;;  %v1133_v20 = vld [vmem:[#allocation2 + $0x38] sm:$0x3f] }
 0x40c   :  { %v1126_v49 = vsel %vm257_vm7, %v1121_v36, %v1123_v2  ;;  %v1127_v41 = vsel %vm257_vm7, %v1123_v2, %v2817_v30  ;;  %v1142_v47 = vmul.f32 %v2813_v45, %v1133_v20 }
 0x40d   :  { %v1055_v1 = vadd.f32 %v1051_v37, %v1030_v8 }
 0x40e   :  { %1556 = vrot.lane.b32.xlu1 %v1548_v59, %s1982_s30  ;;  %v956_v59 = vadd.f32 %v952_v18, %v926_v12 }
 0x40f   :  { %v1080_v40 = vadd.f32 %v1076_v15, %v1055_v1 }
 0x410   :  { %v981_v7 = vadd.f32 %v977_v5, %v956_v59 }
 0x411   :  { %v1105_v29 = vadd.f32 %v1101_v62, %v1080_v40 }
 0x412   :  { %v1006_v32 = vadd.f32 %v1002_v34, %v981_v7 }
 0x413   :  { %v1130_v12 = vadd.f32 %v1126_v49, %v1105_v29  ;;  %v1348_v29 = vld [vmem:[#allocation2 + $0x30] sm:$0x3f] }
 0x414   :  { %v1031_v9 = vadd.f32 %v1027_v39, %v1006_v32 }
 0x415   :  { %v1162_v24 = vpop.permute.xlu1 %1161  ;;  %v1143_v36 = vadd.f32 %v1141_v21, %v1130_v12 }
 0x416   :  { %v1164_v56 = vpop.permute.xlu0 %1163  ;;  %v1056_v18 = vadd.f32 %v1052_v6, %v1031_v9 }
 0x417   :  { %v1167_v13 = vsel %vm75_vm0, %v1162_v24, %v1164_v56  ;;  %v1168_v37 = vsel %vm75_vm0, %v1164_v56, %v2823_v22 }
 0x418   :  { %v1081_v52 = vadd.f32 %v1077_v43, %v1056_v18  ;;  %v1171_v17 = vadd.f32 %v1167_v13, %v1143_v36 }
 0x419   :  { %v1189_v28 = vpop.permute.xlu1 %1188 }
 0x41a   :  { %v1187_v27 = vpop.permute.xlu0 %1186  ;;  %v1106_v11 = vadd.f32 %v1102_v50, %v1081_v52  ;;  %v1193_v24 = vsel %vm101_vm1, %v1189_v28, %v2821_v44  ;;  %v1357_v52 = vmul.f32 %v2836_v16, %v1348_v29 }
 0x41b   :  { %v1192_v59 = vsel %vm101_vm1, %v1187_v27, %v1189_v28 }
 0x41c   :  { %v1131_v63 = vadd.f32 %v1127_v41, %v1106_v11  ;;  %v1196_v7 = vadd.f32 %v1192_v59, %v1171_v17 }
 0x41d   :  { %v1212_v51 = vpop.permute.xlu1 %1211 }
 0x41e   :  { %v2891_v57 = vpop.permute.xlu0 %1213  ;;  %v1144_v2 = vadd.f32 %v1142_v47, %v1131_v63 }
 0x41f   :  { %v1217_v30 = vsel %vm127_vm2, %v1212_v51, %v2891_v57  ;;  %v1218_v32 = vsel %vm127_vm2, %v2891_v57, %v2830_v46 }
 0x420   :  { %v1172_v27 = vadd.f32 %v1168_v37, %v1144_v2  ;;  %v1221_v39 = vadd.f32 %v1217_v30, %v1196_v7 }
 0x421   :  { %v2893_v53 = vpop.permute.xlu1 %1238 }
 0x422   :  { %v1237_v4 = vpop.permute.xlu0 %1236  ;;  %v1197_v56 = vadd.f32 %v1193_v24, %v1172_v27  ;;  %v1243_v44 = vsel %vm153_vm3, %v2893_v53, %v2826_v48 }
 0x423   :  { %v1242_v8 = vsel %vm153_vm3, %v1237_v4, %v2893_v53 }
 0x424   :  { %v1246_v51 = vadd.f32 %v1242_v8, %v1221_v39  ;;  %v1222_v4 = vadd.f32 %v1218_v32, %v1197_v56 }
 0x425   :  { %v1262_v25 = vpop.permute.xlu1 %1261 }
 0x426   :  { %v2902_v35 = vpop.permute.xlu0 %1263  ;;  %v1247_v57 = vadd.f32 %v1243_v44, %v1222_v4 }
 0x427   :  { %v1267_v22 = vsel %vm179_vm4, %v1262_v25, %v2902_v35  ;;  %v1268_v9 = vsel %vm179_vm4, %v2902_v35, %v2834_v23 }
 0x428   :  { %v1271_v1 = vadd.f32 %v1267_v22, %v1246_v51  ;;  %v1272_v48 = vadd.f32 %v1268_v9, %v1247_v57 }
 0x429   :  { %v1289_v54 = vpop.permute.xlu1 %1288 }
 0x42a   :  { %v1287_v3 = vpop.permute.xlu0 %1286  ;;  %v1293_v40 = vsel %vm205_vm5, %v1289_v54, %v2832_v0 }
 0x42b   :  { %v1292_v28 = vsel %vm205_vm5, %v1287_v3, %v1289_v54  ;;  %v1297_v50 = vadd.f32 %v1293_v40, %v1272_v48  ;;  %v1349_v54 = vld [vmem:[#allocation2 + $0x28] sm:$0x3f] }
 0x42c   :  { %v1296_v25 = vadd.f32 %v1292_v28, %v1271_v1 }
 0x42d   :  { %v1314_v5 = vpop.permute.xlu1 %1313 }
 0x42e   :  { %v1312_v31 = vpop.permute.xlu0 %1311  ;;  %v1318_v18 = vsel %vm231_vm6, %v1314_v5, %v2838_v58  ;;  %v1358_v58 = vmul.f32 %v2836_v16, %v1349_v54 }
 0x42f   :  { %v1317_v46 = vsel %vm231_vm6, %v1312_v31, %v1314_v5  ;;  %v1322_v35 = vadd.f32 %v1318_v18, %v1297_v50 }
 0x430   :  { %v1321_v53 = vadd.f32 %v1317_v46, %v1296_v25  ;;  %v1789_v25 = vld [vmem:[%s3029_s1 + $0x18] sm:$0x3f] }
 0x431   :  { %v1337_v34 = vpop.permute.xlu1 %1336 }
 0x432   :  { %v1339_v38 = vpop.permute.xlu0 %1338 }
 0x433   :  { %v1342_v43 = vsel %vm257_vm7, %v1337_v34, %v1339_v38  ;;  %v1343_v23 = vsel %vm257_vm7, %v1339_v38, %v2842_v60 }
 0x434   :  { %v1346_v14 = vadd.f32 %v1342_v43, %v1321_v53  ;;  %v1347_v41 = vadd.f32 %v1343_v23, %v1322_v35 }
 0x436   :  { %v1359_v11 = vadd.f32 %v1357_v52, %v1346_v14  ;;  %v1360_v36 = vadd.f32 %v1358_v58, %v1347_v41 }
 0x460   :  { %v1378_v45 = vpop.permute.xlu0 %1377  ;;  %v1380_v15 = vpop.permute.xlu1 %1379 }
 0x461   :  { %v1383_v31 = vsel %vm75_vm0, %v1378_v45, %v1380_v15  ;;  %v1384_v60 = vsel %vm75_vm0, %v1380_v15, %v2844_v61 }
 0x462   :  { %v1387_v5 = vadd.f32 %v1383_v31, %v1359_v11  ;;  %v1388_v38 = vadd.f32 %v1384_v60, %v1360_v36 }
 0x464   :  { %v1405_v6 = vpop.permute.xlu0 %1404  ;;  %v1403_v62 = vpop.permute.xlu1 %1402 }
 0x465   :  { %v1408_v21 = vsel %vm101_vm1, %v1403_v62, %v1405_v6  ;;  %v1409_v47 = vsel %vm101_vm1, %v1405_v6, %v2852_v26 }
 0x466   :  { %v1412_v59 = vadd.f32 %v1408_v21, %v1387_v5  ;;  %v1413_v7 = vadd.f32 %v1409_v47, %v1388_v38 }
 0x468   :  { %v1428_v3 = vpop.permute.xlu0 %1427  ;;  %v1430_v49 = vpop.permute.xlu1 %1429 }
 0x469   :  { %v1433_v63 = vsel %vm127_vm2, %v1428_v3, %v1430_v49  ;;  %v1434_v16 = vsel %vm127_vm2, %v1430_v49, %v2854_v19 }
 0x46a   :  { %v1437_v34 = vadd.f32 %v1433_v63, %v1412_v59  ;;  %v1438_v27 = vadd.f32 %v1434_v16, %v1413_v7 }
 0x46c   :  { %v1455_v12 = vpop.permute.xlu0 %1454  ;;  %v1453_v0 = vpop.permute.xlu1 %1452 }
 0x46d   :  { %v1458_v17 = vsel %vm153_vm3, %v1453_v0, %v1455_v12  ;;  %v1459_v24 = vsel %vm153_vm3, %v1455_v12, %v2862_v33 }
 0x46e   :  { %v1462_v61 = vadd.f32 %v1458_v17, %v1437_v34  ;;  %v1463_v22 = vadd.f32 %v1459_v24, %v1438_v27 }
 0x470   :  { %v1478_v20 = vpop.permute.xlu0 %1477  ;;  %v1480_v13 = vpop.permute.xlu1 %1479 }
 0x471   :  { %v1483_v2 = vsel %vm179_vm4, %v1478_v20, %v1480_v13  ;;  %v1484_v15 = vsel %vm179_vm4, %v1480_v13, %v2864_v10  ;;  %v1788_v10 = vld [vmem:[%s3029_s1 + $0x10] sm:$0x3f] }
 0x472   :  { %v1487_v26 = vadd.f32 %v1483_v2, %v1462_v61  ;;  %v1488_v51 = vadd.f32 %v1484_v15, %v1463_v22 }
 0x474   :  { %v1505_v37 = vpop.permute.xlu0 %1504  ;;  %v1503_v30 = vpop.permute.xlu1 %1502 }
 0x475   :  { %v1508_v8 = vsel %vm205_vm5, %v1503_v30, %v1505_v37  ;;  %v1509_v56 = vsel %vm205_vm5, %v1505_v37, %v2872_v55 }
 0x476   :  { %v1512_v19 = vadd.f32 %v1508_v8, %v1487_v26  ;;  %v1513_v6 = vadd.f32 %v1509_v56, %v1488_v51 }
 0x478   :  { %v1528_v39 = vpop.permute.xlu0 %1527  ;;  %v1530_v45 = vpop.permute.xlu1 %1529 }
 0x479   :  { %v1533_v32 = vsel %vm231_vm6, %v1528_v39, %v1530_v45  ;;  %v1534_v4 = vsel %vm231_vm6, %v1530_v45, %v2874_v42 }
 0x47a   :  { %v1537_v44 = vadd.f32 %v1533_v32, %v1512_v19  ;;  %v1538_v9 = vadd.f32 %v1534_v4, %v1513_v6 }
 0x47c   :  { %v1555_v28 = vpop.permute.xlu0 %1554  ;;  %v1553_v33 = vpop.permute.xlu1 %1552 }
 0x47d   :  { %v1558_v1 = vsel %vm257_vm7, %v1553_v33, %v1555_v28 }
 0x47e   :  { %v2982_v62 = vadd.f32 %v1558_v1, %v1537_v44 }
 0x480   :  { %v1557_v46 = vpop.permute.xlu1 %1556  ;;  %v1564_v55 = vmul.f32 %v1788_v10, %v2982_v62 }
 0x481   :  { %v1559_v57 = vsel %vm257_vm7, %v1555_v28, %v1557_v46 }
 0x482   :  { %v2989_v42 = vadd.f32 %v1559_v57, %v1538_v9  ;;  %v1571_v43 = vmul.f32 %v1564_v55, %v2982_v62  ;;  %v1566_v48 = vsel %vm700_vm8, %v1564_v55, 0.0 }
 0x484   :  { %v1565_v40 = vmul.f32 %v1789_v25, %v2989_v42  ;;  %v1573_v18 = vsel %vm700_vm8, %v1571_v43, 0.0 }
 0x486   :  { %v1567_v53 = vsel %vm700_vm8, %v1565_v40, 0.0  ;;  %v1572_v3 = vmul.f32 %v1565_v40, %v2989_v42 }
 0x487   :  { %v1568_v49 = vadd.f32 %v1567_v53, %v1566_v48 }
 0x488   :  { %v1574_v29 = vsel %vm700_vm8, %v1572_v3, 0.0 }
 0x489   :  { %1569 = vadd.xlane.f32.xlu0 %v1568_v49  ;;  %v1575_v50 = vadd.f32 %v1574_v29, %v1573_v18 }
 0x48b   :  { %1576 = vadd.xlane.f32.xlu1 %v1575_v50 }
 0x512   :  { %v1570_v14 = vpop.xlane.xlu0 %1569 }
 0x513   :  { %v1642_v23 = vrot.slane %v1570_v14, 2  ;;  %v1581_v35 = vsel %vm716_vm9, %v1570_v14, 0.0  ;;  %v1709_v12 = vrot.slane %v1570_v14, 4 }
 0x514   :  { %v1577_v52 = vpop.xlane.xlu1 %1576  ;;  %1582 = vadd.xlane.f32.xlu0 %v1581_v35 }
 0x515   :  { %v1644_v0 = vsel %vm716_vm9, %v1642_v23, 0.0  ;;  %v1655_v54 = vrot.slane %v1577_v52, 2  ;;  %v1591_v31 = vsel %vm716_vm9, %v1577_v52, 0.0  ;;  %v1711_v41 = vsel %vm716_vm9, %v1709_v12, 0.0 }
 0x516   :  { %1645 = vadd.xlane.f32.xlu1 %v1644_v0  ;;  %v1721_v11 = vrot.slane %v1577_v52, 4  ;;  %v1984_v0 = vmov 1983009808  }
 0x517   :  { %v1657_v21 = vsel %vm716_vm9, %v1655_v54, 0.0  ;;  %v1696_v54 = vunpack.c.l.s4 %v1984_v0 }
 0x518   :  { %1592 = vadd.xlane.f32.xlu0 %v1591_v31  ;;  %v1723_v58 = vsel %vm716_vm9, %v1721_v11, 0.0  ;;  %v1698_v31 = vlaneseq }
 0x51a   :  { %1712 = vadd.xlane.f32.xlu1 %v1711_v41 }
 0x51c   :  { %1658 = vadd.xlane.f32.xlu0 %v1657_v21 }
 0x520   :  { %1724 = vadd.xlane.f32.xlu0 %v1723_v58  ;;  %v1697_v58 = vunpack.c.0.s8 %v1696_v54 }
 0x59d   :  { %v1583_v5 = vpop.xlane.xlu0 %1582 }
 0x59e   :  { %v1584_v20 = vrot.slane %v1583_v5, 4 }
 0x59f   :  { %v1646_v2 = vpop.xlane.xlu1 %1645 }
 0x5a0   :  { %v1585_v13 = vadd.f32 %v1584_v20, %v1583_v5  ;;  %v1647_v61 = vrot.slane %v1646_v2, 4  ;;  %v1699_v5 = vshrl.u32 %v1698_v31, 7 }
 0x5a1   :  { %v1593_v60 = vpop.xlane.xlu0 %1592 }
 0x5a2   :  { %v1586_v63 = vrot.slane %v1585_v13, 2  ;;  %v1594_v36 = vrot.slane %v1593_v60, 4  ;;  %v1648_v8 = vadd.f32 %v1647_v61, %v1646_v2 }
 0x5a3   :  { %v1713_v28 = vpop.xlane.xlu1 %1712 }
 0x5a4   :  { %v1595_v59 = vadd.f32 %v1594_v36, %v1593_v60  ;;  %v1587_v47 = vadd.f32 %v1586_v63, %v1585_v13  ;;  %v1649_v39 = vrot.slane %v1648_v8, 2  ;;  %v1714_v4 = vrot.slane %v1713_v28, 4 }
 0x5a5   :  { %v1659_v7 = vpop.xlane.xlu0 %1658 }
 0x5a6   :  { %v1596_v17 = vrot.slane %v1595_v59, 2  ;;  %v1588_v38 = vrot.slane %v1587_v47, 1  ;;  %v1660_v24 = vrot.slane %v1659_v7, 4  ;;  %v1650_v15 = vadd.f32 %v1649_v39, %v1648_v8 }
 0x5a7   :  { %v1715_v25 = vadd.f32 %v1714_v4, %v1713_v28 }
 0x5a8   :  { %v1589_v34 = vadd.f32 %v1588_v38, %v1587_v47  ;;  %v1597_v37 = vadd.f32 %v1596_v17, %v1595_v59  ;;  %v1661_v27 = vadd.f32 %v1660_v24, %v1659_v7  ;;  %v1651_v22 = vrot.slane %v1650_v15, 1 }
 0x5a9   :  { %v1725_v33 = vpop.xlane.xlu0 %1724  ;;  %v1716_v49 = vrot.slane %v1715_v25, 2  ;;  %v1700_v59 = vsub.s32 %v1697_v58, %v1699_v5 }
 0x5aa   :  { %1890 = vpush %v1589_v34  ;;  %v1598_v30 = vrot.slane %v1597_v37, 1  ;;  %v1662_v45 = vrot.slane %v1661_v27, 2  ;;  %v1652_v51 = vadd.f32 %v1651_v22, %v1650_v15  ;;  %v1726_v10 = vrot.slane %v1725_v33, 4 }
 0x5ab   :  { %v1717_v29 = vadd.f32 %v1716_v49, %v1715_v25 }
 0x5ac   :  { %v1599_v16 = vadd.f32 %v1598_v30, %v1597_v37  ;;  %v1663_v32 = vadd.f32 %v1662_v45, %v1661_v27  ;;  %v1727_v40 = vadd.f32 %v1726_v10, %v1725_v33 }
 0x5ad   :  { %v1718_v14 = vrot.slane %v1717_v29, 1 }
 0x5ae   :  { %1892 = vpush %v1599_v16  ;;  %v1664_v19 = vrot.slane %v1663_v32, 1  ;;  %v1728_v18 = vrot.slane %v1727_v40, 2 }
 0x5af   :  { %v1719_v52 = vadd.f32 %v1718_v14, %v1717_v29 }
 0x5b0   :  { %v1665_v44 = vadd.f32 %v1664_v19, %v1663_v32  ;;  %v1729_v50 = vadd.f32 %v1728_v18, %v1727_v40 }
 0x5b2   :  { %v1730_v23 = vrot.slane %v1729_v50, 1 }
 0x5b4   :  { %v1731_v12 = vadd.f32 %v1730_v23, %v1729_v50 }
 0x5db   :  { %s1891_s1 = spop %1890 }
 0x5dc   :  { %s3004_s27 = smul.f32 0.0034722222, %s1891_s1 }
 0x5de   :  { %s1607_s28 = smul.f32 %s3004_s27, %s3004_s27 }
 0x5df   :  { %s1893_s29 = spop %1892 }
 0x5e0   :  { %s1606_s30 = smul.f32 0.0034722222, %s1893_s29 }
 0x5e2   :  { %s1608_s14 = ssub.f32 %s1606_s30, %s1607_s28 }
 0x5e4   :  { %s1609_s15 = sadd.f32 1e-05, %s1608_s14 }
 0x5e6   :  { %v1610_v26 = vstv %s1609_s15 }
 0x5e7   :  { %1931 = vrsqrt.f32 %v1610_v26 }
 0x5f4   :  { %v1932_v56 = vpop.eup %1931 }
 0x5f5   :  { %1894 = vpush %v1932_v56 }
 0x5f6   :  { %1896 = vpush %v1652_v51 }
 0x5f7   :  { %1898 = vpush %v1665_v44 }
 0x626   :  { %s1895_s19 = spop %1894 }
 0x627   :  { %s1613_s21 = smul.f32 %s1895_s19, %s1862_s18  ;;  %s1897_s23 = spop %1896 }
 0x628   :  { %s3008_s5 = smul.f32 0.0034722222, %s1897_s23  ;;  %s1899_s6 = spop %1898 }
 0x629   :  { %s1614_s7 = sadd.f32 1.0, %s1613_s21  ;;  %s1616_s22 = smul.f32 %s1613_s21, %s3004_s27 }
 0x62a   :  { %s1673_s8 = smul.f32 %s3008_s5, %s3008_s5  ;;  %s1868_s18 = sld [smem:[#allocation3 + $0xb]] }
 0x62b   :  { %s1617_s9 = ssub.f32 %s1615_s20, %s1616_s22  ;;  %v1618_v1 = vstv %s1614_s7  ;;  %s1672_s2 = smul.f32 0.0034722222, %s1899_s6 }
 0x62c   :  { %v1619_v6 = vmul.f32 %v1618_v1, %v2982_v62  ;;  %v1620_v9 = vmul.f32 %v1618_v1, %v2989_v42  ;;  %s1869_s19 = sld [smem:[#allocation3 + $0xe]] }
 0x62d   :  { %v1621_v46 = vstv %s1617_s9  ;;  %s1674_s11 = ssub.f32 %s1672_s2, %s1673_s8  ;;  %s1985_s8 = smov [#allocation6]  }
 0x62e   :  { %v1622_v55 = vadd.f32 %v1621_v46, %v1619_v6  ;;  %v1623_v57 = vadd.f32 %v1621_v46, %v1620_v9  ;;  %s1870_s20 = sld [smem:[#allocation3 + $0x11]]  ;;  %s1776_s9 = sshll.u32 %s1985_s8, 4  ;;  %s1777_s9 = int_to_ptr.vmem [resolvable:$true] %s1776_s9 }
 0x62f   :  { %s1675_s10 = sadd.f32 1e-05, %s1674_s11  ;;  %s1949_s2 = scalar_lea.vmem %s1777_s9, 192 }
 0x630   :  { %v1624_v43 = vmax.f32 %v1622_v55, 0.0  ;;  %v1625_v48 = vmax.f32 %v1623_v57, 0.0  ;;  %p1950_p5 = scmp.ne.s32.totalorder %s1777_s9, %s1949_s2  ;;  %p1954_p6 = scmp.lt.s32.totalorder %s1777_s9, %s1777_s9 }
 0x631   :  { %v1676_v53 = vstv %s1675_s10  ;;  %p1955_p7 = scmp.lt.s32.totalorder %s1949_s2, %s1949_s2 }
 0x632   :  { %v1628_v3 = vcombine.low %v1624_v43, %v1625_v48  ;;  %1933 = vrsqrt.f32 %v1676_v53 }
 0x633   :  { %p1956_p8 = por %p1955_p7, %p1954_p6 }
 0x634   :  { %1864 = vst.sshfl [vmem:[#allocation6] sm:$0x33 pattern:$0x76325410] %v1628_v3 }
 0x635   :  { %p1957_p9 = pnand %p1956_p8, %p1950_p5 }
 0x63f   :  { %v1934_v35 = vpop.eup %1933 }
 0x640   :  { %1900 = vpush %v1934_v35 }
 0x641   :  { %1902 = vpush %v1719_v52 }
 0x642   :  { %1904 = vpush %v1731_v12 }
 0x671   :  { %s1901_s3 = spop %1900 }
 0x672   :  { %s1679_s25 = smul.f32 %s1901_s3, %s1866_s13  ;;  %s1903_s26 = spop %1902 }
 0x673   :  { %s3015_s1 = smul.f32 0.0034722222, %s1903_s26  ;;  %s1905_s27 = spop %1904 }
 0x674   :  { %s1680_s28 = sadd.f32 1.0, %s1679_s25  ;;  %s1682_s29 = smul.f32 %s1679_s25, %s3008_s5 }
 0x675   :  { %s1739_s30 = smul.f32 %s3015_s1, %s3015_s1  ;;  %s1747_s5 = sadd.f32 %s1870_s20, %s1868_s18 }
 0x676   :  { %s1683_s14 = ssub.f32 %s1681_s24, %s1682_s29  ;;  %v1684_v41 = vstv %s1680_s28  ;;  %s1738_s15 = smul.f32 0.0034722222, %s1905_s27 }
 0x677   :  { %v1685_v11 = vmul.f32 %v1684_v41, %v2982_v62  ;;  %v1686_v21 = vmul.f32 %v1684_v41, %v2989_v42 }
 0x678   :  { %v1687_v20 = vstv %s1683_s14  ;;  %s1740_s16 = ssub.f32 %s1738_s15, %s1739_s30 }
 0x679   :  { %v1688_v13 = vadd.f32 %v1687_v20, %v1685_v11  ;;  %v1689_v60 = vadd.f32 %v1687_v20, %v1686_v21 }
 0x67a   :  { %s1741_s17 = sadd.f32 1e-05, %s1740_s16 }
 0x67b   :  { %v1690_v63 = vmax.f32 %v1688_v13, 0.0  ;;  %v1691_v36 = vmax.f32 %v1689_v60, 0.0 }
 0x67c   :  { %v1742_v47 = vstv %s1741_s17 }
 0x67d   :  { %v1694_v17 = vcombine.low %v1690_v63, %v1691_v36  ;;  %1935 = vrsqrt.f32 %v1742_v47 }
 0x67f   :  { %v1701_v38 = vrot.slane %v1694_v17, %v1700_v59 }
 0x681   :  { %v1702_v34 = vcombine.high %v1701_v38, %v1701_v38 }
 0x683   :  { %1705 = vst [vmem:[#allocation6 + $0x4] sm:$0xf] %v1702_v34 }
 0x68a   :  { %v1936_v37 = vpop.eup %1935 }
 0x68b   :  { %1906 = vpush %v1936_v37 }
 0x6bc   :  { %s1907_s21 = spop %1906 }
 0x6bd   :  { %s1745_s23 = smul.f32 %s1907_s21, %s1869_s19 }
 0x6bf   :  { %s1746_s6 = sadd.f32 1.0, %s1745_s23  ;;  %s1748_s7 = smul.f32 %s1745_s23, %s3015_s1 }
 0x6c1   :  { %s1749_s22 = ssub.f32 %s1747_s5, %s1748_s7  ;;  %v1750_v30 = vstv %s1746_s6 }
 0x6c2   :  { %v1751_v16 = vmul.f32 %v1750_v30, %v2982_v62  ;;  %v1752_v2 = vmul.f32 %v1750_v30, %v2989_v42 }
 0x6c3   :  { %v1753_v7 = vstv %s1749_s22 }
 0x6c4   :  { %v1754_v61 = vadd.f32 %v1753_v7, %v1751_v16  ;;  %v1755_v24 = vadd.f32 %v1753_v7, %v1752_v2 }
 0x6c6   :  { %v1756_v8 = vmax.f32 %v1754_v61, 0.0  ;;  %v1757_v27 = vmax.f32 %v1755_v24, 0.0 }
 0x6c8   :  { %v1760_v26 = vcombine.high %v1756_v8, %v1757_v27 }
 0x6ca   :  { %1871 = vst.sshfl [vmem:[#allocation6 + $0x8] sm:$0x33 pattern:$0x76325410] %v1760_v26 }
 0x6cb   :  { %1960 = shalt.err (!%p1957_p9)
}
 0x6cc   :  { %s1986_s11 = smov 64   ;;  %s1987_s10 = smov 4  }
 0x6cd   :  { %1782 = dma.vmem_to_hbm [thread:$0]  %s1777_s9, 192, %s3032_s4, [#allocation4], %s1986_s11, %s1986_s11, %s1987_s10  }
 0x6ce   :  { %1971 = dma.done.wait [#allocation4], 192  }
 0x6cf   :  { %1972 = vsyncadd [#allocation4], 4294967104 }
 0x6d0   :  { %1786 = vsyncpa [#allocation4], 1 }
 0x6d1   :  { %1787 = vsyncpa [#allocation5], 1 }

</bundles_post_ra>
